<compile_context>
chip_gen: v6e
topology: v6e:2x2x1
jax: 0.10.0
libtpu: 0.0.40
codegen_flags: <defaults>
</compile_context>

<pallas_src>
import functools

import jax
import jax.numpy as jnp
from jax.experimental import pallas as pl
from jax.experimental.pallas import tpu as pltpu

EPS = 1e-5


# ------------------------------- kernel --------------------------------------


def _hyperconn_kernel(x_ref, ln_w_ref, ln_b_ref, wab_ref, mw_ref, mb_ref,
                      stat_ref, scale_ref, o_ref):
    """One token tile: width-connection -> Linear(D,D) -> depth-connection.

    x_ref / o_ref : (tile, n*D)  streams side-by-side on lanes
    ln_*_ref      : (1, D)       LayerNorm affine
    wab_ref       : (D, n+2)     fused [dynamic_alpha_fn | dynamic_beta_fn] (bf16)
    mw_ref        : (D, D)       wrapped Linear weight (bf16); mb_ref: (1, D) bias
    stat_ref      : (n, n+2)     [static_alpha | static_beta]
    scale_ref     : (1, n+2)     [alpha_scale x (n+1) | beta_scale]
    """
    D = ln_w_ref.shape[-1]
    n = x_ref.shape[-1] // D

    ln_w = ln_w_ref[...].astype(jnp.float32)
    ln_b = ln_b_ref[...].astype(jnp.float32)
    scales = scale_ref[...]                                     # (1, n+2) f32

    mix = [None] * (n + 1)        # f32 (tile, D): [latent, residual_0 .. residual_{n-1}]
    betas = [None] * n            # f32 (tile, 1)

    # Stream the n residual streams one at a time: load once, normalize, project,
    # fold into all n+1 mix columns, release (keeps live f32 footprint to ~1 stream).
    for i in range(n):
        x_i = x_ref[:, i * D:(i + 1) * D].astype(jnp.float32)   # static lane slice

        # LayerNorm over D (affine) — feeds only the dynamic projections.
        mean = jnp.mean(x_i, axis=-1, keepdims=True)
        var = jnp.mean(jnp.square(x_i - mean), axis=-1, keepdims=True)
        norm = (x_i - mean) * jax.lax.rsqrt(var + EPS) * ln_w + ln_b

        # Fused dynamic alpha/beta projection: one (tile, D) @ (D, n+2) MXU matmul.
        wc = jnp.tanh(jnp.dot(norm.astype(jnp.bfloat16), wab_ref[...],
                              preferred_element_type=jnp.float32))
        # Single fused coefficient update for this stream: alpha cols [0..n], beta col [n+1].
        coef = wc * scales + stat_ref[i:i + 1, :]               # (tile, n+2)
        betas[i] = coef[:, n + 1:n + 2]                         # (tile, 1)

        for m in range(n + 1):
            contrib = coef[:, m:m + 1] * x_i
            mix[m] = contrib if mix[m] is None else mix[m] + contrib

    # ---- wrapped model: Linear(D, D) on the latent stream (bf16 in, f32 accum) ----
    xo = jnp.dot(mix[0].astype(jnp.bfloat16), mw_ref[...],
                 preferred_element_type=jnp.float32)
    xo = xo + mb_ref[...].astype(jnp.float32)                   # (tile, D)

    # ---- depth connection: out[m] = beta_m * model_out + mixed_residual[m] ----
    for m in range(n):
        o_ref[:, m * D:(m + 1) * D] = (betas[m] * xo + mix[m + 1]).astype(o_ref.dtype)


# ------------------------------- wrapper -------------------------------------


def _block_byte_budget():
    """Per-generation byte budget for one (tile, n*D) input block."""
    try:
        kind = jax.devices()[0].device_kind.lower()
    except Exception:
        return 1 << 20
    if "v5 lite" in kind or "v5e" in kind or "v5lite" in kind:
        return 512 << 10       # v5e: 0.82 TB/s HBM, tile ~512 is enough to amortize
    if "7" in kind:            # v7x: 3.2 TB/s HBM, bigger tiles needed to beat 0.35us/step
        return 2 << 20
    return 1 << 20             # v6e / default


def _pick_tile(T, n, D, itemsize, requested):
    """Largest token tile that (a) fits the per-generation byte budget and
    (b) divides T, respecting the dtype sublane minimum.  Falls back to a single
    full-extent block (always legal) for awkward T."""
    min_sub = {4: 8, 2: 16, 1: 32}.get(itemsize, 8)
    if requested is None:
        target = max(min_sub, _block_byte_budget() // max(1, n * D * itemsize))
    else:
        target = max(min_sub, requested)
    target -= target % min_sub
    if T <= target:
        return T
    best = None
    for cand in range(min_sub, target + 1, min_sub):
        if T % cand == 0:
            best = cand
    # TODO(synk): cdiv grid + masked tail instead of one full-extent block for odd T.
    return best if best is not None else T


@functools.partial(jax.jit, static_argnames=("tile",))
def _forward_impl(x, params, *, tile):
    B, L, n, D = x.shape
    T = B * L
    assert D % 128 == 0, "in-kernel lane slicing assumes D is a multiple of 128"
    assert T % tile == 0

    # (B, L, n, D) -> (T, n*D): contiguous, zero-copy reshape (no transpose).
    x2d = x.reshape(T, n * D)

    # Fuse the two dynamic projections into one (D, n+2) weight; bf16 MXU operands.
    wab = jnp.concatenate(
        [params["dynamic_alpha_fn"],
         params["dynamic_beta_fn"].reshape(D, 1)], axis=1).astype(jnp.bfloat16)
    mw = params["model_w"].astype(jnp.bfloat16)
    mb = params["model_b"].reshape(1, D)
    ln_w = params["ln_weight"].reshape(1, D)
    ln_b = params["ln_bias"].reshape(1, D)

    # [static_alpha | static_beta] and matching scales, consumed as one fused
    # (tile, n+2) coefficient update per stream inside the kernel.
    stat = jnp.concatenate(
        [params["static_alpha"].astype(jnp.float32),
         params["static_beta"].reshape(n, 1).astype(jnp.float32)], axis=1)       # (n, n+2)
    scales = jnp.concatenate(
        [jnp.full((n + 1,), params["dynamic_alpha_scale"], jnp.float32),
         params["dynamic_beta_scale"].astype(jnp.float32).reshape(1)]).reshape(1, n + 2)

    # Resident (D, D) bf16 weight: single-buffer once it is big enough to matter
    # (v7x has only 64 MiB VMEM per TensorCore).
    w_bufs = 1 if D >= 2048 else 2
    if w_bufs == 1:
        mw_spec = pl.BlockSpec((D, D), lambda i: (0, 0), pipeline_mode=pl.Buffered(1))
    else:
        mw_spec = pl.BlockSpec((D, D), lambda i: (0, 0))
    # TODO(synk): for D >= 4096, K-tile the Linear with an f32 accumulator instead of
    # holding the full (D, D) weight resident.

    itemsize = jnp.dtype(x.dtype).itemsize
    blk = tile * n * D * itemsize
    vmem_bytes = (2 * blk + 2 * blk          # input + output blocks, double-buffered
                  + w_bufs * D * D * 2       # resident bf16 model weight
                  + (n + 4) * tile * D * 4   # live f32 intermediates (mix cols, x_i, xo)
                  + (2 << 20))               # small operands + headroom
    vmem_limit = int(min(max(vmem_bytes, 32 << 20), 64 << 20))

    grid = (T // tile,)

    out = pl.pallas_call(
        _hyperconn_kernel,
        grid=grid,
        in_specs=[
            pl.BlockSpec((tile, n * D), lambda i: (i, 0)),   # x, lane-dense streams
            pl.BlockSpec((1, D), lambda i: (0, 0)),          # LayerNorm gamma
            pl.BlockSpec((1, D), lambda i: (0, 0)),          # LayerNorm beta
            pl.BlockSpec((D, n + 2), lambda i: (0, 0)),      # fused alpha/beta weight (bf16)
            mw_spec,                                         # model weight (bf16, resident)
            pl.BlockSpec((1, D), lambda i: (0, 0)),          # model bias
            pl.BlockSpec((n, n + 2), lambda i: (0, 0)),      # [static_alpha | static_beta]
            pl.BlockSpec((1, n + 2), lambda i: (0, 0)),      # dynamic scales
        ],
        out_specs=pl.BlockSpec((tile, n * D), lambda i: (i, 0)),
        out_shape=jax.ShapeDtypeStruct((T, n * D), x.dtype),
        compiler_params=pltpu.CompilerParams(
            # The single parallel token axis is what shards the grid across v7x's
            # two TensorCores; the tile picker keeps T//tile >= 2 for large T.
            dimension_semantics=("parallel",),
            vmem_limit_bytes=vmem_limit),
    )(x2d, ln_w, ln_b, wab, mw, mb, stat, scales)

    # (T, n*D) -> (B, L, n, D): contiguous, zero-copy reshape (no transpose).
    return out.reshape(B, L, n, D)


def hyper_connections_forward(x, params, *, tile=None):
    B, L, n, D = x.shape
    tile = _pick_tile(B * L, n, D, jnp.dtype(x.dtype).itemsize, tile)
    return _forward_impl(x, params, tile=tile)


# --------------------------- reference & setup --------------------------------


def ref_forward(x, params):
    mean = x.mean(-1, keepdims=True)
    var = ((x - mean) ** 2).mean(-1, keepdims=True)
    norm = (x - mean) / jnp.sqrt(var + EPS)
    norm = norm * params["ln_weight"] + params["ln_bias"]
    wc = jnp.tanh(norm @ params["dynamic_alpha_fn"])
    alpha = wc * params["dynamic_alpha_scale"] + params["static_alpha"]
    dc = jnp.tanh(norm @ params["dynamic_beta_fn"])
    beta = dc * params["dynamic_beta_scale"] + params["static_beta"]
    mix = jnp.einsum("blnm,blnd->blmd", alpha, x)
    latent = mix[..., 0, :]
    mixo = mix[..., 1:, :]
    xo = latent @ params["model_w"] + params["model_b"]
    return beta[..., None] * xo[..., None, :] + mixo


def init_params(key, dim, rate, layer_id):
    k1, k2, k3, k4 = jax.random.split(key, 4)
    alpha0 = jnp.zeros((rate, 1), jnp.float32).at[layer_id % rate, 0].set(1.0)
    return dict(
        static_beta=jnp.ones((rate,), jnp.float32),
        static_alpha=jnp.concatenate(
            [alpha0, jnp.eye(rate, dtype=jnp.float32)], axis=1),
        # paper inits these to zeros; small deterministic randoms so the dynamic
        # path actually exercises the kernel.
        dynamic_alpha_fn=0.02 * jax.random.normal(k1, (dim, rate + 1), jnp.float32),
        dynamic_alpha_scale=jnp.float32(0.01),
        dynamic_beta_fn=0.02 * jax.random.normal(k2, (dim,), jnp.float32),
        dynamic_beta_scale=jnp.float32(0.01),
        # LayerNorm affine (PyTorch default init: gamma=1, beta=0)
        ln_weight=jnp.ones((dim,), jnp.float32),
        ln_bias=jnp.zeros((dim,), jnp.float32),
        # wrapped model = Linear(dim, dim)
        model_w=(1.0 / jnp.sqrt(dim)) * jax.random.normal(k3, (dim, dim), jnp.float32),
        model_b=0.01 * jax.random.normal(k4, (dim,), jnp.float32),
    )


if __name__ == "__main__":
    B, L, rate, dim = 2, 128, 2, 128      # hyper_connection_rate=2, layer_id=1
    layer_id = 1

    key = jax.random.PRNGKey(0)
    kx, kp = jax.random.split(key)
    x = jax.random.normal(kx, (B, L, rate, dim), jnp.float32)
    params = init_params(kp, dim, rate, layer_id)

    out = hyper_connections_forward(x, params)
    out = jax.block_until_ready(out)

    ref = ref_forward(x, params)
    assert out.shape == (B, L, rate, dim)
    # tolerance reflects bf16 MXU operands (f32 accumulation) vs the f32 reference
    assert jnp.allclose(out, ref, atol=3e-2, rtol=3e-2), "mismatch vs reference"
    print("KERNEL_OK")
</pallas_src>

<mosaic_0001>
module attributes {stable_mosaic.version = 11 : i64} {
  func.func @_hyperconn_kernel(%arg0: i32, %arg1: memref<256x256xf32, #tpu.memory_space<vmem>>, %arg2: memref<1x128xf32, #tpu.memory_space<vmem>>, %arg3: memref<1x128xf32, #tpu.memory_space<vmem>>, %arg4: memref<128x4xbf16, #tpu.memory_space<vmem>>, %arg5: memref<128x128xbf16, #tpu.memory_space<vmem>>, %arg6: memref<1x128xf32, #tpu.memory_space<vmem>>, %arg7: memref<2x4xf32, #tpu.memory_space<vmem>>, %arg8: memref<1x4xf32, #tpu.memory_space<vmem>>, %arg9: memref<256x256xf32, #tpu.memory_space<vmem>>) attributes {dimension_semantics = [#tpu.dimension_semantics<parallel>], iteration_bounds = array<i64: 1>, scalar_prefetch = 0 : i64, scratch_operands = 0 : i64, tpu.core_type = #tpu.core_type<tc>, window_params = [{transform_indices = @transform_0, window_bounds = array<i64: 256, 256>}, {pipeline_mode = #tpu.pipeline_mode<synchronous>, transform_indices = @transform_1, window_bounds = array<i64: 1, 128>}, {pipeline_mode = #tpu.pipeline_mode<synchronous>, transform_indices = @transform_2, window_bounds = array<i64: 1, 128>}, {pipeline_mode = #tpu.pipeline_mode<synchronous>, transform_indices = @transform_3, window_bounds = array<i64: 128, 4>}, {pipeline_mode = #tpu.pipeline_mode<synchronous>, transform_indices = @transform_4, window_bounds = array<i64: 128, 128>}, {pipeline_mode = #tpu.pipeline_mode<synchronous>, transform_indices = @transform_5, window_bounds = array<i64: 1, 128>}, {pipeline_mode = #tpu.pipeline_mode<synchronous>, transform_indices = @transform_6, window_bounds = array<i64: 2, 4>}, {pipeline_mode = #tpu.pipeline_mode<synchronous>, transform_indices = @transform_7, window_bounds = array<i64: 1, 4>}, {transform_indices = @transform_8, window_bounds = array<i64: 256, 256>}]} {
    %c0 = arith.constant 0 : index
    %c0_0 = arith.constant 0 : index
    %0 = vector.load %arg2[%c0, %c0_0] : memref<1x128xf32, #tpu.memory_space<vmem>>, vector<1x128xf32>
    %c0_1 = arith.constant 0 : index
    %c0_2 = arith.constant 0 : index
    %1 = vector.load %arg3[%c0_1, %c0_2] : memref<1x128xf32, #tpu.memory_space<vmem>>, vector<1x128xf32>
    %c0_3 = arith.constant 0 : index
    %c0_4 = arith.constant 0 : index
    %2 = vector.load %arg8[%c0_3, %c0_4] : memref<1x4xf32, #tpu.memory_space<vmem>>, vector<1x4xf32>
    %c0_5 = arith.constant 0 : index
    %c0_6 = arith.constant 0 : index
    %3 = vector.load %arg1[%c0_5, %c0_6] : memref<256x256xf32, #tpu.memory_space<vmem>>, vector<256x128xf32>
    %cst = arith.constant dense<0.000000e+00> : vector<256xf32>
    %4 = vector.multi_reduction <add>, %3, %cst [1] : vector<256x128xf32> to vector<256xf32>
    %5 = vector.shape_cast %4 : vector<256xf32> to vector<256x1xf32>
    %cst_7 = arith.constant 1.280000e+02 : f32
    %6 = vector.broadcast %cst_7 : f32 to vector<256x1xf32>
    %7 = arith.divf %5, %6 : vector<256x1xf32>
    %8 = vector.broadcast %7 : vector<256x1xf32> to vector<256x128xf32>
    %9 = arith.subf %3, %8 : vector<256x128xf32>
    %10 = arith.mulf %9, %9 : vector<256x128xf32>
    %cst_8 = arith.constant dense<0.000000e+00> : vector<256xf32>
    %11 = vector.multi_reduction <add>, %10, %cst_8 [1] : vector<256x128xf32> to vector<256xf32>
    %12 = vector.shape_cast %11 : vector<256xf32> to vector<256x1xf32>
    %cst_9 = arith.constant 1.280000e+02 : f32
    %13 = vector.broadcast %cst_9 : f32 to vector<256x1xf32>
    %14 = arith.divf %12, %13 : vector<256x1xf32>
    %15 = vector.broadcast %7 : vector<256x1xf32> to vector<256x128xf32>
    %16 = arith.subf %3, %15 : vector<256x128xf32>
    %cst_10 = arith.constant 9.99999974E-6 : f32
    %17 = vector.broadcast %cst_10 : f32 to vector<256x1xf32>
    %18 = arith.addf %14, %17 : vector<256x1xf32>
    %19 = math.rsqrt %18 : vector<256x1xf32>
    %20 = vector.broadcast %19 : vector<256x1xf32> to vector<256x128xf32>
    %21 = arith.mulf %16, %20 : vector<256x128xf32>
    %22 = vector.broadcast %0 : vector<1x128xf32> to vector<256x128xf32>
    %23 = arith.mulf %21, %22 : vector<256x128xf32>
    %24 = vector.broadcast %1 : vector<1x128xf32> to vector<256x128xf32>
    %25 = arith.addf %23, %24 : vector<256x128xf32>
    %26 = arith.truncf %25 : vector<256x128xf32> to vector<256x128xbf16>
    %c0_11 = arith.constant 0 : index
    %c0_12 = arith.constant 0 : index
    %27 = vector.load %arg4[%c0_11, %c0_12] : memref<128x4xbf16, #tpu.memory_space<vmem>>, vector<128x4xbf16>
    %cst_13 = arith.constant dense<0.000000e+00> : vector<256x4xf32>
    %28 = tpu.matmul %26, %27, %cst_13 {dimension_numbers = #tpu.dot_dimension_numbers<[1], [0], [0], [1], [0, 0, 1, 1], [], []>} : vector<256x128xbf16>, vector<128x4xbf16>, vector<256x4xf32> -> vector<256x4xf32>
    %29 = math.tanh %28 : vector<256x4xf32>
    %30 = vector.broadcast %2 : vector<1x4xf32> to vector<256x4xf32>
    %31 = arith.mulf %29, %30 : vector<256x4xf32>
    %c0_14 = arith.constant 0 : index
    %c0_15 = arith.constant 0 : index
    %32 = vector.load %arg7[%c0_14, %c0_15] : memref<2x4xf32, #tpu.memory_space<vmem>>, vector<1x4xf32>
    %33 = vector.broadcast %32 : vector<1x4xf32> to vector<256x4xf32>
    %34 = arith.addf %31, %33 : vector<256x4xf32>
    %35 = vector.extract_strided_slice %34 {offsets = [0, 3], sizes = [256, 1], strides = [1, 1]} : vector<256x4xf32> to vector<256x1xf32>
    %36 = vector.extract_strided_slice %34 {offsets = [0, 0], sizes = [256, 1], strides = [1, 1]} : vector<256x4xf32> to vector<256x1xf32>
    %37 = vector.broadcast %36 : vector<256x1xf32> to vector<256x128xf32>
    %38 = arith.mulf %37, %3 : vector<256x128xf32>
    %39 = vector.extract_strided_slice %34 {offsets = [0, 1], sizes = [256, 1], strides = [1, 1]} : vector<256x4xf32> to vector<256x1xf32>
    %40 = vector.broadcast %39 : vector<256x1xf32> to vector<256x128xf32>
    %41 = arith.mulf %40, %3 : vector<256x128xf32>
    %42 = vector.extract_strided_slice %34 {offsets = [0, 2], sizes = [256, 1], strides = [1, 1]} : vector<256x4xf32> to vector<256x1xf32>
    %43 = vector.broadcast %42 : vector<256x1xf32> to vector<256x128xf32>
    %44 = arith.mulf %43, %3 : vector<256x128xf32>
    %c0_16 = arith.constant 0 : index
    %c128 = arith.constant 128 : index
    %45 = vector.load %arg1[%c0_16, %c128] : memref<256x256xf32, #tpu.memory_space<vmem>>, vector<256x128xf32>
    %cst_17 = arith.constant dense<0.000000e+00> : vector<256xf32>
    %46 = vector.multi_reduction <add>, %45, %cst_17 [1] : vector<256x128xf32> to vector<256xf32>
    %47 = vector.shape_cast %46 : vector<256xf32> to vector<256x1xf32>
    %cst_18 = arith.constant 1.280000e+02 : f32
    %48 = vector.broadcast %cst_18 : f32 to vector<256x1xf32>
    %49 = arith.divf %47, %48 : vector<256x1xf32>
    %50 = vector.broadcast %49 : vector<256x1xf32> to vector<256x128xf32>
    %51 = arith.subf %45, %50 : vector<256x128xf32>
    %52 = arith.mulf %51, %51 : vector<256x128xf32>
    %cst_19 = arith.constant dense<0.000000e+00> : vector<256xf32>
    %53 = vector.multi_reduction <add>, %52, %cst_19 [1] : vector<256x128xf32> to vector<256xf32>
    %54 = vector.shape_cast %53 : vector<256xf32> to vector<256x1xf32>
    %cst_20 = arith.constant 1.280000e+02 : f32
    %55 = vector.broadcast %cst_20 : f32 to vector<256x1xf32>
    %56 = arith.divf %54, %55 : vector<256x1xf32>
    %57 = vector.broadcast %49 : vector<256x1xf32> to vector<256x128xf32>
    %58 = arith.subf %45, %57 : vector<256x128xf32>
    %cst_21 = arith.constant 9.99999974E-6 : f32
    %59 = vector.broadcast %cst_21 : f32 to vector<256x1xf32>
    %60 = arith.addf %56, %59 : vector<256x1xf32>
    %61 = math.rsqrt %60 : vector<256x1xf32>
    %62 = vector.broadcast %61 : vector<256x1xf32> to vector<256x128xf32>
    %63 = arith.mulf %58, %62 : vector<256x128xf32>
    %64 = vector.broadcast %0 : vector<1x128xf32> to vector<256x128xf32>
    %65 = arith.mulf %63, %64 : vector<256x128xf32>
    %66 = vector.broadcast %1 : vector<1x128xf32> to vector<256x128xf32>
    %67 = arith.addf %65, %66 : vector<256x128xf32>
    %68 = arith.truncf %67 : vector<256x128xf32> to vector<256x128xbf16>
    %c0_22 = arith.constant 0 : index
    %c0_23 = arith.constant 0 : index
    %69 = vector.load %arg4[%c0_22, %c0_23] : memref<128x4xbf16, #tpu.memory_space<vmem>>, vector<128x4xbf16>
    %cst_24 = arith.constant dense<0.000000e+00> : vector<256x4xf32>
    %70 = tpu.matmul %68, %69, %cst_24 {dimension_numbers = #tpu.dot_dimension_numbers<[1], [0], [0], [1], [0, 0, 1, 1], [], []>} : vector<256x128xbf16>, vector<128x4xbf16>, vector<256x4xf32> -> vector<256x4xf32>
    %71 = math.tanh %70 : vector<256x4xf32>
    %72 = vector.broadcast %2 : vector<1x4xf32> to vector<256x4xf32>
    %73 = arith.mulf %71, %72 : vector<256x4xf32>
    %c1 = arith.constant 1 : index
    %c0_25 = arith.constant 0 : index
    %74 = vector.load %arg7[%c1, %c0_25] : memref<2x4xf32, #tpu.memory_space<vmem>>, vector<1x4xf32>
    %75 = vector.broadcast %74 : vector<1x4xf32> to vector<256x4xf32>
    %76 = arith.addf %73, %75 : vector<256x4xf32>
    %77 = vector.extract_strided_slice %76 {offsets = [0, 3], sizes = [256, 1], strides = [1, 1]} : vector<256x4xf32> to vector<256x1xf32>
    %78 = vector.extract_strided_slice %76 {offsets = [0, 0], sizes = [256, 1], strides = [1, 1]} : vector<256x4xf32> to vector<256x1xf32>
    %79 = vector.broadcast %78 : vector<256x1xf32> to vector<256x128xf32>
    %80 = arith.mulf %79, %45 : vector<256x128xf32>
    %81 = arith.addf %38, %80 : vector<256x128xf32>
    %82 = vector.extract_strided_slice %76 {offsets = [0, 1], sizes = [256, 1], strides = [1, 1]} : vector<256x4xf32> to vector<256x1xf32>
    %83 = vector.broadcast %82 : vector<256x1xf32> to vector<256x128xf32>
    %84 = arith.mulf %83, %45 : vector<256x128xf32>
    %85 = arith.addf %41, %84 : vector<256x128xf32>
    %86 = vector.extract_strided_slice %76 {offsets = [0, 2], sizes = [256, 1], strides = [1, 1]} : vector<256x4xf32> to vector<256x1xf32>
    %87 = vector.broadcast %86 : vector<256x1xf32> to vector<256x128xf32>
    %88 = arith.mulf %87, %45 : vector<256x128xf32>
    %89 = arith.addf %44, %88 : vector<256x128xf32>
    %90 = arith.truncf %81 : vector<256x128xf32> to vector<256x128xbf16>
    %c0_26 = arith.constant 0 : index
    %c0_27 = arith.constant 0 : index
    %91 = vector.load %arg5[%c0_26, %c0_27] : memref<128x128xbf16, #tpu.memory_space<vmem>>, vector<128x128xbf16>
    %cst_28 = arith.constant dense<0.000000e+00> : vector<256x128xf32>
    %92 = tpu.matmul %90, %91, %cst_28 {dimension_numbers = #tpu.dot_dimension_numbers<[1], [0], [0], [1], [0, 0, 1, 1], [], []>} : vector<256x128xbf16>, vector<128x128xbf16>, vector<256x128xf32> -> vector<256x128xf32>
    %c0_29 = arith.constant 0 : index
    %c0_30 = arith.constant 0 : index
    %93 = vector.load %arg6[%c0_29, %c0_30] : memref<1x128xf32, #tpu.memory_space<vmem>>, vector<1x128xf32>
    %94 = vector.broadcast %93 : vector<1x128xf32> to vector<256x128xf32>
    %95 = arith.addf %92, %94 : vector<256x128xf32>
    %96 = vector.broadcast %35 : vector<256x1xf32> to vector<256x128xf32>
    %97 = arith.mulf %96, %95 : vector<256x128xf32>
    %98 = arith.addf %97, %85 : vector<256x128xf32>
    %c0_31 = arith.constant 0 : index
    %c0_32 = arith.constant 0 : index
    %99 = vector.load %arg9[%c0_31, %c0_32] : memref<256x256xf32, #tpu.memory_space<vmem>>, vector<256x128xf32>
    tpu.vector_store %arg9[%c0_31, %c0_32], %98 {strides = array<i32>} : memref<256x256xf32, #tpu.memory_space<vmem>>, vector<256x128xf32>,
    %100 = vector.broadcast %77 : vector<256x1xf32> to vector<256x128xf32>
    %101 = arith.mulf %100, %95 : vector<256x128xf32>
    %102 = arith.addf %101, %89 : vector<256x128xf32>
    %c0_33 = arith.constant 0 : index
    %c128_34 = arith.constant 128 : index
    %103 = vector.load %arg9[%c0_33, %c128_34] : memref<256x256xf32, #tpu.memory_space<vmem>>, vector<256x128xf32>
    tpu.vector_store %arg9[%c0_33, %c128_34], %102 {strides = array<i32>} : memref<256x256xf32, #tpu.memory_space<vmem>>, vector<256x128xf32>,
    return
  }
  func.func @transform_0(%arg0: i32) -> (i32, i32) {
    %c0_i32 = arith.constant 0 : i32
    %c0_i32_0 = arith.constant 0 : i32
    return %arg0, %c0_i32 : i32, i32
  }
  func.func @transform_1(%arg0: i32) -> (i32, i32) {
    %c0_i32 = arith.constant 0 : i32
    %c0_i32_0 = arith.constant 0 : i32
    %c0_i32_1 = arith.constant 0 : i32
    return %c0_i32, %c0_i32_0 : i32, i32
  }
  func.func @transform_2(%arg0: i32) -> (i32, i32) {
    %c0_i32 = arith.constant 0 : i32
    %c0_i32_0 = arith.constant 0 : i32
    %c0_i32_1 = arith.constant 0 : i32
    return %c0_i32, %c0_i32_0 : i32, i32
  }
  func.func @transform_3(%arg0: i32) -> (i32, i32) {
    %c0_i32 = arith.constant 0 : i32
    %c0_i32_0 = arith.constant 0 : i32
    %c0_i32_1 = arith.constant 0 : i32
    return %c0_i32, %c0_i32_0 : i32, i32
  }
  func.func @transform_4(%arg0: i32) -> (i32, i32) {
    %c0_i32 = arith.constant 0 : i32
    %c0_i32_0 = arith.constant 0 : i32
    %c0_i32_1 = arith.constant 0 : i32
    return %c0_i32, %c0_i32_0 : i32, i32
  }
  func.func @transform_5(%arg0: i32) -> (i32, i32) {
    %c0_i32 = arith.constant 0 : i32
    %c0_i32_0 = arith.constant 0 : i32
    %c0_i32_1 = arith.constant 0 : i32
    return %c0_i32, %c0_i32_0 : i32, i32
  }
  func.func @transform_6(%arg0: i32) -> (i32, i32) {
    %c0_i32 = arith.constant 0 : i32
    %c0_i32_0 = arith.constant 0 : i32
    %c0_i32_1 = arith.constant 0 : i32
    return %c0_i32, %c0_i32_0 : i32, i32
  }
  func.func @transform_7(%arg0: i32) -> (i32, i32) {
    %c0_i32 = arith.constant 0 : i32
    %c0_i32_0 = arith.constant 0 : i32
    %c0_i32_1 = arith.constant 0 : i32
    return %c0_i32, %c0_i32_0 : i32, i32
  }
  func.func @transform_8(%arg0: i32) -> (i32, i32) {
    %c0_i32 = arith.constant 0 : i32
    %c0_i32_0 = arith.constant 0 : i32
    return %arg0, %c0_i32 : i32, i32
  }
}

</mosaic_0001>

<bundles_post_ra>
// kernel: _forward_impl.1
= control target key start
LH: loop header
LB: loop body
LE: loop exit
PB: predicated region body
PF: predicated region fallthrough
CT: control target
= control target key end

     0   :  { %s7457_s0 = inlined_call_operand.vmem [shape: f32[256,256], index: 0, kind: input, shape index: {}]   ;;  %s7458_s3 = inlined_call_operand.vmem [shape: bf16[128,4], index: 3, kind: input, shape index: {}]   ;;  %s7459_s1 = inlined_call_operand.vmem [shape: f32[1,128], index: 1, kind: input, shape index: {}]   ;;  %s7460_s2 = inlined_call_operand.vmem [shape: f32[1,128], index: 2, kind: input, shape index: {}]   ;;  %s7461_s7 = inlined_call_operand.vmem [shape: f32[1,4], index: 7, kind: input, shape index: {}]   ;;  %s7462_s6 = inlined_call_operand.vmem [shape: f32[2,4], index: 6, kind: input, shape index: {}]   ;;  %s7463_s4 = inlined_call_operand.vmem [shape: bf16[128,128], index: 4, kind: input, shape index: {}]   ;;  %s7464_s5 = inlined_call_operand.vmem [shape: f32[1,128], index: 5, kind: input, shape index: {}]   ;;  %s7465_s8 = inlined_call_operand.vmem [shape: f32[256,256], index: 8, kind: output, shape index: {}]  }
   0x1   :  { %v4128_v0 = vld [vmem:[%s7457_s0] sm:$0xff]  ;;  %v4140_v2 = vld [vmem:[%s7457_s0 + $0x10] sm:$0xff] }
   0x2   :  { %v4133_v1 = vld [vmem:[%s7457_s0 + $0x20] sm:$0xff]  ;;  %65 = vadd.xlane.f32.xlu0 %v4128_v0  ;;  %v4145_v3 = vld [vmem:[%s7457_s0 + $0x30] sm:$0xff] }
   0x3   :  { %69 = vadd.xlane.f32.xlu1 %v4133_v1  ;;  %v4152_v4 = vld [vmem:[%s7457_s0 + $0x40] sm:$0xff]  ;;  %v4157_v5 = vld [vmem:[%s7457_s0 + $0x50] sm:$0xff] }
   0x4   :  { %v4164_v6 = vld [vmem:[%s7457_s0 + $0x60] sm:$0xff]  ;;  %v4169_v7 = vld [vmem:[%s7457_s0 + $0x70] sm:$0xff] }
   0x5   :  { %v4176_v8 = vld [vmem:[%s7457_s0 + $0x80] sm:$0xff]  ;;  %v4181_v9 = vld [vmem:[%s7457_s0 + $0x90] sm:$0xff] }
   0x6   :  { %67 = vadd.xlane.f32.xlu0 %v4140_v2  ;;  %v4188_v10 = vld [vmem:[%s7457_s0 + $0xa0] sm:$0xff]  ;;  %v4193_v11 = vld [vmem:[%s7457_s0 + $0xb0] sm:$0xff] }
   0x7   :  { %71 = vadd.xlane.f32.xlu1 %v4145_v3  ;;  %v4200_v12 = vld [vmem:[%s7457_s0 + $0xc0] sm:$0xff]  ;;  %v4205_v13 = vld [vmem:[%s7457_s0 + $0xd0] sm:$0xff] }
   0x8   :  { %v4212_v14 = vld [vmem:[%s7457_s0 + $0xe0] sm:$0xff]  ;;  %v4217_v15 = vld [vmem:[%s7457_s0 + $0xf0] sm:$0xff] }
   0x9   :  { %v4224_v16 = vld [vmem:[%s7457_s0 + $0x100] sm:$0xff]  ;;  %v4229_v17 = vld [vmem:[%s7457_s0 + $0x110] sm:$0xff] }
   0xa   :  { %73 = vadd.xlane.f32.xlu0 %v4152_v4  ;;  %v4236_v18 = vld [vmem:[%s7457_s0 + $0x120] sm:$0xff]  ;;  %v4241_v19 = vld [vmem:[%s7457_s0 + $0x130] sm:$0xff] }
   0xb   :  { %75 = vadd.xlane.f32.xlu1 %v4157_v5  ;;  %v4248_v20 = vld [vmem:[%s7457_s0 + $0x140] sm:$0xff]  ;;  %v4253_v21 = vld [vmem:[%s7457_s0 + $0x150] sm:$0xff] }
   0xc   :  { %v4260_v22 = vld [vmem:[%s7457_s0 + $0x160] sm:$0xff]  ;;  %v4265_v23 = vld [vmem:[%s7457_s0 + $0x170] sm:$0xff] }
   0xd   :  { %v4272_v24 = vld [vmem:[%s7457_s0 + $0x180] sm:$0xff]  ;;  %v4277_v25 = vld [vmem:[%s7457_s0 + $0x190] sm:$0xff] }
   0xe   :  { %77 = vadd.xlane.f32.xlu0 %v4164_v6  ;;  %v4284_v26 = vld [vmem:[%s7457_s0 + $0x1a0] sm:$0xff]  ;;  %v4289_v27 = vld [vmem:[%s7457_s0 + $0x1b0] sm:$0xff] }
   0xf   :  { %79 = vadd.xlane.f32.xlu1 %v4169_v7  ;;  %v4296_v28 = vld [vmem:[%s7457_s0 + $0x1c0] sm:$0xff]  ;;  %v4301_v29 = vld [vmem:[%s7457_s0 + $0x1d0] sm:$0xff] }
  0x10   :  { %v4308_v30 = vld [vmem:[%s7457_s0 + $0x1e0] sm:$0xff]  ;;  %v4313_v31 = vld [vmem:[%s7457_s0 + $0x1f0] sm:$0xff] }
  0x12   :  { %81 = vadd.xlane.f32.xlu0 %v4176_v8 }
  0x13   :  { %83 = vadd.xlane.f32.xlu1 %v4181_v9 }
  0x16   :  { %85 = vadd.xlane.f32.xlu0 %v4188_v10 }
  0x17   :  { %87 = vadd.xlane.f32.xlu1 %v4193_v11 }
  0x1a   :  { %89 = vadd.xlane.f32.xlu0 %v4200_v12 }
  0x1b   :  { %91 = vadd.xlane.f32.xlu1 %v4205_v13 }
  0x1e   :  { %93 = vadd.xlane.f32.xlu0 %v4212_v14 }
  0x1f   :  { %95 = vadd.xlane.f32.xlu1 %v4217_v15 }
  0x22   :  { %97 = vadd.xlane.f32.xlu0 %v4224_v16 }
  0x23   :  { %99 = vadd.xlane.f32.xlu1 %v4229_v17 }
  0x26   :  { %101 = vadd.xlane.f32.xlu0 %v4236_v18 }
  0x27   :  { %103 = vadd.xlane.f32.xlu1 %v4241_v19 }
  0x2a   :  { %105 = vadd.xlane.f32.xlu0 %v4248_v20 }
  0x2b   :  { %107 = vadd.xlane.f32.xlu1 %v4253_v21 }
  0x2e   :  { %109 = vadd.xlane.f32.xlu0 %v4260_v22 }
  0x2f   :  { %111 = vadd.xlane.f32.xlu1 %v4265_v23 }
  0x32   :  { %113 = vadd.xlane.f32.xlu0 %v4272_v24 }
  0x33   :  { %115 = vadd.xlane.f32.xlu1 %v4277_v25 }
  0x36   :  { %117 = vadd.xlane.f32.xlu0 %v4284_v26 }
  0x37   :  { %119 = vadd.xlane.f32.xlu1 %v4289_v27 }
  0x3a   :  { %121 = vadd.xlane.f32.xlu0 %v4296_v28 }
  0x3b   :  { %123 = vadd.xlane.f32.xlu1 %v4301_v29 }
  0x3e   :  { %125 = vadd.xlane.f32.xlu0 %v4308_v30 }
  0x3f   :  { %127 = vadd.xlane.f32.xlu1 %v4313_v31 }
  0x8b   :  { %v66_v32 = vpop.xlane.xlu0 %65 }
  0x8c   :  { %v70_v33 = vpop.xlane.xlu1 %69  ;;  %v130_v34 = vmul.f32 0.0078125, %v66_v32 }
  0x8d   :  { %v132_v35 = vmul.f32 0.0078125, %v70_v33 }
  0x8e   :  { %v4318_v36 = vsub.f32 %v4128_v0, %v130_v34 }
  0x8f   :  { %v4321_v37 = vsub.f32 %v4133_v1, %v132_v35  ;;  %v68_v38 = vpop.xlane.xlu0 %67 }
  0x90   :  { %v72_v39 = vpop.xlane.xlu1 %71  ;;  %v131_v40 = vmul.f32 0.0078125, %v68_v38  ;;  %v194_v41 = vmul.f32 %v4318_v36, %v4318_v36 }
  0x91   :  { %v133_v42 = vmul.f32 0.0078125, %v72_v39  ;;  %v196_v43 = vmul.f32 %v4321_v37, %v4321_v37 }
  0x92   :  { %226 = vadd.xlane.f32.xlu0 %v194_v41  ;;  %v4328_v44 = vsub.f32 %v4140_v2, %v131_v40 }
  0x93   :  { %v4331_v45 = vsub.f32 %v4145_v3, %v133_v42  ;;  %v74_v46 = vpop.xlane.xlu0 %73  ;;  %v4358_v3 = vld [vmem:[%s7458_s3 + $0x38] sm:$0xff]  }
  0x94   :  { %v76_v47 = vpop.xlane.xlu1 %75  ;;  %v134_v48 = vmul.f32 0.0078125, %v74_v46  ;;  %v195_v49 = vmul.f32 %v4328_v44, %v4328_v44  ;;  %3482 = vmatprep.subr.bf16.mxu0 %v4358_v3  ;;  %3626 = vmatprep.subr.bf16.mxu1 %v4358_v3 }
  0x95   :  { %v135_v50 = vmul.f32 0.0078125, %v76_v47  ;;  %v197_v51 = vmul.f32 %v4331_v45, %v4331_v45  ;;  %3483 = vmatpush3.bf16.msra.mxu0 %v4358_v3  ;;  %3634 = vmatpush3.bf16.msra.mxu1 %v4358_v3 }
  0x96   :  { %230 = vadd.xlane.f32.xlu0 %v196_v43  ;;  %228 = vadd.xlane.f32.xlu1 %v195_v49  ;;  %v4338_v52 = vsub.f32 %v4152_v4, %v134_v48 }
  0x97   :  { %v4341_v53 = vsub.f32 %v4157_v5, %v135_v50  ;;  %v78_v54 = vpop.xlane.xlu0 %77 }
  0x98   :  { %v80_v55 = vpop.xlane.xlu1 %79  ;;  %v136_v56 = vmul.f32 0.0078125, %v78_v54  ;;  %v198_v57 = vmul.f32 %v4338_v52, %v4338_v52 }
  0x99   :  { %v137_v58 = vmul.f32 0.0078125, %v80_v55  ;;  %v199_v59 = vmul.f32 %v4341_v53, %v4341_v53 }
  0x9a   :  { %232 = vadd.xlane.f32.xlu1 %v197_v51  ;;  %234 = vadd.xlane.f32.xlu0 %v198_v57  ;;  %v4348_v60 = vsub.f32 %v4164_v6, %v136_v56 }
  0x9b   :  { %v4351_v61 = vsub.f32 %v4169_v7, %v137_v58  ;;  %v82_v62 = vpop.xlane.xlu0 %81 }
  0x9c   :  { %v84_v63 = vpop.xlane.xlu1 %83  ;;  %v138_v0 = vmul.f32 0.0078125, %v82_v62  ;;  %v200_v1 = vmul.f32 %v4348_v60, %v4348_v60 }
  0x9d   :  { %v139_v2 = vmul.f32 0.0078125, %v84_v63  ;;  %v201_v4 = vmul.f32 %v4351_v61, %v4351_v61 }
  0x9e   :  { %236 = vadd.xlane.f32.xlu1 %v199_v59  ;;  %238 = vadd.xlane.f32.xlu0 %v200_v1  ;;  %v4363_v5 = vsub.f32 %v4176_v8, %v138_v0  ;;  %v4377_v8 = vld [vmem:[%s7458_s3 + $0x30] sm:$0xff]  }
  0x9f   :  { %v4366_v6 = vsub.f32 %v4181_v9, %v139_v2  ;;  %v86_v7 = vpop.xlane.xlu0 %85  ;;  %3484 = vmatprep.subr.bf16.mxu0 %v4377_v8  ;;  %3627 = vmatprep.subr.bf16.mxu1 %v4377_v8 }
  0xa0   :  { %v88_v32 = vpop.xlane.xlu1 %87  ;;  %v140_v33 = vmul.f32 0.0078125, %v86_v7  ;;  %v202_v34 = vmul.f32 %v4363_v5, %v4363_v5  ;;  %3485 = vmatpush3.bf16.msra.mxu0 %v4377_v8  ;;  %3635 = vmatpush3.bf16.msra.mxu1 %v4377_v8 }
  0xa1   :  { %v141_v35 = vmul.f32 0.0078125, %v88_v32  ;;  %v203_v9 = vmul.f32 %v4366_v6, %v4366_v6 }
  0xa2   :  { %240 = vadd.xlane.f32.xlu1 %v201_v4  ;;  %242 = vadd.xlane.f32.xlu0 %v202_v34  ;;  %v4382_v38 = vsub.f32 %v4188_v10, %v140_v33  ;;  %v4396_v10 = vld [vmem:[%s7458_s3 + $0x28] sm:$0xff]  }
  0xa3   :  { %v4385_v39 = vsub.f32 %v4193_v11, %v141_v35  ;;  %v90_v40 = vpop.xlane.xlu0 %89  ;;  %3486 = vmatprep.subr.bf16.mxu0 %v4396_v10  ;;  %3628 = vmatprep.subr.bf16.mxu1 %v4396_v10 }
  0xa4   :  { %v92_v41 = vpop.xlane.xlu1 %91  ;;  %v142_v42 = vmul.f32 0.0078125, %v90_v40  ;;  %v204_v43 = vmul.f32 %v4382_v38, %v4382_v38  ;;  %3487 = vmatpush3.bf16.msra.mxu0 %v4396_v10  ;;  %3636 = vmatpush3.bf16.msra.mxu1 %v4396_v10 }
  0xa5   :  { %v143_v46 = vmul.f32 0.0078125, %v92_v41  ;;  %v205_v11 = vmul.f32 %v4385_v39, %v4385_v39 }
  0xa6   :  { %244 = vadd.xlane.f32.xlu1 %v203_v9  ;;  %246 = vadd.xlane.f32.xlu0 %v204_v43  ;;  %v4401_v47 = vsub.f32 %v4200_v12, %v142_v42  ;;  %v4415_v12 = vld [vmem:[%s7458_s3 + $0x20] sm:$0xff]  }
  0xa7   :  { %v4404_v48 = vsub.f32 %v4205_v13, %v143_v46  ;;  %v94_v49 = vpop.xlane.xlu0 %93  ;;  %3488 = vmatprep.subr.bf16.mxu0 %v4415_v12  ;;  %3629 = vmatprep.subr.bf16.mxu1 %v4415_v12 }
  0xa8   :  { %v96_v50 = vpop.xlane.xlu1 %95  ;;  %v144_v51 = vmul.f32 0.0078125, %v94_v49  ;;  %v206_v54 = vmul.f32 %v4401_v47, %v4401_v47  ;;  %3489 = vmatpush3.bf16.msra.mxu0 %v4415_v12  ;;  %3637 = vmatpush3.bf16.msra.mxu1 %v4415_v12 }
  0xa9   :  { %v145_v55 = vmul.f32 0.0078125, %v96_v50  ;;  %v207_v13 = vmul.f32 %v4404_v48, %v4404_v48 }
  0xaa   :  { %248 = vadd.xlane.f32.xlu1 %v205_v11  ;;  %250 = vadd.xlane.f32.xlu0 %v206_v54  ;;  %v4420_v56 = vsub.f32 %v4212_v14, %v144_v51  ;;  %v4434_v14 = vld [vmem:[%s7458_s3 + $0x18] sm:$0xff]  }
  0xab   :  { %v4423_v57 = vsub.f32 %v4217_v15, %v145_v55  ;;  %v98_v58 = vpop.xlane.xlu0 %97  ;;  %3490 = vmatprep.subr.bf16.mxu0 %v4434_v14  ;;  %3630 = vmatprep.subr.bf16.mxu1 %v4434_v14 }
  0xac   :  { %v100_v59 = vpop.xlane.xlu1 %99  ;;  %v146_v62 = vmul.f32 0.0078125, %v98_v58  ;;  %v208_v63 = vmul.f32 %v4420_v56, %v4420_v56  ;;  %3491 = vmatpush3.bf16.msra.mxu0 %v4434_v14  ;;  %3638 = vmatpush3.bf16.msra.mxu1 %v4434_v14 }
  0xad   :  { %v147_v0 = vmul.f32 0.0078125, %v100_v59  ;;  %v209_v15 = vmul.f32 %v4423_v57, %v4423_v57 }
  0xae   :  { %252 = vadd.xlane.f32.xlu1 %v207_v13  ;;  %254 = vadd.xlane.f32.xlu0 %v208_v63  ;;  %v4439_v1 = vsub.f32 %v4224_v16, %v146_v62  ;;  %v4453_v16 = vld [vmem:[%s7458_s3 + $0x10] sm:$0xff]  }
  0xaf   :  { %v4442_v2 = vsub.f32 %v4229_v17, %v147_v0  ;;  %v102_v4 = vpop.xlane.xlu0 %101  ;;  %7611 = vst [vmem:[#allocation2_spill] sm:$0xff] %v4453_v16  ;;  %3492 = vmatprep.subr.bf16.mxu0 %v4453_v16  ;;  %3631 = vmatprep.subr.bf16.mxu1 %v4453_v16 }
  0xb0   :  { %v104_v7 = vpop.xlane.xlu1 %103  ;;  %v148_v32 = vmul.f32 0.0078125, %v102_v4  ;;  %v210_v33 = vmul.f32 %v4439_v1, %v4439_v1  ;;  %3493 = vmatpush3.bf16.msra.mxu0 %v4453_v16  ;;  %3639 = vmatpush3.bf16.msra.mxu1 %v4453_v16 }
  0xb1   :  { %v149_v34 = vmul.f32 0.0078125, %v104_v7  ;;  %v211_v17 = vmul.f32 %v4442_v2, %v4442_v2 }
  0xb2   :  { %256 = vadd.xlane.f32.xlu1 %v209_v15  ;;  %258 = vadd.xlane.f32.xlu0 %v210_v33  ;;  %v4458_v35 = vsub.f32 %v4236_v18, %v148_v32  ;;  %v4472_v18 = vld [vmem:[%s7458_s3 + $0x8] sm:$0xff]  }
  0xb3   :  { %v4461_v9 = vsub.f32 %v4241_v19, %v149_v34  ;;  %v106_v40 = vpop.xlane.xlu0 %105  ;;  %7612 = vst [vmem:[#allocation3_spill] sm:$0xff] %v4472_v18  ;;  %3494 = vmatprep.subr.bf16.mxu0 %v4472_v18  ;;  %3632 = vmatprep.subr.bf16.mxu1 %v4472_v18 }
  0xb4   :  { %v108_v41 = vpop.xlane.xlu1 %107  ;;  %v150_v42 = vmul.f32 0.0078125, %v106_v40  ;;  %v212_v43 = vmul.f32 %v4458_v35, %v4458_v35  ;;  %3495 = vmatpush3.bf16.msra.mxu0 %v4472_v18  ;;  %3640 = vmatpush3.bf16.msra.mxu1 %v4472_v18 }
  0xb5   :  { %v151_v46 = vmul.f32 0.0078125, %v108_v41  ;;  %v213_v19 = vmul.f32 %v4461_v9, %v4461_v9 }
  0xb6   :  { %260 = vadd.xlane.f32.xlu1 %v211_v17  ;;  %262 = vadd.xlane.f32.xlu0 %v212_v43  ;;  %v4477_v11 = vsub.f32 %v4248_v20, %v150_v42  ;;  %v4491_v20 = vld [vmem:[%s7458_s3] sm:$0xff]  }
  0xb7   :  { %v4480_v49 = vsub.f32 %v4253_v21, %v151_v46  ;;  %v110_v50 = vpop.xlane.xlu0 %109  ;;  %7613 = vst [vmem:[#allocation4_spill] sm:$0xff] %v4491_v20  ;;  %3496 = vmatprep.subr.bf16.mxu0 %v4491_v20  ;;  %3633 = vmatprep.subr.bf16.mxu1 %v4491_v20 }
  0xb8   :  { %v112_v51 = vpop.xlane.xlu1 %111  ;;  %v152_v54 = vmul.f32 0.0078125, %v110_v50  ;;  %v214_v55 = vmul.f32 %v4477_v11, %v4477_v11  ;;  %3497 = vmatpush3.bf16.msra.mxu0 %v4491_v20  ;;  %3641 = vmatpush3.bf16.msra.mxu1 %v4491_v20 }
  0xb9   :  { %v153_v13 = vmul.f32 0.0078125, %v112_v51  ;;  %v215_v21 = vmul.f32 %v4480_v49, %v4480_v49  ;;  %3530 = vmatprep.subr.bf16.mxu1 %v4358_v3 }
  0xba   :  { %264 = vadd.xlane.f32.xlu1 %v213_v19  ;;  %266 = vadd.xlane.f32.xlu0 %v214_v55  ;;  %v4496_v58 = vsub.f32 %v4260_v22, %v152_v54 }
  0xbb   :  { %v4499_v59 = vsub.f32 %v4265_v23, %v153_v13  ;;  %v114_v62 = vpop.xlane.xlu0 %113 }
  0xbc   :  { %v116_v63 = vpop.xlane.xlu1 %115  ;;  %v154_v0 = vmul.f32 0.0078125, %v114_v62  ;;  %v216_v15 = vmul.f32 %v4496_v58, %v4496_v58 }
  0xbd   :  { %v155_v4 = vmul.f32 0.0078125, %v116_v63  ;;  %v217_v22 = vmul.f32 %v4499_v59, %v4499_v59 }
  0xbe   :  { %268 = vadd.xlane.f32.xlu1 %v215_v21  ;;  %270 = vadd.xlane.f32.xlu0 %v216_v15  ;;  %v4511_v23 = vsub.f32 %v4272_v24, %v154_v0 }
  0xbf   :  { %v4514_v7 = vsub.f32 %v4277_v25, %v155_v4  ;;  %v118_v32 = vpop.xlane.xlu0 %117  ;;  %v4553_v4 = vld [vmem:[%s7457_s0 + $0x18] sm:$0xff] }
  0xc0   :  { %v120_v33 = vpop.xlane.xlu1 %119  ;;  %v156_v34 = vmul.f32 0.0078125, %v118_v32  ;;  %v218_v17 = vmul.f32 %v4511_v23, %v4511_v23  ;;  %v4576_v32 = vld [vmem:[%s7457_s0 + $0x48] sm:$0xff] }
  0xc1   :  { %v157_v40 = vmul.f32 0.0078125, %v120_v33  ;;  %v219_v41 = vmul.f32 %v4514_v7, %v4514_v7  ;;  %v4583_v33 = vld [vmem:[%s7457_s0 + $0x58] sm:$0xff] }
  0xc2   :  { %272 = vadd.xlane.f32.xlu1 %v217_v22  ;;  %274 = vadd.xlane.f32.xlu0 %v218_v17  ;;  %v4521_v42 = vsub.f32 %v4284_v26, %v156_v34  ;;  %v4571_v22 = vld [vmem:[%s7457_s0 + $0x38] sm:$0xff]  ;;  %v4588_v34 = vld [vmem:[%s7457_s0 + $0x68] sm:$0xff] }
  0xc3   :  { %v4524_v24 = vsub.f32 %v4289_v27, %v157_v40  ;;  %v122_v25 = vpop.xlane.xlu0 %121  ;;  %v4595_v17 = vld [vmem:[%s7457_s0 + $0x78] sm:$0xff]  ;;  %v4600_v40 = vld [vmem:[%s7457_s0 + $0x88] sm:$0xff] }
  0xc4   :  { %v124_v43 = vpop.xlane.xlu1 %123  ;;  %v158_v46 = vmul.f32 0.0078125, %v122_v25  ;;  %v220_v19 = vmul.f32 %v4521_v42, %v4521_v42  ;;  %7615 = vst [vmem:[#allocation6_spill] sm:$0xff] %v4600_v40  ;;  %v4612_v25 = vld [vmem:[%s7457_s0 + $0xa8] sm:$0xff] }
  0xc5   :  { %v159_v50 = vmul.f32 0.0078125, %v124_v43  ;;  %v221_v51 = vmul.f32 %v4524_v24, %v4524_v24  ;;  %7617 = vst [vmem:[#allocation8_spill] sm:$0xff] %v4612_v25  ;;  %v4619_v43 = vld [vmem:[%s7457_s0 + $0xb8] sm:$0xff] }
  0xc6   :  { %276 = vadd.xlane.f32.xlu1 %v219_v41  ;;  %278 = vadd.xlane.f32.xlu0 %v220_v19  ;;  %v4531_v54 = vsub.f32 %v4296_v28, %v158_v46  ;;  %v4607_v41 = vld [vmem:[%s7457_s0 + $0x98] sm:$0xff]  ;;  %7618 = vst [vmem:[#allocation9_spill] sm:$0xff] %v4619_v43  ;;  %v4624_v46 = vld [vmem:[%s7457_s0 + $0xc8] sm:$0xff] }
  0xc7   :  { %v4534_v26 = vsub.f32 %v4301_v29, %v159_v50  ;;  %v126_v27 = vpop.xlane.xlu0 %125  ;;  %7616 = vst [vmem:[#allocation7_spill] sm:$0xff] %v4607_v41  ;;  %7619 = vst [vmem:[#allocation10_spill] sm:$0xff] %v4624_v46  ;;  %v4631_v19 = vld [vmem:[%s7457_s0 + $0xd8] sm:$0xff]  ;;  %v4636_v50 = vld [vmem:[%s7457_s0 + $0xe8] sm:$0xff] }
  0xc8   :  { %v128_v55 = vpop.xlane.xlu1 %127  ;;  %v160_v13 = vmul.f32 0.0078125, %v126_v27  ;;  %v222_v21 = vmul.f32 %v4531_v54, %v4531_v54  ;;  %7620 = vst [vmem:[#allocation11_spill] sm:$0xff] %v4631_v19  ;;  %7621 = vst [vmem:[#allocation12_spill] sm:$0xff] %v4636_v50  ;;  %v4648_v27 = vld [vmem:[%s7457_s0 + $0x108] sm:$0xff] }
  0xc9   :  { %v161_v62 = vmul.f32 0.0078125, %v128_v55  ;;  %v223_v63 = vmul.f32 %v4534_v26, %v4534_v26  ;;  %7623 = vst [vmem:[#allocation14_spill] sm:$0xff] %v4648_v27  ;;  %v4655_v55 = vld [vmem:[%s7457_s0 + $0x118] sm:$0xff] }
  0xca   :  { %280 = vadd.xlane.f32.xlu1 %v221_v51  ;;  %282 = vadd.xlane.f32.xlu0 %v222_v21  ;;  %v4541_v0 = vsub.f32 %v4308_v30, %v160_v13  ;;  %v4559_v30 = vld [vmem:[%s7457_s0 + $0x8] sm:$0xff]  ;;  %v4643_v51 = vld [vmem:[%s7457_s0 + $0xf8] sm:$0xff]  ;;  %7624 = vst [vmem:[#allocation15_spill] sm:$0xff] %v4655_v55 }
  0xcb   :  { %v4544_v28 = vsub.f32 %v4313_v31, %v161_v62  ;;  %v4564_v31 = vld [vmem:[%s7457_s0 + $0x28] sm:$0xff]  ;;  %7622 = vst [vmem:[#allocation13_spill] sm:$0xff] %v4643_v51  ;;  %v4667_v21 = vld [vmem:[%s7457_s0 + $0x138] sm:$0xff] }
  0xcc   :  { %v224_v29 = vmul.f32 %v4541_v0, %v4541_v0  ;;  %v4660_v13 = vld [vmem:[%s7457_s0 + $0x128] sm:$0xff]  ;;  %7626 = vst [vmem:[#allocation17_spill] sm:$0xff] %v4667_v21 }
  0xcd   :  { %7614 = vst [vmem:[#allocation5_spill] sm:$0xff] %v4544_v28  ;;  %v225_v15 = vmul.f32 %v4544_v28, %v4544_v28  ;;  %7625 = vst [vmem:[#allocation16_spill] sm:$0xff] %v4660_v13  ;;  %v4672_v62 = vld [vmem:[%s7457_s0 + $0x148] sm:$0xff] }
  0xce   :  { %284 = vadd.xlane.f32.xlu1 %v223_v63  ;;  %286 = vadd.xlane.f32.xlu0 %v224_v29  ;;  %7627 = vst [vmem:[#allocation18_spill] sm:$0xff] %v4672_v62  ;;  %v4679_v63 = vld [vmem:[%s7457_s0 + $0x158] sm:$0xff]  ;;  %v4684_v29 = vld [vmem:[%s7457_s0 + $0x168] sm:$0xff] }
  0xcf   :  { %7628 = vst [vmem:[#allocation19_spill] sm:$0xff] %v4679_v63  ;;  %7629 = vst [vmem:[#allocation20_spill] sm:$0xff] %v4684_v29 }
  0xd2   :  { %288 = vadd.xlane.f32.xlu1 %v225_v15  ;;  %1388 = vadd.xlane.f32.xlu0 %v4553_v4  ;;  %v4691_v15 = vld [vmem:[%s7457_s0 + $0x178] sm:$0xff] }
  0xd3   :  { %7630 = vst [vmem:[#allocation21_spill] sm:$0xff] %v4691_v15 }
  0xd6   :  { %1386 = vadd.xlane.f32.xlu1 %v4559_v30  ;;  %1390 = vadd.xlane.f32.xlu0 %v4564_v31 }
  0xda   :  { %1392 = vadd.xlane.f32.xlu1 %v4571_v22  ;;  %1394 = vadd.xlane.f32.xlu0 %v4576_v32 }
  0xde   :  { %1396 = vadd.xlane.f32.xlu1 %v4583_v33  ;;  %1398 = vadd.xlane.f32.xlu0 %v4588_v34 }
  0xe2   :  { %1400 = vadd.xlane.f32.xlu1 %v4595_v17  ;;  %1402 = vadd.xlane.f32.xlu0 %v4600_v40 }
  0xe6   :  { %1404 = vadd.xlane.f32.xlu1 %v4607_v41  ;;  %1406 = vadd.xlane.f32.xlu0 %v4612_v25 }
  0xea   :  { %1408 = vadd.xlane.f32.xlu1 %v4619_v43  ;;  %1410 = vadd.xlane.f32.xlu0 %v4624_v46 }
  0xee   :  { %1412 = vadd.xlane.f32.xlu1 %v4631_v19  ;;  %1414 = vadd.xlane.f32.xlu0 %v4636_v50 }
  0xf2   :  { %1416 = vadd.xlane.f32.xlu1 %v4643_v51  ;;  %1418 = vadd.xlane.f32.xlu0 %v4648_v27 }
  0xf6   :  { %1420 = vadd.xlane.f32.xlu1 %v4655_v55  ;;  %1422 = vadd.xlane.f32.xlu0 %v4660_v13 }
  0xfa   :  { %1424 = vadd.xlane.f32.xlu1 %v4667_v21  ;;  %1426 = vadd.xlane.f32.xlu0 %v4672_v62  ;;  %v4696_v62 = vld [vmem:[%s7457_s0 + $0x188] sm:$0xff] }
  0xfb   :  { %7631 = vst [vmem:[#allocation22_spill] sm:$0xff] %v4696_v62 }
  0xfe   :  { %1428 = vadd.xlane.f32.xlu1 %v4679_v63  ;;  %1430 = vadd.xlane.f32.xlu0 %v4684_v29  ;;  %v4703_v63 = vld [vmem:[%s7457_s0 + $0x198] sm:$0xff]  ;;  %v4708_v29 = vld [vmem:[%s7457_s0 + $0x1a8] sm:$0xff] }
  0xff   :  { %7632 = vst [vmem:[#allocation23_spill] sm:$0xff] %v4703_v63  ;;  %7633 = vst [vmem:[#allocation24_spill] sm:$0xff] %v4708_v29 }
 0x102   :  { %1432 = vadd.xlane.f32.xlu1 %v4691_v15  ;;  %1434 = vadd.xlane.f32.xlu0 %v4696_v62  ;;  %v4715_v15 = vld [vmem:[%s7457_s0 + $0x1b8] sm:$0xff]  ;;  %v4720_v62 = vld [vmem:[%s7457_s0 + $0x1c8] sm:$0xff] }
 0x103   :  { %7634 = vst [vmem:[#allocation25_spill] sm:$0xff] %v4715_v15  ;;  %7635 = vst [vmem:[#allocation26_spill] sm:$0xff] %v4720_v62 }
 0x106   :  { %1436 = vadd.xlane.f32.xlu1 %v4703_v63  ;;  %1438 = vadd.xlane.f32.xlu0 %v4708_v29  ;;  %v4727_v63 = vld [vmem:[%s7457_s0 + $0x1d8] sm:$0xff]  ;;  %v4732_v29 = vld [vmem:[%s7457_s0 + $0x1e8] sm:$0xff] }
 0x107   :  { %7636 = vst [vmem:[#allocation27_spill] sm:$0xff] %v4727_v63  ;;  %7637 = vst [vmem:[#allocation28_spill] sm:$0xff] %v4732_v29 }
 0x10a   :  { %1440 = vadd.xlane.f32.xlu1 %v4715_v15  ;;  %1442 = vadd.xlane.f32.xlu0 %v4720_v62  ;;  %v4739_v15 = vld [vmem:[%s7457_s0 + $0x1f8] sm:$0xff] }
 0x10b   :  { %7638 = vst [vmem:[#allocation29_spill] sm:$0xff] %v4739_v15 }
 0x10e   :  { %1444 = vadd.xlane.f32.xlu1 %v4727_v63  ;;  %1446 = vadd.xlane.f32.xlu0 %v4732_v29 }
 0x112   :  { %1448 = vadd.xlane.f32.xlu1 %v4739_v15 }
 0x11b   :  { %v227_v62 = vpop.xlane.xlu0 %226 }
 0x11c   :  { %v290_v21 = vmul.f32 0.0078125, %v227_v62 }
 0x11e   :  { %v322_v13 = vadd.f32 1e-05, %v290_v21 }
 0x11f   :  { %v229_v55 = vpop.xlane.xlu1 %228  ;;  %v231_v27 = vpop.xlane.xlu0 %230 }
 0x120   :  { %3718 = vrsqrt.f32 %v322_v13  ;;  %v291_v51 = vmul.f32 0.0078125, %v229_v55  ;;  %v292_v50 = vmul.f32 0.0078125, %v231_v27 }
 0x122   :  { %v323_v19 = vadd.f32 1e-05, %v291_v51  ;;  %v324_v20 = vadd.f32 1e-05, %v292_v50 }
 0x123   :  { %v233_v63 = vpop.xlane.xlu1 %232  ;;  %v235_v46 = vpop.xlane.xlu0 %234 }
 0x124   :  { %3720 = vrsqrt.f32 %v323_v19  ;;  %v293_v29 = vmul.f32 0.0078125, %v233_v63  ;;  %v294_v43 = vmul.f32 0.0078125, %v235_v46 }
 0x125   :  { %3722 = vrsqrt.f32 %v324_v20  ;;  %v4745_v20 = vld [vmem:[%s7459_s1] ss:$0 sm:$0xff] }
 0x126   :  { %v325_v18 = vadd.f32 1e-05, %v293_v29  ;;  %v326_v25 = vadd.f32 1e-05, %v294_v43 }
 0x127   :  { %v237_v41 = vpop.xlane.xlu1 %236  ;;  %v239_v15 = vpop.xlane.xlu0 %238 }
 0x128   :  { %3724 = vrsqrt.f32 %v325_v18  ;;  %v295_v62 = vmul.f32 0.0078125, %v237_v41  ;;  %v296_v21 = vmul.f32 0.0078125, %v239_v15 }
 0x129   :  { %3726 = vrsqrt.f32 %v326_v25 }
 0x12a   :  { %v327_v16 = vadd.f32 1e-05, %v295_v62  ;;  %v328_v13 = vadd.f32 1e-05, %v296_v21 }
 0x12b   :  { %v241_v55 = vpop.xlane.xlu1 %240  ;;  %v243_v27 = vpop.xlane.xlu0 %242 }
 0x12c   :  { %3728 = vrsqrt.f32 %v327_v16  ;;  %v297_v50 = vmul.f32 0.0078125, %v241_v55  ;;  %v298_v51 = vmul.f32 0.0078125, %v243_v27 }
 0x12d   :  { %v3719_v40 = vpop.eup %3718  ;;  %3730 = vrsqrt.f32 %v328_v13  ;;  %v4752_v13 = vld [vmem:[%s7460_s2] ss:$0 sm:$0xff] }
 0x12e   :  { %v329_v19 = vadd.f32 1e-05, %v297_v50  ;;  %v330_v46 = vadd.f32 1e-05, %v298_v51  ;;  %v386_v18 = vmul.f32 %v3719_v40, %v4318_v36 }
 0x12f   :  { %v245_v41 = vpop.xlane.xlu1 %244  ;;  %v247_v25 = vpop.xlane.xlu0 %246 }
 0x130   :  { %3732 = vrsqrt.f32 %v329_v19  ;;  %v299_v43 = vmul.f32 0.0078125, %v245_v41  ;;  %v300_v63 = vmul.f32 0.0078125, %v247_v25  ;;  %v424_v16 = vmul.f32 %v4745_v20, %v386_v18 }
 0x131   :  { %v3721_v29 = vpop.eup %3720  ;;  %3734 = vrsqrt.f32 %v330_v46 }
 0x132   :  { %v3723_v15 = vpop.eup %3722  ;;  %v331_v62 = vadd.f32 1e-05, %v299_v43  ;;  %v332_v21 = vadd.f32 1e-05, %v300_v63  ;;  %v387_v55 = vmul.f32 %v3721_v29, %v4328_v44  ;;  %v462_v18 = vadd.f32 %v4752_v13, %v424_v16 }
 0x133   :  { %v249_v36 = vpop.xlane.xlu1 %248  ;;  %v251_v40 = vpop.xlane.xlu0 %250  ;;  %v388_v27 = vmul.f32 %v3723_v15, %v4321_v37 }
 0x134   :  { %3736 = vrsqrt.f32 %v331_v62  ;;  %v301_v50 = vmul.f32 0.0078125, %v249_v36  ;;  %v302_v51 = vmul.f32 0.0078125, %v251_v40  ;;  %v425_v19 = vmul.f32 %v4745_v20, %v387_v55 }
 0x135   :  { %v3725_v46 = vpop.eup %3724  ;;  %3738 = vrsqrt.f32 %v332_v21  ;;  %v426_v37 = vmul.f32 %v4745_v20, %v388_v27 }
 0x136   :  { %v3727_v41 = vpop.eup %3726  ;;  %v333_v25 = vadd.f32 1e-05, %v301_v50  ;;  %v334_v43 = vadd.f32 1e-05, %v302_v51  ;;  %v463_v63 = vadd.f32 %v4752_v13, %v425_v19  ;;  %v389_v44 = vmul.f32 %v3725_v46, %v4331_v45 }
 0x137   :  { %v253_v29 = vpop.xlane.xlu1 %252  ;;  %v255_v28 = vpop.xlane.xlu0 %254  ;;  %v390_v15 = vmul.f32 %v3727_v41, %v4338_v52  ;;  %v464_v52 = vadd.f32 %v4752_v13, %v426_v37 }
 0x138   :  { %3740 = vrsqrt.f32 %v333_v25  ;;  %v303_v62 = vmul.f32 0.0078125, %v253_v29  ;;  %v304_v55 = vmul.f32 0.0078125, %v255_v28  ;;  %v494_v36 = vpack.c.bf16 %v463_v63, %v462_v18 }
 0x139   :  { %v3729_v21 = vpop.eup %3728  ;;  %3742 = vrsqrt.f32 %v334_v43  ;;  %v427_v16 = vmul.f32 %v4745_v20, %v389_v44  ;;  %v428_v40 = vmul.f32 %v4745_v20, %v390_v15 }
 0x13a   :  { %v3731_v50 = vpop.eup %3730  ;;  %v335_v51 = vadd.f32 1e-05, %v303_v62  ;;  %v336_v19 = vadd.f32 1e-05, %v304_v55  ;;  %3498 = vmatprep.mubr.bf16.mxu0 %v494_v36  ;;  %v391_v45 = vmul.f32 %v3729_v21, %v4341_v53 }
 0x13b   :  { %v257_v46 = vpop.xlane.xlu1 %256  ;;  %v259_v27 = vpop.xlane.xlu0 %258  ;;  %v465_v41 = vadd.f32 %v4752_v13, %v427_v16  ;;  %v392_v28 = vmul.f32 %v3731_v50, %v4348_v60  ;;  %v466_v29 = vadd.f32 %v4752_v13, %v428_v40 }
 0x13c   :  { %3744 = vrsqrt.f32 %v335_v51  ;;  %v305_v18 = vmul.f32 0.0078125, %v257_v46  ;;  %v306_v25 = vmul.f32 0.0078125, %v259_v27  ;;  %v429_v43 = vmul.f32 %v4745_v20, %v391_v45 }
 0x13d   :  { %v3733_v63 = vpop.eup %3732  ;;  %3746 = vrsqrt.f32 %v336_v19  ;;  %v495_v44 = vpack.c.bf16 %v465_v41, %v464_v52  ;;  %v430_v21 = vmul.f32 %v4745_v20, %v392_v28 }
 0x13e   :  { %v3735_v15 = vpop.eup %3734  ;;  %v337_v53 = vadd.f32 1e-05, %v305_v18  ;;  %v338_v62 = vadd.f32 1e-05, %v306_v25  ;;  %v467_v55 = vadd.f32 %v4752_v13, %v429_v43  ;;  %v393_v37 = vmul.f32 %v3733_v63, %v4351_v61 }
 0x13f   :  { %3499 = vmatmul.mubr.bf16.vlgmr.msra.gmra.mxu0 %v495_v44  ;;  %v261_v36 = vpop.xlane.xlu1 %260  ;;  %v263_v60 = vpop.xlane.xlu0 %262  ;;  %v394_v16 = vmul.f32 %v3735_v15, %v4363_v5  ;;  %v468_v5 = vadd.f32 %v4752_v13, %v430_v21 }
 0x140   :  { %3748 = vrsqrt.f32 %v337_v53  ;;  %v307_v50 = vmul.f32 0.0078125, %v261_v36  ;;  %v308_v51 = vmul.f32 0.0078125, %v263_v60  ;;  %v496_v19 = vpack.c.bf16 %v467_v55, %v466_v29 }
 0x141   :  { %v3737_v45 = vpop.eup %3736  ;;  %3750 = vrsqrt.f32 %v338_v62  ;;  %v431_v40 = vmul.f32 %v4745_v20, %v393_v37  ;;  %v432_v46 = vmul.f32 %v4745_v20, %v394_v16 }
 0x142   :  { %v3739_v27 = vpop.eup %3738  ;;  %v339_v52 = vadd.f32 1e-05, %v307_v50  ;;  %v340_v61 = vadd.f32 1e-05, %v308_v51  ;;  %3502 = vmatprep.mubr.bf16.mxu0 %v496_v19  ;;  %v395_v41 = vmul.f32 %v3737_v45, %v4366_v6 }
 0x143   :  { %v265_v18 = vpop.xlane.xlu1 %264  ;;  %v267_v28 = vpop.xlane.xlu0 %266  ;;  %v469_v25 = vadd.f32 %v4752_v13, %v431_v40  ;;  %v396_v43 = vmul.f32 %v3739_v27, %v4382_v38  ;;  %v470_v62 = vadd.f32 %v4752_v13, %v432_v46 }
 0x144   :  { %3752 = vrsqrt.f32 %v339_v52  ;;  %v309_v63 = vmul.f32 0.0078125, %v265_v18  ;;  %v310_v44 = vmul.f32 0.0078125, %v267_v28  ;;  %v433_v29 = vmul.f32 %v4745_v20, %v395_v41 }
 0x145   :  { %v3741_v15 = vpop.eup %3740  ;;  %3754 = vrsqrt.f32 %v340_v61  ;;  %v497_v53 = vpack.c.bf16 %v469_v25, %v468_v5  ;;  %v434_v16 = vmul.f32 %v4745_v20, %v396_v43 }
 0x146   :  { %v3743_v55 = vpop.eup %3742  ;;  %v341_v6 = vadd.f32 1e-05, %v309_v63  ;;  %v342_v37 = vadd.f32 1e-05, %v310_v44  ;;  %v471_v36 = vadd.f32 %v4752_v13, %v433_v29  ;;  %v397_v60 = vmul.f32 %v3741_v15, %v4385_v39 }
 0x147   :  { %3503 = vmatmul.mubr.bf16.gmra.mxu0 %v497_v53  ;;  %v269_v21 = vpop.xlane.xlu1 %268  ;;  %v271_v38 = vpop.xlane.xlu0 %270  ;;  %v398_v50 = vmul.f32 %v3743_v55, %v4401_v47  ;;  %v472_v47 = vadd.f32 %v4752_v13, %v434_v16 }
 0x148   :  { %3756 = vrsqrt.f32 %v341_v6  ;;  %v311_v51 = vmul.f32 0.0078125, %v269_v21  ;;  %v312_v19 = vmul.f32 0.0078125, %v271_v38  ;;  %v498_v45 = vpack.c.bf16 %v471_v36, %v470_v62 }
 0x149   :  { %v3745_v40 = vpop.eup %3744  ;;  %3758 = vrsqrt.f32 %v342_v37  ;;  %v435_v46 = vmul.f32 %v4745_v20, %v397_v60  ;;  %v436_v27 = vmul.f32 %v4745_v20, %v398_v50 }
 0x14a   :  { %v3747_v52 = vpop.eup %3746  ;;  %v343_v61 = vadd.f32 1e-05, %v311_v51  ;;  %v344_v39 = vadd.f32 1e-05, %v312_v19  ;;  %3506 = vmatprep.mubr.bf16.mxu0 %v498_v45  ;;  %v399_v41 = vmul.f32 %v3745_v40, %v4404_v48 }
 0x14b   :  { %v273_v18 = vpop.xlane.xlu1 %272  ;;  %v275_v28 = vpop.xlane.xlu0 %274  ;;  %v473_v5 = vadd.f32 %v4752_v13, %v435_v46  ;;  %v400_v25 = vmul.f32 %v3747_v52, %v4420_v56  ;;  %v474_v53 = vadd.f32 %v4752_v13, %v436_v27 }
 0x14c   :  { %3760 = vrsqrt.f32 %v343_v61  ;;  %v313_v43 = vmul.f32 0.0078125, %v273_v18  ;;  %v314_v63 = vmul.f32 0.0078125, %v275_v28  ;;  %v437_v44 = vmul.f32 %v4745_v20, %v399_v41 }
 0x14d   :  { %v3749_v29 = vpop.eup %3748  ;;  %3762 = vrsqrt.f32 %v344_v39  ;;  %v499_v15 = vpack.c.bf16 %v473_v5, %v472_v47  ;;  %v438_v60 = vmul.f32 %v4745_v20, %v400_v25 }
 0x14e   :  { %v3751_v62 = vpop.eup %3750  ;;  %v345_v48 = vadd.f32 1e-05, %v313_v43  ;;  %v346_v55 = vadd.f32 1e-05, %v314_v63  ;;  %v475_v6 = vadd.f32 %v4752_v13, %v437_v44  ;;  %v401_v37 = vmul.f32 %v3749_v29, %v4423_v57 }
 0x14f   :  { %3507 = vmatmul.mubr.bf16.gmra.mxu0 %v499_v15  ;;  %v277_v36 = vpop.xlane.xlu1 %276  ;;  %v279_v56 = vpop.xlane.xlu0 %278  ;;  %v402_v21 = vmul.f32 %v3751_v62, %v4439_v1  ;;  %v476_v1 = vadd.f32 %v4752_v13, %v438_v60 }
 0x150   :  { %3764 = vrsqrt.f32 %v345_v48  ;;  %v315_v38 = vmul.f32 0.0078125, %v277_v36  ;;  %v316_v16 = vmul.f32 0.0078125, %v279_v56  ;;  %v500_v50 = vpack.c.bf16 %v475_v6, %v474_v53 }
 0x151   :  { %v3753_v51 = vpop.eup %3752  ;;  %3766 = vrsqrt.f32 %v346_v55  ;;  %v439_v19 = vmul.f32 %v4745_v20, %v401_v37  ;;  %v440_v45 = vmul.f32 %v4745_v20, %v402_v21 }
 0x152   :  { %v3755_v40 = vpop.eup %3754  ;;  %v347_v46 = vadd.f32 1e-05, %v315_v38  ;;  %v348_v57 = vadd.f32 1e-05, %v316_v16  ;;  %3510 = vmatprep.mubr.bf16.mxu0 %v500_v50  ;;  %v403_v27 = vmul.f32 %v3753_v51, %v4442_v2 }
 0x153   :  { %v281_v52 = vpop.xlane.xlu1 %280  ;;  %v283_v61 = vpop.xlane.xlu0 %282  ;;  %v477_v39 = vadd.f32 %v4752_v13, %v439_v19  ;;  %v404_v41 = vmul.f32 %v3755_v40, %v4458_v35  ;;  %v478_v43 = vadd.f32 %v4752_v13, %v440_v45 }
 0x154   :  { %3768 = vrsqrt.f32 %v347_v46  ;;  %v317_v18 = vmul.f32 0.0078125, %v281_v52  ;;  %v318_v28 = vmul.f32 0.0078125, %v283_v61  ;;  %v441_v47 = vmul.f32 %v4745_v20, %v403_v27 }
 0x155   :  { %v3757_v5 = vpop.eup %3756  ;;  %3770 = vrsqrt.f32 %v348_v57  ;;  %v501_v25 = vpack.c.bf16 %v477_v39, %v476_v1  ;;  %v442_v62 = vmul.f32 %v4745_v20, %v404_v41 }
 0x156   :  { %v3759_v63 = vpop.eup %3758  ;;  %v349_v2 = vadd.f32 1e-05, %v317_v18  ;;  %v350_v44 = vadd.f32 1e-05, %v318_v28  ;;  %v479_v29 = vadd.f32 %v4752_v13, %v441_v47  ;;  %v405_v15 = vmul.f32 %v3757_v5, %v4461_v9 }
 0x157   :  { %3511 = vmatmul.mubr.bf16.gmra.mxu0 %v501_v25  ;;  %v285_v53 = vpop.xlane.xlu1 %284  ;;  %v287_v35 = vpop.xlane.xlu0 %286  ;;  %v406_v48 = vmul.f32 %v3759_v63, %v4477_v11  ;;  %v480_v11 = vadd.f32 %v4752_v13, %v442_v62 }
 0x158   :  { %3772 = vrsqrt.f32 %v349_v2  ;;  %v319_v55 = vmul.f32 0.0078125, %v285_v53  ;;  %v320_v6 = vmul.f32 0.0078125, %v287_v35  ;;  %v502_v37 = vpack.c.bf16 %v479_v29, %v478_v43 }
 0x159   :  { %v3761_v36 = vpop.eup %3760  ;;  %3774 = vrsqrt.f32 %v350_v44  ;;  %v443_v56 = vmul.f32 %v4745_v20, %v405_v15  ;;  %v444_v60 = vmul.f32 %v4745_v20, %v406_v48 }
 0x15a   :  { %v3763_v21 = vpop.eup %3762  ;;  %v351_v38 = vadd.f32 1e-05, %v319_v55  ;;  %v352_v9 = vadd.f32 1e-05, %v320_v6  ;;  %3514 = vmatprep.mubr.bf16.mxu1 %v502_v37  ;;  %v407_v16 = vmul.f32 %v3761_v36, %v4480_v49 }
 0x15b   :  { %v289_v50 = vpop.xlane.xlu1 %288  ;;  %v1389_v51 = vpop.xlane.xlu0 %1388  ;;  %v481_v19 = vadd.f32 %v4752_v13, %v443_v56  ;;  %v408_v45 = vmul.f32 %v3763_v21, %v4496_v58  ;;  %v482_v61 = vadd.f32 %v4752_v13, %v444_v60 }
 0x15c   :  { %3776 = vrsqrt.f32 %v351_v38  ;;  %v321_v40 = vmul.f32 0.0078125, %v289_v50  ;;  %v1451_v46 = vmul.f32 0.0078125, %v1389_v51  ;;  %v445_v57 = vmul.f32 %v4745_v20, %v407_v16 }
 0x15d   :  { %v3765_v27 = vpop.eup %3764  ;;  %3778 = vrsqrt.f32 %v352_v9  ;;  %v503_v52 = vpack.c.bf16 %v481_v19, %v480_v11  ;;  %v446_v47 = vmul.f32 %v4745_v20, %v408_v45 }
 0x15e   :  { %v3767_v1 = vpop.eup %3766  ;;  %v353_v49 = vadd.f32 1e-05, %v321_v40  ;;  %v483_v39 = vadd.f32 %v4752_v13, %v445_v57  ;;  %v4820_v41 = vsub.f32 %v4553_v4, %v1451_v46  ;;  %v409_v18 = vmul.f32 %v3765_v27, %v4499_v59 }
 0x15f   :  { %3515 = vmatmul.mubr.bf16.vlgmr.msra.gmra.mxu1 %v503_v52  ;;  %v1387_v58 = vpop.xlane.xlu1 %1386  ;;  %v1391_v28 = vpop.xlane.xlu0 %1390  ;;  %v410_v5 = vmul.f32 %v3767_v1, %v4511_v23 }
 0x160   :  { %3780 = vrsqrt.f32 %v353_v49  ;;  %v1450_v25 = vmul.f32 0.0078125, %v1387_v58  ;;  %v504_v43 = vpack.c.bf16 %v483_v39, %v482_v61  ;;  %v1515_v63 = vmul.f32 %v4820_v41, %v4820_v41  ;;  %3531 = vmatpush3.bf16.msra.mxu1 %v4358_v3 }
 0x161   :  { %v3769_v2 = vpop.eup %3768  ;;  %v1452_v4 = vmul.f32 0.0078125, %v1391_v28  ;;  %v447_v44 = vmul.f32 %v4745_v20, %v409_v18  ;;  %3532 = vmatprep.subr.bf16.mxu1 %v4377_v8  ;;  %v448_v15 = vmul.f32 %v4745_v20, %v410_v5  ;;  %v484_v3 = vadd.f32 %v4752_v13, %v446_v47 }
 0x162   :  { %v3771_v59 = vpop.eup %3770  ;;  %3518 = vmatprep.mubr.bf16.mxu1 %v504_v43  ;;  %1548 = vadd.xlane.f32.xlu1 %v1515_v63  ;;  %v4831_v29 = vsub.f32 %v4559_v30, %v1450_v25  ;;  %v411_v23 = vmul.f32 %v3769_v2, %v4514_v7  ;;  %v7639_v43 = vld [vmem:[#allocation5_spill] sm:$0xff] }
 0x163   :  { %v1393_v53 = vpop.xlane.xlu1 %1392  ;;  %v4836_v35 = vsub.f32 %v4564_v31, %v1452_v4  ;;  %v485_v62 = vadd.f32 %v4752_v13, %v447_v44  ;;  %v1395_v48 = vpop.xlane.xlu0 %1394  ;;  %v412_v55 = vmul.f32 %v3771_v59, %v4521_v42  ;;  %v486_v42 = vadd.f32 %v4752_v13, %v448_v15  ;;  %v7640_v4 = vld [vmem:[#allocation6_spill] sm:$0xff] }
 0x164   :  { %v1453_v6 = vmul.f32 0.0078125, %v1393_v53  ;;  %v1514_v30 = vmul.f32 %v4831_v29, %v4831_v29  ;;  %v1454_v37 = vmul.f32 0.0078125, %v1395_v48  ;;  %v449_v7 = vmul.f32 %v4745_v20, %v411_v23  ;;  %3533 = vmatpush3.bf16.msra.mxu1 %v4377_v8  ;;  %v7641_v48 = vld [vmem:[#allocation2_spill] sm:$0xff] }
 0x165   :  { %v3773_v36 = vpop.eup %3772  ;;  %v505_v56 = vpack.c.bf16 %v485_v62, %v484_v3  ;;  %v450_v31 = vmul.f32 %v4745_v20, %v412_v55  ;;  %3534 = vmatprep.subr.bf16.mxu1 %v4396_v10  ;;  %v1516_v50 = vmul.f32 %v4836_v35, %v4836_v35  ;;  %v7642_v55 = vld [vmem:[#allocation7_spill] sm:$0xff] }
 0x166   :  { %v3775_v60 = vpop.eup %3774  ;;  %v4848_v21 = vsub.f32 %v4571_v22, %v1453_v6  ;;  %1546 = vadd.xlane.f32.xlu0 %v1514_v30  ;;  %v487_v38 = vadd.f32 %v4752_v13, %v449_v7  ;;  %v413_v9 = vmul.f32 %v3773_v36, %v4524_v24  ;;  %v4854_v8 = vsub.f32 %v4576_v32, %v1454_v37  ;;  %v7643_v37 = vld [vmem:[#allocation8_spill] sm:$0xff] }
 0x167   :  { %3519 = vmatmul.mubr.bf16.gmra.mxu1 %v505_v56  ;;  %v1397_v16 = vpop.xlane.xlu1 %1396  ;;  %v1399_v51 = vpop.xlane.xlu0 %1398  ;;  %v414_v11 = vmul.f32 %v3775_v60, %v4531_v54  ;;  %v488_v32 = vadd.f32 %v4752_v13, %v450_v31 }
 0x168   :  { %v1455_v22 = vmul.f32 0.0078125, %v1397_v16  ;;  %v506_v19 = vpack.c.bf16 %v487_v38, %v486_v42  ;;  %v1517_v45 = vmul.f32 %v4848_v21, %v4848_v21  ;;  %v1456_v40 = vmul.f32 0.0078125, %v1399_v51  ;;  %3535 = vmatpush3.bf16.msra.mxu1 %v4396_v10  ;;  %v7644_v16 = vld [vmem:[#allocation3_spill] sm:$0xff] }
 0x169   :  { %v3777_v24 = vpop.eup %3776  ;;  %v451_v46 = vmul.f32 %v4745_v20, %v413_v9  ;;  %3536 = vmatprep.subr.bf16.mxu1 %v4415_v12  ;;  %v452_v52 = vmul.f32 %v4745_v20, %v414_v11  ;;  %v1518_v49 = vmul.f32 %v4854_v8, %v4854_v8 }
 0x16a   :  { %v3779_v57 = vpop.eup %3778  ;;  %v4866_v27 = vsub.f32 %v4583_v33, %v1455_v22  ;;  %3522 = vmatprep.mubr.bf16.mxu1 %v506_v19  ;;  %1552 = vadd.xlane.f32.xlu1 %v1517_v45  ;;  %v415_v54 = vmul.f32 %v3777_v24, %v4534_v26  ;;  %v4871_v10 = vsub.f32 %v4588_v34, %v1456_v40  ;;  %v7646_v22 = vld [vmem:[#allocation10_spill] sm:$0xff] }
 0x16b   :  { %1550 = vadd.xlane.f32.xlu0 %v1516_v50  ;;  %v1401_v61 = vpop.xlane.xlu1 %1400  ;;  %v489_v1 = vadd.f32 %v4752_v13, %v451_v46  ;;  %v1403_v39 = vpop.xlane.xlu0 %1402  ;;  %v416_v33 = vmul.f32 %v3779_v57, %v4541_v0  ;;  %v490_v25 = vadd.f32 %v4752_v13, %v452_v52  ;;  %v7645_v50 = vld [vmem:[#allocation9_spill] sm:$0xff]  ;;  %v7647_v57 = vld [vmem:[#allocation4_spill] sm:$0xff] }
 0x16c   :  { %v1457_v18 = vmul.f32 0.0078125, %v1401_v61  ;;  %v1519_v58 = vmul.f32 %v4866_v27, %v4866_v27  ;;  %v1458_v26 = vmul.f32 0.0078125, %v1403_v39  ;;  %v453_v28 = vmul.f32 %v4745_v20, %v415_v54  ;;  %3537 = vmatpush3.bf16.msra.mxu1 %v4415_v12  ;;  %v7648_v54 = vld [vmem:[#allocation11_spill] sm:$0xff] }
 0x16d   :  { %v3781_v47 = vpop.eup %3780  ;;  %v507_v34 = vpack.c.bf16 %v489_v1, %v488_v32  ;;  %3538 = vmatprep.subr.bf16.mxu1 %v4434_v14  ;;  %v1520_v12 = vmul.f32 %v4871_v10, %v4871_v10  ;;  %v7649_v1 = vld [vmem:[#allocation12_spill] sm:$0xff] }
 0x16e   :  { %v4883_v5 = vsub.f32 %v4595_v17, %v1457_v18  ;;  %1556 = vadd.xlane.f32.xlu1 %v1519_v58  ;;  %v491_v0 = vadd.f32 %v4752_v13, %v453_v28  ;;  %v417_v63 = vmul.f32 %v3781_v47, %v7639_v43  ;;  %v4889_v44 = vsub.f32 %v7640_v4, %v1458_v26  ;;  %v7650_v28 = vld [vmem:[#allocation13_spill] sm:$0xff] }
 0x16f   :  { %3523 = vmatmul.mubr.bf16.gmra.mxu1 %v507_v34  ;;  %1554 = vadd.xlane.f32.xlu0 %v1518_v49  ;;  %v1405_v2 = vpop.xlane.xlu1 %1404  ;;  %v1407_v59 = vpop.xlane.xlu0 %1406  ;;  %v454_v17 = vmul.f32 %v4745_v20, %v416_v33 }
 0x170   :  { %v1459_v23 = vmul.f32 0.0078125, %v1405_v2  ;;  %v508_v15 = vpack.c.bf16 %v491_v0, %v490_v25  ;;  %v1521_v53 = vmul.f32 %v4883_v5, %v4883_v5  ;;  %v1460_v3 = vmul.f32 0.0078125, %v1407_v59  ;;  %3539 = vmatpush3.bf16.msra.mxu1 %v4434_v14  ;;  %v7651_v25 = vld [vmem:[#allocation14_spill] sm:$0xff]  ;;  %v7652_v59 = vld [vmem:[#allocation15_spill] sm:$0xff] }
 0x171   :  { %v455_v62 = vmul.f32 %v4745_v20, %v417_v63  ;;  %3540 = vmatprep.subr.bf16.mxu1 %v7641_v48  ;;  %v492_v36 = vadd.f32 %v4752_v13, %v454_v17  ;;  %v1522_v14 = vmul.f32 %v4889_v44, %v4889_v44 }
 0x172   :  { %v4900_v6 = vsub.f32 %v7642_v55, %v1459_v23  ;;  %3526 = vmatprep.mubr.bf16.mxu1 %v508_v15  ;;  %1560 = vadd.xlane.f32.xlu1 %v1521_v53  ;;  %v4903_v7 = vsub.f32 %v7643_v37, %v1460_v3  ;;  %v7653_v15 = vld [vmem:[#allocation16_spill] sm:$0xff]  ;;  %v7654_v37 = vld [vmem:[#allocation17_spill] sm:$0xff] }
 0x173   :  { %1558 = vadd.xlane.f32.xlu0 %v1520_v12  ;;  %v1409_v30 = vpop.xlane.xlu1 %1408  ;;  %v493_v56 = vadd.f32 %v4752_v13, %v455_v62  ;;  %v1411_v31 = vpop.xlane.xlu0 %1410 }
 0x174   :  { %v1461_v60 = vmul.f32 0.0078125, %v1409_v30  ;;  %v1523_v42 = vmul.f32 %v4900_v6, %v4900_v6  ;;  %v1462_v38 = vmul.f32 0.0078125, %v1411_v31  ;;  %3541 = vmatpush3.bf16.msra.mxu1 %v7641_v48  ;;  %v1524_v45 = vmul.f32 %v4903_v7, %v4903_v7 }
 0x175   :  { %v509_v9 = vpack.c.bf16 %v493_v56, %v492_v36  ;;  %3542 = vmatprep.subr.bf16.mxu1 %v7644_v16 }
 0x176   :  { %v4914_v51 = vsub.f32 %v7645_v50, %v1461_v60  ;;  %1564 = vadd.xlane.f32.xlu1 %v1523_v42  ;;  %v4917_v19 = vsub.f32 %v7646_v22, %v1462_v38  ;;  %v7656_v50 = vld [vmem:[#allocation19_spill] sm:$0xff] }
 0x177   :  { %3527 = vmatmul.mubr.bf16.gmra.mxu1 %v509_v9  ;;  %1562 = vadd.xlane.f32.xlu0 %v1522_v14  ;;  %v1413_v11 = vpop.xlane.xlu1 %1412  ;;  %v1415_v40 = vpop.xlane.xlu0 %1414  ;;  %v7655_v14 = vld [vmem:[#allocation18_spill] sm:$0xff] }
 0x178   :  { %v1463_v24 = vmul.f32 0.0078125, %v1413_v11  ;;  %v1525_v46 = vmul.f32 %v4914_v51, %v4914_v51  ;;  %v1464_v32 = vmul.f32 0.0078125, %v1415_v40  ;;  %3543 = vmatpush3.bf16.msra.mxu1 %v7644_v16  ;;  %v1526_v39 = vmul.f32 %v4917_v19, %v4917_v19 }
 0x179   :  { %3544 = vmatprep.subr.bf16.mxu1 %v7647_v57 }
 0x17a   :  { %v4926_v52 = vsub.f32 %v7648_v54, %v1463_v24  ;;  %1568 = vadd.xlane.f32.xlu1 %v1525_v46  ;;  %v4929_v49 = vsub.f32 %v7649_v1, %v1464_v32 }
 0x17b   :  { %1566 = vadd.xlane.f32.xlu0 %v1524_v45  ;;  %v1417_v61 = vpop.xlane.xlu1 %1416  ;;  %v1419_v33 = vpop.xlane.xlu0 %1418  ;;  %v7657_v45 = vld [vmem:[#allocation20_spill] sm:$0xff] }
 0x17c   :  { %v1465_v18 = vmul.f32 0.0078125, %v1417_v61  ;;  %v1527_v58 = vmul.f32 %v4926_v52, %v4926_v52  ;;  %v1466_v26 = vmul.f32 0.0078125, %v1419_v33  ;;  %3545 = vmatpush3.bf16.msra.mxu1 %v7647_v57  ;;  %v1528_v43 = vmul.f32 %v4929_v49, %v4929_v49  ;;  %v7658_v61 = vld [vmem:[#allocation21_spill] sm:$0xff]  ;;  %v7659_v33 = vld [vmem:[#allocation22_spill] sm:$0xff] }
 0x17e   :  { %v4937_v47 = vsub.f32 %v7650_v28, %v1465_v18  ;;  %1572 = vadd.xlane.f32.xlu1 %v1527_v58  ;;  %v4940_v0 = vsub.f32 %v7651_v25, %v1466_v26 }
 0x17f   :  { %1570 = vadd.xlane.f32.xlu0 %v1526_v39  ;;  %v1421_v34 = vpop.xlane.xlu1 %1420  ;;  %v1423_v63 = vpop.xlane.xlu0 %1422 }
 0x180   :  { %v1467_v2 = vmul.f32 0.0078125, %v1421_v34  ;;  %v1529_v4 = vmul.f32 %v4937_v47, %v4937_v47  ;;  %v1468_v12 = vmul.f32 0.0078125, %v1423_v63  ;;  %v1530_v3 = vmul.f32 %v4940_v0, %v4940_v0 }
 0x182   :  { %v4947_v17 = vsub.f32 %v7652_v59, %v1467_v2  ;;  %1576 = vadd.xlane.f32.xlu1 %v1529_v4  ;;  %v4950_v53 = vsub.f32 %v7653_v15, %v1468_v12  ;;  %v7661_v4 = vld [vmem:[#allocation24_spill] sm:$0xff]  ;;  %v7501_v15 = vmov 0  }
 0x183   :  { %1574 = vadd.xlane.f32.xlu0 %v1528_v43  ;;  %v1425_v23 = vpop.xlane.xlu1 %1424  ;;  %v1427_v62 = vpop.xlane.xlu0 %1426  ;;  %v7660_v43 = vld [vmem:[#allocation23_spill] sm:$0xff]  ;;  %3646 = vset.pattern.permute.xlu1 %v7501_v15 }
 0x184   :  { %v1469_v48 = vmul.f32 0.0078125, %v1425_v23  ;;  %v1531_v55 = vmul.f32 %v4947_v17, %v4947_v17  ;;  %v1470_v30 = vmul.f32 0.0078125, %v1427_v62  ;;  %v1532_v60 = vmul.f32 %v4950_v53, %v4950_v53 }
 0x186   :  { %v4957_v36 = vsub.f32 %v7654_v37, %v1469_v48  ;;  %1580 = vadd.xlane.f32.xlu1 %v1531_v55  ;;  %v4960_v31 = vsub.f32 %v7655_v14, %v1470_v30  ;;  %v7662_v55 = vld [vmem:[#allocation25_spill] sm:$0xff] }
 0x187   :  { %1578 = vadd.xlane.f32.xlu0 %v1530_v3  ;;  %v1429_v56 = vpop.xlane.xlu1 %1428  ;;  %v1431_v42 = vpop.xlane.xlu0 %1430 }
 0x188   :  { %v1471_v38 = vmul.f32 0.0078125, %v1429_v56  ;;  %v1533_v9 = vmul.f32 %v4957_v36, %v4957_v36  ;;  %v1472_v16 = vmul.f32 0.0078125, %v1431_v42  ;;  %v1534_v24 = vmul.f32 %v4960_v31, %v4960_v31  ;;  %v7663_v56 = vld [vmem:[#allocation26_spill] sm:$0xff] }
 0x18a   :  { %v4967_v11 = vsub.f32 %v7656_v50, %v1471_v38  ;;  %1584 = vadd.xlane.f32.xlu1 %v1533_v9  ;;  %v4970_v40 = vsub.f32 %v7657_v45, %v1472_v16  ;;  %v7664_v50 = vld [vmem:[#allocation27_spill] sm:$0xff] }
 0x18b   :  { %1582 = vadd.xlane.f32.xlu0 %v1532_v60  ;;  %v1433_v22 = vpop.xlane.xlu1 %1432  ;;  %v1435_v46 = vpop.xlane.xlu0 %1434 }
 0x18c   :  { %v1473_v32 = vmul.f32 0.0078125, %v1433_v22  ;;  %v1535_v57 = vmul.f32 %v4967_v11, %v4967_v11  ;;  %v1474_v54 = vmul.f32 0.0078125, %v1435_v46  ;;  %v1536_v58 = vmul.f32 %v4970_v40, %v4970_v40 }
 0x18e   :  { %v4977_v1 = vsub.f32 %v7658_v61, %v1473_v32  ;;  %1588 = vadd.xlane.f32.xlu1 %v1535_v57  ;;  %v4980_v18 = vsub.f32 %v7659_v33, %v1474_v54  ;;  %v7666_v61 = vld [vmem:[#allocation29_spill] sm:$0xff] }
 0x18f   :  { %1586 = vadd.xlane.f32.xlu0 %v1534_v24  ;;  %v1437_v39 = vpop.xlane.xlu1 %1436  ;;  %v1439_v26 = vpop.xlane.xlu0 %1438  ;;  %v7665_v24 = vld [vmem:[#allocation28_spill] sm:$0xff] }
 0x190   :  { %v1475_v28 = vmul.f32 0.0078125, %v1437_v39  ;;  %v1537_v34 = vmul.f32 %v4977_v1, %v4977_v1  ;;  %v1476_v25 = vmul.f32 0.0078125, %v1439_v26  ;;  %v1538_v59 = vmul.f32 %v4980_v18, %v4980_v18 }
 0x191   :  { %v7499_v26 = vmov 1  }
 0x192   :  { %v4987_v63 = vsub.f32 %v7660_v43, %v1475_v28  ;;  %1592 = vadd.xlane.f32.xlu1 %v1537_v34  ;;  %v4990_v12 = vsub.f32 %v7661_v4, %v1476_v25  ;;  %3648 = vset.pattern.permute.xlu0 %v7499_v26 }
 0x193   :  { %1590 = vadd.xlane.f32.xlu0 %v1536_v58  ;;  %v1441_v2 = vpop.xlane.xlu1 %1440  ;;  %v1443_v23 = vpop.xlane.xlu0 %1442 }
 0x194   :  { %v1477_v3 = vmul.f32 0.0078125, %v1441_v2  ;;  %v1539_v62 = vmul.f32 %v4987_v63, %v4987_v63  ;;  %v1478_v48 = vmul.f32 0.0078125, %v1443_v23  ;;  %v1540_v60 = vmul.f32 %v4990_v12, %v4990_v12 }
 0x196   :  { %v4998_v30 = vsub.f32 %v7662_v55, %v1477_v3  ;;  %1596 = vadd.xlane.f32.xlu1 %v1539_v62  ;;  %v5001_v14 = vsub.f32 %v7663_v56, %v1478_v48 }
 0x197   :  { %1594 = vadd.xlane.f32.xlu0 %v1538_v59  ;;  %v1445_v37 = vpop.xlane.xlu1 %1444  ;;  %v1447_v42 = vpop.xlane.xlu0 %1446 }
 0x198   :  { %v1479_v38 = vmul.f32 0.0078125, %v1445_v37  ;;  %v1541_v9 = vmul.f32 %v4998_v30, %v4998_v30  ;;  %v1480_v16 = vmul.f32 0.0078125, %v1447_v42  ;;  %v1542_v32 = vmul.f32 %v5001_v14, %v5001_v14 }
 0x19a   :  { %v5008_v22 = vsub.f32 %v7664_v50, %v1479_v38  ;;  %1600 = vadd.xlane.f32.xlu1 %v1541_v9  ;;  %v5011_v46 = vsub.f32 %v7665_v24, %v1480_v16 }
 0x19b   :  { %1598 = vadd.xlane.f32.xlu0 %v1540_v60  ;;  %v1449_v45 = vpop.xlane.xlu1 %1448 }
 0x19c   :  { %v1481_v57 = vmul.f32 0.0078125, %v1449_v45  ;;  %v1543_v54 = vmul.f32 %v5008_v22, %v5008_v22  ;;  %v1544_v33 = vmul.f32 %v5011_v46, %v5011_v46 }
 0x19e   :  { %v5018_v39 = vsub.f32 %v7666_v61, %v1481_v57  ;;  %1604 = vadd.xlane.f32.xlu1 %v1543_v54 }
 0x19f   :  { %1602 = vadd.xlane.f32.xlu0 %v1542_v32 }
 0x1a0   :  { %v1545_v58 = vmul.f32 %v5018_v39, %v5018_v39 }
 0x1a2   :  { %1608 = vadd.xlane.f32.xlu1 %v1545_v58 }
 0x1a3   :  { %1606 = vadd.xlane.f32.xlu0 %v1544_v33 }
 0x1eb   :  { %v1549_v28 = vpop.xlane.xlu1 %1548 }
 0x1ec   :  { %v1611_v34 = vmul.f32 0.0078125, %v1549_v28 }
 0x1ee   :  { %v1643_v25 = vadd.f32 1e-05, %v1611_v34 }
 0x1ef   :  { %v1547_v43 = vpop.xlane.xlu0 %1546 }
 0x1f0   :  { %3782 = vrsqrt.f32 %v1643_v25  ;;  %v1610_v2 = vmul.f32 0.0078125, %v1547_v43 }
 0x1f2   :  { %v1642_v4 = vadd.f32 1e-05, %v1610_v2 }
 0x1f3   :  { %v1553_v59 = vpop.xlane.xlu1 %1552 }
 0x1f4   :  { %3784 = vrsqrt.f32 %v1642_v4  ;;  %v1613_v23 = vmul.f32 0.0078125, %v1553_v59  ;;  %v1551_v3 = vpop.xlane.xlu0 %1550 }
 0x1f5   :  { %v1612_v62 = vmul.f32 0.0078125, %v1551_v3 }
 0x1f6   :  { %v1645_v48 = vadd.f32 1e-05, %v1613_v23 }
 0x1f7   :  { %v1644_v55 = vadd.f32 1e-05, %v1612_v62  ;;  %v1557_v37 = vpop.xlane.xlu1 %1556 }
 0x1f8   :  { %3786 = vrsqrt.f32 %v1645_v48  ;;  %v1615_v56 = vmul.f32 0.0078125, %v1557_v37  ;;  %v1555_v60 = vpop.xlane.xlu0 %1554 }
 0x1f9   :  { %3788 = vrsqrt.f32 %v1644_v55  ;;  %v1614_v42 = vmul.f32 0.0078125, %v1555_v60 }
 0x1fa   :  { %v1647_v38 = vadd.f32 1e-05, %v1615_v56 }
 0x1fb   :  { %v1646_v9 = vadd.f32 1e-05, %v1614_v42  ;;  %v1561_v16 = vpop.xlane.xlu1 %1560 }
 0x1fc   :  { %3790 = vrsqrt.f32 %v1647_v38  ;;  %v1617_v50 = vmul.f32 0.0078125, %v1561_v16  ;;  %v1559_v45 = vpop.xlane.xlu0 %1558 }
 0x1fd   :  { %v3783_v24 = vpop.eup %3782  ;;  %3792 = vrsqrt.f32 %v1646_v9  ;;  %v1616_v32 = vmul.f32 0.0078125, %v1559_v45 }
 0x1fe   :  { %v1649_v57 = vadd.f32 1e-05, %v1617_v50  ;;  %v1707_v54 = vmul.f32 %v3783_v24, %v4820_v41 }
 0x1ff   :  { %v1648_v61 = vadd.f32 1e-05, %v1616_v32  ;;  %v3500_v33 = vpop.f32.mrf.mxu0  ;;  %v1565_v58 = vpop.xlane.xlu1 %1564 }
 0x200   :  { %3794 = vrsqrt.f32 %v1649_v57  ;;  %v1619_v28 = vmul.f32 0.0078125, %v1565_v58  ;;  %v1563_v34 = vpop.xlane.xlu0 %1562  ;;  %v1739_v59 = vmul.f32 %v4745_v20, %v1707_v54 }
 0x201   :  { %v3785_v25 = vpop.eup %3784  ;;  %3796 = vrsqrt.f32 %v1648_v61  ;;  %v1618_v43 = vmul.f32 0.0078125, %v1563_v34 }
 0x202   :  { %3798 = vtanh.f32 %v3500_v33  ;;  %v1651_v2 = vadd.f32 1e-05, %v1619_v28  ;;  %v1706_v4 = vmul.f32 %v3785_v25, %v4831_v29  ;;  %v1771_v29 = vadd.f32 %v4752_v13, %v1739_v59 }
 0x203   :  { %v1650_v23 = vadd.f32 1e-05, %v1618_v43  ;;  %v1569_v3 = vpop.xlane.xlu1 %1568 }
 0x204   :  { %3800 = vrsqrt.f32 %v1651_v2  ;;  %v1621_v62 = vmul.f32 0.0078125, %v1569_v3  ;;  %v1567_v41 = vpop.xlane.xlu0 %1566  ;;  %v1738_v48 = vmul.f32 %v4745_v20, %v1706_v4 }
 0x205   :  { %v3787_v55 = vpop.eup %3786  ;;  %3802 = vrsqrt.f32 %v1650_v23  ;;  %v1620_v37 = vmul.f32 0.0078125, %v1567_v41 }
 0x206   :  { %v3789_v56 = vpop.eup %3788  ;;  %v1709_v60 = vmul.f32 %v3787_v55, %v4848_v21  ;;  %v1653_v42 = vadd.f32 1e-05, %v1621_v62  ;;  %v1770_v38 = vadd.f32 %v4752_v13, %v1738_v48  ;;  %v5054_v55 = vld [vmem:[%s7460_s2] ss:$0 sm:$0xff] }
 0x207   :  { %v1708_v9 = vmul.f32 %v3789_v56, %v4836_v35  ;;  %v1652_v16 = vadd.f32 1e-05, %v1620_v37  ;;  %v1573_v50 = vpop.xlane.xlu1 %1572 }
 0x208   :  { %3804 = vrsqrt.f32 %v1653_v42  ;;  %v1623_v45 = vmul.f32 0.0078125, %v1573_v50  ;;  %v1571_v24 = vpop.xlane.xlu0 %1570  ;;  %v1802_v32 = vpack.c.bf16 %v1771_v29, %v1770_v38  ;;  %v1741_v57 = vmul.f32 %v4745_v20, %v1709_v60  ;;  %v5061_v29 = vld [vmem:[%s7462_s6] ss:$0 sm:$0xff] }
 0x209   :  { %v3791_v54 = vpop.eup %3790  ;;  %3806 = vrsqrt.f32 %v1652_v16  ;;  %v1622_v61 = vmul.f32 0.0078125, %v1571_v24  ;;  %v1740_v21 = vmul.f32 %v4745_v20, %v1708_v9  ;;  %v5042_v20 = vld [vmem:[%s7459_s1] ss:$0 sm:$0xff] }
 0x20a   :  { %v3793_v33 = vpop.eup %3792  ;;  %v1655_v58 = vadd.f32 1e-05, %v1623_v45  ;;  %3546 = vmatprep.mubr.bf16.mxu1 %v1802_v32  ;;  %v1773_v28 = vadd.f32 %v4752_v13, %v1741_v57  ;;  %v1711_v35 = vmul.f32 %v3791_v54, %v4866_v27 }
 0x20b   :  { %v1654_v34 = vadd.f32 1e-05, %v1622_v61  ;;  %v1577_v25 = vpop.xlane.xlu1 %1576  ;;  %v1772_v43 = vadd.f32 %v4752_v13, %v1740_v21  ;;  %v1710_v2 = vmul.f32 %v3793_v33, %v4854_v8  ;;  %v5048_v13 = vld [vmem:[%s7461_s7] ss:$0 sm:$0xff] }
 0x20c   :  { %3808 = vrsqrt.f32 %v1655_v58  ;;  %v1625_v4 = vmul.f32 0.0078125, %v1577_v25  ;;  %v1575_v59 = vpop.xlane.xlu0 %1574  ;;  %v1743_v23 = vmul.f32 %v5042_v20, %v1711_v35 }
 0x20d   :  { %v3795_v3 = vpop.eup %3794  ;;  %3810 = vrsqrt.f32 %v1654_v34  ;;  %v1624_v62 = vmul.f32 0.0078125, %v1575_v59  ;;  %v1803_v27 = vpack.c.bf16 %v1773_v28, %v1772_v43  ;;  %v1742_v8 = vmul.f32 %v5042_v20, %v1710_v2 }
 0x20e   :  { %v3797_v41 = vpop.eup %3796  ;;  %v1657_v48 = vadd.f32 1e-05, %v1625_v4  ;;  %v1775_v37 = vadd.f32 %v5054_v55, %v1743_v23  ;;  %v1713_v56 = vmul.f32 %v3795_v3, %v4883_v5 }
 0x20f   :  { %v3799_v60 = vpop.eup %3798  ;;  %v1656_v42 = vadd.f32 1e-05, %v1624_v62  ;;  %3547 = vmatmul.mubr.bf16.vlgmr.msra.gmra.mxu1 %v1803_v27  ;;  %v1581_v38 = vpop.xlane.xlu1 %1580  ;;  %v1774_v9 = vadd.f32 %v5054_v55, %v1742_v8  ;;  %v1712_v16 = vmul.f32 %v3797_v41, %v4871_v10 }
 0x210   :  { %3812 = vrsqrt.f32 %v1657_v48  ;;  %v1627_v50 = vmul.f32 0.0078125, %v1581_v38  ;;  %v1579_v45 = vpop.xlane.xlu0 %1578  ;;  %v775_v24 = vmul.f32 %v3799_v60, %v5048_v13  ;;  %v1745_v5 = vmul.f32 %v5042_v20, %v1713_v56 }
 0x211   :  { %v3801_v32 = vpop.eup %3800  ;;  %3814 = vrsqrt.f32 %v1656_v42  ;;  %v1626_v57 = vmul.f32 0.0078125, %v1579_v45  ;;  %v1804_v54 = vpack.c.bf16 %v1775_v37, %v1774_v9  ;;  %v1744_v61 = vmul.f32 %v5042_v20, %v1712_v16 }
 0x212   :  { %v3803_v21 = vpop.eup %3802  ;;  %v1659_v33 = vadd.f32 1e-05, %v1627_v50  ;;  %v5069_v58 = vadd.f32 %v5061_v29, %v775_v24  ;;  %v1777_v10 = vadd.f32 %v5054_v55, %v1745_v5  ;;  %v1715_v4 = vmul.f32 %v3801_v32, %v4900_v6 }
 0x213   :  { %v1658_v28 = vadd.f32 1e-05, %v1626_v57  ;;  %3550 = vmatprep.mubr.bf16.mxu1 %v1804_v54  ;;  %v1585_v35 = vpop.xlane.xlu1 %1584  ;;  %v1776_v34 = vadd.f32 %v5054_v55, %v1744_v61  ;;  %v1714_v25 = vmul.f32 %v3803_v21, %v4889_v44 }
 0x214   :  { %7667 = vst [vmem:[#allocation5_spill] sm:$0xff] %v5069_v58  ;;  %3816 = vrsqrt.f32 %v1659_v33  ;;  %854 = vperm.xlu1 %3646, %v5069_v58   ;;  %v1629_v43 = vmul.f32 0.0078125, %v1585_v35  ;;  %v1583_v2 = vpop.xlane.xlu0 %1582  ;;  %v1747_v41 = vmul.f32 %v5042_v20, %v1715_v4 }
 0x215   :  { %v3805_v59 = vpop.eup %3804  ;;  %3818 = vrsqrt.f32 %v1658_v28  ;;  %v1628_v23 = vmul.f32 0.0078125, %v1583_v2  ;;  %v1805_v3 = vpack.c.bf16 %v1777_v10, %v1776_v34  ;;  %v1746_v62 = vmul.f32 %v5042_v20, %v1714_v25 }
 0x216   :  { %v3807_v27 = vpop.eup %3806  ;;  %v1661_v8 = vadd.f32 1e-05, %v1629_v43  ;;  %v1717_v48 = vmul.f32 %v3805_v59, %v4914_v51  ;;  %v1779_v38 = vadd.f32 %v5054_v55, %v1747_v41 }
 0x217   :  { %v1660_v44 = vadd.f32 1e-05, %v1628_v23  ;;  %3551 = vmatmul.mubr.bf16.gmra.mxu1 %v1805_v3  ;;  %v1589_v37 = vpop.xlane.xlu1 %1588  ;;  %v1778_v56 = vadd.f32 %v5054_v55, %v1746_v62  ;;  %v1716_v60 = vmul.f32 %v3807_v27, %v4903_v7  ;;  %v608_v27 = vpop.f32.mrf.mxu0 }
 0x218   :  { %3820 = vrsqrt.f32 %v1661_v8  ;;  %v1631_v6 = vmul.f32 0.0078125, %v1589_v37  ;;  %v1587_v42 = vpop.xlane.xlu0 %1586  ;;  %v1749_v9 = vmul.f32 %v5042_v20, %v1717_v48 }
 0x219   :  { %v3809_v16 = vpop.eup %3808  ;;  %3822 = vrsqrt.f32 %v1660_v44  ;;  %v1630_v50 = vmul.f32 0.0078125, %v1587_v42  ;;  %v1748_v45 = vmul.f32 %v5042_v20, %v1716_v60  ;;  %v1806_v5 = vpack.c.bf16 %v1779_v38, %v1778_v56 }
 0x21a   :  { %v3811_v51 = vpop.eup %3810  ;;  %v1663_v24 = vadd.f32 1e-05, %v1631_v6  ;;  %v1781_v32 = vadd.f32 %v5054_v55, %v1749_v9  ;;  %v1719_v10 = vmul.f32 %v3809_v16, %v4926_v52 }
 0x21b   :  { %v1662_v57 = vadd.f32 1e-05, %v1630_v50  ;;  %v1593_v54 = vpop.xlane.xlu1 %1592  ;;  %v1780_v7 = vadd.f32 %v5054_v55, %v1748_v45  ;;  %v1718_v61 = vmul.f32 %v3811_v51, %v4917_v19  ;;  %3554 = vmatprep.mubr.bf16.mxu1 %v1806_v5 }
 0x21c   :  { %3824 = vrsqrt.f32 %v1663_v24  ;;  %v1633_v21 = vmul.f32 0.0078125, %v1593_v54  ;;  %v1591_v33 = vpop.xlane.xlu0 %1590  ;;  %v1751_v4 = vmul.f32 %v5042_v20, %v1719_v10 }
 0x21d   :  { %v3813_v28 = vpop.eup %3812  ;;  %3826 = vrsqrt.f32 %v1662_v57  ;;  %v1632_v35 = vmul.f32 0.0078125, %v1591_v33  ;;  %v1807_v34 = vpack.c.bf16 %v1781_v32, %v1780_v7  ;;  %v1750_v25 = vmul.f32 %v5042_v20, %v1718_v61 }
 0x21e   :  { %v3815_v43 = vpop.eup %3814  ;;  %v1665_v2 = vadd.f32 1e-05, %v1633_v21  ;;  %v1721_v59 = vmul.f32 %v3813_v28, %v4937_v47  ;;  %v1783_v48 = vadd.f32 %v5054_v55, %v1751_v4 }
 0x21f   :  { %v1664_v23 = vadd.f32 1e-05, %v1632_v35  ;;  %v3516_v19 = vpop.f32.mrf.mxu1  ;;  %3555 = vmatmul.mubr.bf16.gmra.mxu1 %v1807_v34  ;;  %v1597_v3 = vpop.xlane.xlu1 %1596  ;;  %v1782_v62 = vadd.f32 %v5054_v55, %v1750_v25  ;;  %v1720_v52 = vmul.f32 %v3815_v43, %v4929_v49 }
 0x220   :  { %3828 = vrsqrt.f32 %v1665_v2  ;;  %v1635_v8 = vmul.f32 0.0078125, %v1597_v3  ;;  %v1595_v41 = vpop.xlane.xlu0 %1594  ;;  %v1753_v44 = vmul.f32 %v5042_v20, %v1721_v59 }
 0x221   :  { %v3817_v37 = vpop.eup %3816  ;;  %3830 = vrsqrt.f32 %v1664_v23  ;;  %v1634_v56 = vmul.f32 0.0078125, %v1595_v41  ;;  %v1752_v47 = vmul.f32 %v5042_v20, %v1720_v52  ;;  %v1808_v42 = vpack.c.bf16 %v1783_v48, %v1782_v62  ;;  %v672_v45 = vpop.f32.mrf.mxu1 }
 0x222   :  { %v3819_v60 = vpop.eup %3818  ;;  %3832 = vtanh.f32 %v3516_v19  ;;  %v1667_v6 = vadd.f32 1e-05, %v1635_v8  ;;  %v1785_v38 = vadd.f32 %v5054_v55, %v1753_v44  ;;  %v1723_v5 = vmul.f32 %v3817_v37, %v4947_v17 }
 0x223   :  { %3834 = vtanh.f32 %v608_v27  ;;  %v1666_v49 = vadd.f32 1e-05, %v1634_v56  ;;  %v1601_v9 = vpop.xlane.xlu1 %1600  ;;  %v1784_v16 = vadd.f32 %v5054_v55, %v1752_v47  ;;  %v1722_v50 = vmul.f32 %v3819_v60, %v4940_v0  ;;  %3558 = vmatprep.mubr.bf16.mxu1 %v1808_v42  ;;  %v3517_v34 = vpop.f32.mrf.mxu1 }
 0x224   :  { %3836 = vrsqrt.f32 %v1667_v6  ;;  %v1637_v51 = vmul.f32 0.0078125, %v1601_v9  ;;  %v1599_v24 = vpop.xlane.xlu0 %1598  ;;  %v1755_v33 = vmul.f32 %v5042_v20, %v1723_v5 }
 0x225   :  { %v3821_v32 = vpop.eup %3820  ;;  %3838 = vrsqrt.f32 %v1666_v49  ;;  %v1636_v57 = vmul.f32 0.0078125, %v1599_v24  ;;  %v1809_v54 = vpack.c.bf16 %v1785_v38, %v1784_v16  ;;  %v1754_v7 = vmul.f32 %v5042_v20, %v1722_v50  ;;  %v675_v48 = vpop.f32.mrf.mxu1 }
 0x226   :  { %v3823_v61 = vpop.eup %3822  ;;  %v1669_v21 = vadd.f32 1e-05, %v1637_v51  ;;  %v1725_v10 = vmul.f32 %v3821_v32, %v4957_v36  ;;  %3840 = vtanh.f32 %v672_v45  ;;  %v1787_v2 = vadd.f32 %v5054_v55, %v1755_v33  ;;  %v5115_v50 = vpop.f32.mrf.mxu0 }
 0x227   :  { %v1668_v0 = vadd.f32 1e-05, %v1636_v57  ;;  %3559 = vmatmul.mubr.bf16.gmra.mxu1 %v1809_v54  ;;  %v1605_v28 = vpop.xlane.xlu1 %1604  ;;  %v1786_v35 = vadd.f32 %v5054_v55, %v1754_v7  ;;  %v1724_v17 = vmul.f32 %v3823_v61, %v4950_v53 }
 0x228   :  { %3842 = vrsqrt.f32 %v1669_v21  ;;  %v1639_v25 = vmul.f32 0.0078125, %v1605_v28  ;;  %v1603_v43 = vpop.xlane.xlu0 %1602  ;;  %v1757_v4 = vmul.f32 %v5042_v20, %v1725_v10 }
 0x229   :  { %v3825_v59 = vpop.eup %3824  ;;  %3844 = vrsqrt.f32 %v1668_v0  ;;  %v1638_v23 = vmul.f32 0.0078125, %v1603_v43  ;;  %v1756_v36 = vmul.f32 %v5042_v20, %v1724_v17  ;;  %v1810_v62 = vpack.c.bf16 %v1787_v2, %v1786_v35 }
 0x22a   :  { %v3827_v19 = vpop.eup %3826  ;;  %v1671_v3 = vadd.f32 1e-05, %v1639_v25  ;;  %v1789_v52 = vadd.f32 %v5054_v55, %v1757_v4  ;;  %3846 = vtanh.f32 %v3517_v34  ;;  %v1727_v56 = vmul.f32 %v3825_v59, %v4967_v11 }
 0x22b   :  { %v1670_v53 = vadd.f32 1e-05, %v1638_v23  ;;  %v1609_v27 = vpop.xlane.xlu1 %1608  ;;  %v1788_v8 = vadd.f32 %v5054_v55, %v1756_v36  ;;  %v1726_v41 = vmul.f32 %v3827_v19, %v4960_v31  ;;  %3562 = vmatprep.mubr.bf16.mxu1 %v1810_v62 }
 0x22c   :  { %3848 = vrsqrt.f32 %v1671_v3  ;;  %v1641_v44 = vmul.f32 0.0078125, %v1609_v27  ;;  %v1607_v37 = vpop.xlane.xlu0 %1606  ;;  %v1759_v9 = vmul.f32 %v5042_v20, %v1727_v56 }
 0x22d   :  { %v3829_v47 = vpop.eup %3828  ;;  %3850 = vrsqrt.f32 %v1670_v53  ;;  %v1640_v60 = vmul.f32 0.0078125, %v1607_v37  ;;  %v1811_v6 = vpack.c.bf16 %v1789_v52, %v1788_v8  ;;  %v1758_v42 = vmul.f32 %v5042_v20, %v1726_v41 }
 0x22e   :  { %v3831_v38 = vpop.eup %3830  ;;  %v1673_v49 = vadd.f32 1e-05, %v1641_v44  ;;  %v1729_v16 = vmul.f32 %v3829_v47, %v4977_v1  ;;  %3852 = vtanh.f32 %v675_v48  ;;  %v1791_v32 = vadd.f32 %v5054_v55, %v1759_v9  ;;  %v3520_v48 = vpop.f32.mrf.mxu1 }
 0x22f   :  { %v3833_v31 = vpop.eup %3832  ;;  %v1672_v45 = vadd.f32 1e-05, %v1640_v60  ;;  %3563 = vmatmul.mubr.bf16.gmra.mxu1 %v1811_v6  ;;  %v1790_v11 = vadd.f32 %v5054_v55, %v1758_v42  ;;  %v1728_v51 = vmul.f32 %v3831_v38, %v4970_v40  ;;  %v611_v40 = vpop.f32.mrf.mxu0  ;;  %v7497_v42 = vmov 2  }
 0x230   :  { %v3835_v24 = vpop.eup %3834  ;;  %3854 = vrsqrt.f32 %v1673_v49  ;;  %v791_v5 = vmul.f32 %v3833_v31, %v5048_v13  ;;  %v1761_v57 = vmul.f32 %v5042_v20, %v1729_v16 }
 0x231   :  { %v3837_v54 = vpop.eup %3836  ;;  %3856 = vrsqrt.f32 %v1672_v45  ;;  %v1760_v1 = vmul.f32 %v5042_v20, %v1728_v51  ;;  %v1812_v21 = vpack.c.bf16 %v1791_v32, %v1790_v11  ;;  %v773_v10 = vmul.f32 %v3835_v24, %v5048_v13  ;;  %v3504_v23 = vpop.f32.mrf.mxu0 }
 0x232   :  { %v3839_v7 = vpop.eup %3838  ;;  %v5124_v61 = vadd.f32 %v5061_v29, %v791_v5  ;;  %v1793_v33 = vadd.f32 %v5054_v55, %v1761_v57  ;;  %v1731_v35 = vmul.f32 %v3837_v54, %v4987_v63  ;;  %3858 = vtanh.f32 %v611_v40  ;;  %v688_v54 = vpop.f32.mrf.mxu1 }
 0x233   :  { %v1792_v0 = vadd.f32 %v5054_v55, %v1760_v1  ;;  %v1730_v28 = vmul.f32 %v3839_v7, %v4980_v18  ;;  %v3841_v17 = vpop.eup %3840  ;;  %3566 = vmatprep.mubr.bf16.mxu1 %v1812_v21  ;;  %v5137_v18 = vadd.f32 %v5061_v29, %v773_v10  ;;  %3860 = vtanh.f32 %v3504_v23  ;;  %v624_v31 = vpop.f32.mrf.mxu0 }
 0x234   :  { %7668 = vst [vmem:[#allocation6_spill] sm:$0xff] %v5124_v61  ;;  %934 = vperm.xlu1 %3646, %v5124_v61   ;;  %1107 = vperm.xlu0 %3648, %v5124_v61   ;;  %v1763_v2 = vmul.f32 %v5042_v20, %v1731_v35  ;;  %v789_v62 = vmul.f32 %v3841_v17, %v5048_v13  ;;  %3862 = vtanh.f32 %v3520_v48 }
 0x235   :  { %v3843_v34 = vpop.eup %3842  ;;  %v1813_v25 = vpack.c.bf16 %v1793_v33, %v1792_v0  ;;  %v1762_v43 = vmul.f32 %v5042_v20, %v1730_v28  ;;  %3864 = vtanh.f32 %v5115_v50  ;;  %v3521_v33 = vpop.f32.mrf.mxu1 }
 0x236   :  { %v3845_v4 = vpop.eup %3844  ;;  %v1733_v59 = vmul.f32 %v3843_v34, %v4998_v30  ;;  %v1795_v36 = vadd.f32 %v5054_v55, %v1763_v2  ;;  %v5154_v47 = vadd.f32 %v5061_v29, %v789_v62  ;;  %3866 = vtanh.f32 %v624_v31  ;;  %v5186_v40 = vpop.f32.mrf.mxu0 }
 0x237   :  { %3567 = vmatmul.mubr.bf16.gmra.mxu1 %v1813_v25  ;;  %v1794_v63 = vadd.f32 %v5054_v55, %v1762_v43  ;;  %v1732_v19 = vmul.f32 %v3845_v4, %v4990_v12  ;;  %v3847_v3 = vpop.eup %3846  ;;  %3868 = vtanh.f32 %v688_v54  ;;  %v691_v28 = vpop.f32.mrf.mxu1 }
 0x238   :  { %3647 = vset.pattern.permute.xlu1 %v7499_v26  ;;  %3650 = vset.pattern.permute.xlu0 %v7501_v15  ;;  %v1765_v30 = vmul.f32 %v5042_v20, %v1733_v59  ;;  %7669 = vst [vmem:[#allocation2_spill] sm:$0xff] %v5154_v47  ;;  %3870 = vtanh.f32 %v3521_v33  ;;  %v5196_v17 = vpop.f32.mrf.mxu0 }
 0x239   :  { %v3849_v52 = vpop.eup %3848  ;;  %1043 = vperm.xlu1 %3647, %v5069_v58   ;;  %844 = vperm.xlu0 %3650, %v5137_v18   ;;  %v1814_v53 = vpack.c.bf16 %v1795_v36, %v1794_v63  ;;  %v1764_v27 = vmul.f32 %v5042_v20, %v1732_v19  ;;  %3872 = vtanh.f32 %v691_v28  ;;  %v3524_v19 = vpop.f32.mrf.mxu1 }
 0x23a   :  { %v3851_v8 = vpop.eup %3850  ;;  %v1797_v12 = vadd.f32 %v5054_v55, %v1765_v30  ;;  %v1735_v41 = vmul.f32 %v3849_v52, %v5008_v22  ;;  %v792_v22 = vmul.f32 %v3847_v3, %v5048_v13  ;;  %v3508_v4 = vpop.f32.mrf.mxu0 }
 0x23b   :  { %3570 = vmatprep.mubr.bf16.mxu1 %v1814_v53  ;;  %v1796_v44 = vadd.f32 %v5054_v55, %v1764_v27  ;;  %v1734_v37 = vmul.f32 %v3851_v8, %v5001_v14  ;;  %v3853_v56 = vpop.eup %3852  ;;  %3874 = vtanh.f32 %v3508_v4 }
 0x23c   :  { %v1767_v60 = vmul.f32 %v5042_v20, %v1735_v41  ;;  %v5170_v24 = vadd.f32 %v5061_v29, %v792_v22  ;;  %v790_v32 = vmul.f32 %v3853_v56, %v5048_v13  ;;  %3876 = vtanh.f32 %v3524_v19  ;;  %v640_v52 = vpop.f32.mrf.mxu0 }
 0x23d   :  { %v3855_v6 = vpop.eup %3854  ;;  %3649 = vset.pattern.permute.xlu1 %v7497_v42  ;;  %3653 = vset.pattern.permute.xlu0 %v7499_v26  ;;  %v1815_v38 = vpack.c.bf16 %v1797_v12, %v1796_v44  ;;  %v1766_v49 = vmul.f32 %v5042_v20, %v1734_v37  ;;  %3878 = vtanh.f32 %v640_v52  ;;  %v704_v12 = vpop.f32.mrf.mxu1 }
 0x23e   :  { %v3857_v9 = vpop.eup %3856  ;;  %1203 = vperm.xlu1 %3649, %v5069_v58   ;;  %1099 = vperm.xlu0 %3653, %v5154_v47   ;;  %v1799_v14 = vadd.f32 %v5054_v55, %v1767_v60  ;;  %v1737_v16 = vmul.f32 %v3855_v6, %v5018_v39  ;;  %7670 = vst [vmem:[#allocation7_spill] sm:$0xff] %v5170_v24  ;;  %3880 = vtanh.f32 %v704_v12  ;;  %v3509_v37 = vpop.f32.mrf.mxu0 }
 0x23f   :  { %3571 = vmatmul.mubr.bf16.gmra.mxu1 %v1815_v38  ;;  %v1798_v45 = vadd.f32 %v5054_v55, %v1766_v49  ;;  %v1736_v11 = vmul.f32 %v3857_v9, %v5011_v46  ;;  %v3859_v46 = vpop.eup %3858  ;;  %v5180_v1 = vadd.f32 %v5061_v29, %v790_v32  ;;  %3882 = vtanh.f32 %v3509_v37  ;;  %v3525_v38 = vpop.f32.mrf.mxu1 }
 0x240   :  { %v1769_v51 = vmul.f32 %v5042_v20, %v1737_v16  ;;  %v3861_v21 = vpop.eup %3860  ;;  %3884 = vtanh.f32 %v3525_v38 }
 0x241   :  { %v1816_v5 = vpack.c.bf16 %v1799_v14, %v1798_v45  ;;  %v1768_v57 = vmul.f32 %v5042_v20, %v1736_v11  ;;  %7671 = vst [vmem:[#allocation8_spill] sm:$0xff] %v5180_v1  ;;  %v774_v20 = vmul.f32 %v3859_v46, %v5048_v13  ;;  %v779_v10 = vmul.f32 %v3861_v21, %v5048_v13  ;;  %v3863_v0 = vpop.eup %3862  ;;  %v643_v14 = vpop.f32.mrf.mxu0 }
 0x242   :  { %1267 = vperm.xlu1 %3649, %v5124_v61   ;;  %3656 = vset.pattern.permute.xlu0 %v7501_v15  ;;  %v1801_v39 = vadd.f32 %v5054_v55, %v1769_v51  ;;  %v3865_v35 = vpop.eup %3864  ;;  %v795_v25 = vmul.f32 %v3863_v0, %v5048_v13  ;;  %3886 = vtanh.f32 %v643_v14  ;;  %v707_v11 = vpop.f32.mrf.mxu1 }
 0x243   :  { %939 = vperm.xlu0 %3656, %v5170_v24   ;;  %3574 = vmatprep.mubr.bf16.mxu1 %v1816_v5  ;;  %v1800_v50 = vadd.f32 %v5054_v55, %v1768_v57  ;;  %v5189_v55 = vadd.f32 %v5061_v29, %v774_v20  ;;  %v5199_v34 = vadd.f32 %v5061_v29, %v779_v10  ;;  %v3867_v43 = vpop.eup %3866  ;;  %3888 = vtanh.f32 %v707_v11  ;;  %v3512_v57 = vpop.f32.mrf.mxu0 }
 0x244   :  { %v776_v2 = vmul.f32 %v3865_v35, %v5048_v13  ;;  %v5207_v59 = vadd.f32 %v5061_v29, %v795_v25  ;;  %v777_v23 = vmul.f32 %v3867_v43, %v5048_v13  ;;  %v3869_v63 = vpop.eup %3868  ;;  %3890 = vtanh.f32 %v3512_v57 }
 0x245   :  { %v1817_v7 = vpack.c.bf16 %v1801_v39, %v1800_v50  ;;  %7672 = vst [vmem:[#allocation3_spill] sm:$0xff] %v5189_v55  ;;  %7673 = vst [vmem:[#allocation9_spill] sm:$0xff] %v5199_v34  ;;  %v793_v62 = vmul.f32 %v3869_v63, %v5048_v13  ;;  %v3871_v30 = vpop.eup %3870  ;;  %v3528_v50 = vpop.f32.mrf.mxu1 }
 0x246   :  { %3651 = vset.pattern.permute.xlu1 %v7501_v15  ;;  %7674 = vst [vmem:[#allocation10_spill] sm:$0xff] %v5207_v59  ;;  %v5212_v36 = vadd.f32 %v5061_v29, %v776_v2  ;;  %v5217_v3 = vadd.f32 %v5061_v29, %v777_v23  ;;  %v796_v27 = vmul.f32 %v3871_v30, %v5048_v13  ;;  %v3873_v8 = vpop.eup %3872  ;;  %3892 = vtanh.f32 %v3528_v50  ;;  %v656_v33 = vpop.f32.mrf.mxu0 }
 0x247   :  { %924 = vperm.xlu1 %3651, %v5154_v47   ;;  %929 = vperm.xlu0 %3656, %v5180_v1   ;;  %v5223_v53 = vadd.f32 %v5061_v29, %v793_v62  ;;  %v794_v48 = vmul.f32 %v3873_v8, %v5048_v13  ;;  %3894 = vtanh.f32 %v656_v33  ;;  %v720_v35 = vpop.f32.mrf.mxu1 }
 0x248   :  { %3575 = vmatmul.mubr.bf16.gmra.mxu1 %v1817_v7  ;;  %7675 = vst [vmem:[#allocation4_spill] sm:$0xff] %v5212_v36  ;;  %7676 = vst [vmem:[#allocation11_spill] sm:$0xff] %v5217_v3  ;;  %v5230_v41 = vadd.f32 %v5061_v29, %v796_v27  ;;  %v3875_v44 = vpop.eup %3874  ;;  %3896 = vtanh.f32 %v5186_v40  ;;  %v3513_v4 = vpop.f32.mrf.mxu0 }
 0x249   :  { %7677 = vst [vmem:[#allocation12_spill] sm:$0xff] %v5223_v53  ;;  %v5237_v56 = vadd.f32 %v5061_v29, %v794_v48  ;;  %v783_v60 = vmul.f32 %v3875_v44, %v5048_v13  ;;  %v3877_v6 = vpop.eup %3876  ;;  %3898 = vtanh.f32 %v720_v35  ;;  %v3529_v19 = vpop.f32.mrf.mxu1 }
 0x24a   :  { %7678 = vst [vmem:[#allocation13_spill] sm:$0xff] %v5230_v41  ;;  %v799_v49 = vmul.f32 %v3877_v6, %v5048_v13  ;;  %v3879_v9 = vpop.eup %3878  ;;  %3900 = vtanh.f32 %v3513_v4  ;;  %v659_v27 = vpop.f32.mrf.mxu0 }
 0x24b   :  { %3652 = vset.pattern.permute.xlu1 %v7499_v26  ;;  %3659 = vset.pattern.permute.xlu0 %v7499_v26  ;;  %7679 = vst [vmem:[#allocation14_spill] sm:$0xff] %v5237_v56  ;;  %v5244_v22 = vadd.f32 %v5061_v29, %v783_v60  ;;  %v781_v31 = vmul.f32 %v3879_v9, %v5048_v13  ;;  %v3881_v45 = vpop.eup %3880  ;;  %3902 = vtanh.f32 %v3529_v19  ;;  %v723_v37 = vpop.f32.mrf.mxu1 }
 0x24c   :  { %1035 = vperm.xlu1 %3652, %v5137_v18   ;;  %1039 = vperm.xlu0 %3659, %v5189_v55   ;;  %v5251_v16 = vadd.f32 %v5061_v29, %v799_v49  ;;  %v797_v5 = vmul.f32 %v3881_v45, %v5048_v13  ;;  %v3883_v32 = vpop.eup %3882  ;;  %3904 = vtanh.f32 %v5196_v17 }
 0x24d   :  { %7680 = vst [vmem:[#allocation15_spill] sm:$0xff] %v5244_v22  ;;  %v5258_v51 = vadd.f32 %v5061_v29, %v781_v31  ;;  %v784_v46 = vmul.f32 %v3883_v32, %v5048_v13  ;;  %v3885_v54 = vpop.eup %3884  ;;  %3906 = vtanh.f32 %v659_v27 }
 0x24e   :  { %7681 = vst [vmem:[#allocation16_spill] sm:$0xff] %v5251_v16  ;;  %v5265_v39 = vadd.f32 %v5061_v29, %v797_v5  ;;  %v800_v20 = vmul.f32 %v3885_v54, %v5048_v13  ;;  %3908 = vtanh.f32 %v723_v37 }
 0x24f   :  { %7682 = vst [vmem:[#allocation17_spill] sm:$0xff] %v5258_v51  ;;  %v5271_v7 = vadd.f32 %v5061_v29, %v784_v46  ;;  %v3887_v21 = vpop.eup %3886 }
 0x250   :  { %3654 = vset.pattern.permute.xlu1 %v7497_v42  ;;  %1059 = vperm.xlu0 %3659, %v5199_v34   ;;  %7683 = vst [vmem:[#allocation18_spill] sm:$0xff] %v5265_v39  ;;  %v5279_v10 = vadd.f32 %v5061_v29, %v800_v20  ;;  %v782_v0 = vmul.f32 %v3887_v21, %v5048_v13  ;;  %v3889_v28 = vpop.eup %3888 }
 0x251   :  { %1259 = vperm.xlu1 %3654, %v5154_v47   ;;  %7684 = vst [vmem:[#allocation19_spill] sm:$0xff] %v5271_v7  ;;  %v798_v43 = vmul.f32 %v3889_v28, %v5048_v13  ;;  %v3891_v2 = vpop.eup %3890 }
 0x252   :  { %7685 = vst [vmem:[#allocation20_spill] sm:$0xff] %v5279_v10  ;;  %v5286_v25 = vadd.f32 %v5061_v29, %v782_v0  ;;  %v787_v63 = vmul.f32 %v3891_v2, %v5048_v13 }
 0x253   :  { %v5293_v23 = vadd.f32 %v5061_v29, %v798_v43  ;;  %v3893_v40 = vpop.eup %3892 }
 0x254   :  { %1123 = vperm.xlu0 %3659, %v5207_v59   ;;  %7686 = vst [vmem:[#allocation21_spill] sm:$0xff] %v5286_v25  ;;  %v5299_v62 = vadd.f32 %v5061_v29, %v787_v63  ;;  %v803_v30 = vmul.f32 %v3893_v40, %v5048_v13  ;;  %v3895_v52 = vpop.eup %3894 }
 0x255   :  { %3655 = vset.pattern.permute.xlu1 %v7501_v15  ;;  %7687 = vst [vmem:[#allocation22_spill] sm:$0xff] %v5293_v23  ;;  %v3897_v8 = vpop.eup %3896  ;;  %v785_v48 = vmul.f32 %v3895_v52, %v5048_v13 }
 0x256   :  { %859 = vperm.xlu1 %3655, %v5212_v36   ;;  %7688 = vst [vmem:[#allocation23_spill] sm:$0xff] %v5299_v62  ;;  %v5308_v12 = vadd.f32 %v5061_v29, %v803_v30  ;;  %v3899_v44 = vpop.eup %3898  ;;  %v780_v60 = vmul.f32 %v3897_v8, %v5048_v13 }
 0x257   :  { %v5315_v6 = vadd.f32 %v5061_v29, %v785_v48  ;;  %v801_v17 = vmul.f32 %v3899_v44, %v5048_v13  ;;  %v3901_v38 = vpop.eup %3900 }
 0x258   :  { %1051 = vperm.xlu0 %3659, %v5217_v3   ;;  %7689 = vst [vmem:[#allocation24_spill] sm:$0xff] %v5308_v12  ;;  %v5320_v49 = vadd.f32 %v5061_v29, %v780_v60  ;;  %v788_v14 = vmul.f32 %v3901_v38, %v5048_v13  ;;  %v3903_v31 = vpop.eup %3902 }
 0x259   :  { %7690 = vst [vmem:[#allocation25_spill] sm:$0xff] %v5315_v6  ;;  %v5324_v9 = vadd.f32 %v5061_v29, %v801_v17  ;;  %v3905_v45 = vpop.eup %3904  ;;  %v804_v5 = vmul.f32 %v3903_v31, %v5048_v13 }
 0x25a   :  { %3657 = vset.pattern.permute.xlu1 %v7499_v26  ;;  %7691 = vst [vmem:[#allocation26_spill] sm:$0xff] %v5320_v49  ;;  %v5331_v11 = vadd.f32 %v5061_v29, %v788_v14  ;;  %v3907_v32 = vpop.eup %3906  ;;  %v778_v46 = vmul.f32 %v3905_v45, %v5048_v13 }
 0x25b   :  { %1047 = vperm.xlu1 %3657, %v5212_v36   ;;  %7692 = vst [vmem:[#allocation27_spill] sm:$0xff] %v5324_v9  ;;  %v5338_v57 = vadd.f32 %v5061_v29, %v804_v5  ;;  %v786_v54 = vmul.f32 %v3907_v32, %v5048_v13  ;;  %v3909_v50 = vpop.eup %3908 }
 0x25c   :  { %1115 = vperm.xlu0 %3659, %v5223_v53   ;;  %7693 = vst [vmem:[#allocation28_spill] sm:$0xff] %v5331_v11  ;;  %v5345_v20 = vadd.f32 %v5061_v29, %v778_v46  ;;  %v802_v33 = vmul.f32 %v3909_v50, %v5048_v13 }
 0x25d   :  { %7694 = vst [vmem:[#allocation29_spill] sm:$0xff] %v5338_v57  ;;  %v5348_v21 = vadd.f32 %v5061_v29, %v786_v54 }
 0x25e   :  { %7695 = vst [vmem:[#allocation30_spill] sm:$0xff] %v5345_v20  ;;  %v5355_v0 = vadd.f32 %v5061_v29, %v802_v33 }
 0x25f   :  { %1111 = vperm.xlu1 %3657, %v5170_v24   ;;  %7696 = vst [vmem:[#allocation31_spill] sm:$0xff] %v5348_v21 }
 0x260   :  { %3667 = vset.pattern.permute.xlu0 %v7501_v15  ;;  %7697 = vst [vmem:[#allocation32_spill] sm:$0xff] %v5355_v0 }
 0x261   :  { %959 = vperm.xlu0 %3667, %v5230_v41  }
 0x263   :  { %3658 = vset.pattern.permute.xlu1 %v7501_v15 }
 0x264   :  { %849 = vperm.xlu1 %3658, %v5189_v55  }
 0x265   :  { %949 = vperm.xlu0 %3667, %v5237_v56  }
 0x268   :  { %3660 = vset.pattern.permute.xlu1 %v7499_v26 }
 0x269   :  { %1103 = vperm.xlu1 %3660, %v5180_v1   ;;  %3672 = vset.pattern.permute.xlu0 %v7499_v26 }
 0x26a   :  { %1075 = vperm.xlu0 %3672, %v5244_v22  }
 0x26d   :  { %3661 = vset.pattern.permute.xlu1 %v7497_v42 }
 0x26e   :  { %1199 = vperm.xlu1 %3661, %v5189_v55   ;;  %1139 = vperm.xlu0 %3672, %v5251_v16  }
 0x272   :  { %3662 = vset.pattern.permute.xlu1 %v7501_v15  ;;  %1067 = vperm.xlu0 %3672, %v5258_v51  }
 0x273   :  { %874 = vperm.xlu1 %3662, %v5199_v34  }
 0x276   :  { %1131 = vperm.xlu0 %3672, %v5265_v39  }
 0x277   :  { %954 = vperm.xlu1 %3662, %v5207_v59  }
 0x27a   :  { %3676 = vset.pattern.permute.xlu0 %v7501_v15 }
 0x27b   :  { %3663 = vset.pattern.permute.xlu1 %v7497_v42  ;;  %899 = vperm.xlu0 %3676, %v5271_v7  }
 0x27c   :  { %1219 = vperm.xlu1 %3663, %v5199_v34  }
 0x27f   :  { %979 = vperm.xlu0 %3676, %v5279_v10  }
 0x280   :  { %1283 = vperm.xlu1 %3663, %v5207_v59  }
 0x283   :  { %889 = vperm.xlu0 %3676, %v5286_v25  }
 0x284   :  { %3664 = vset.pattern.permute.xlu1 %v7501_v15 }
 0x285   :  { %864 = vperm.xlu1 %3664, %v5217_v3  }
 0x287   :  { %969 = vperm.xlu0 %3676, %v5293_v23  }
 0x289   :  { %944 = vperm.xlu1 %3664, %v5223_v53  }
 0x28b   :  { %3679 = vset.pattern.permute.xlu0 %v7499_v26 }
 0x28c   :  { %1091 = vperm.xlu0 %3679, %v5299_v62  }
 0x28d   :  { %3665 = vset.pattern.permute.xlu1 %v7497_v42 }
 0x28e   :  { %1211 = vperm.xlu1 %3665, %v5217_v3  }
 0x28f   :  { %v5360_v28 = vpop.permute.xlu1 %854 }
 0x290   :  { %1155 = vperm.xlu0 %3679, %v5308_v12  }
 0x292   :  { %1275 = vperm.xlu1 %3665, %v5223_v53  }
 0x294   :  { %1083 = vperm.xlu0 %3679, %v5315_v6  }
 0x296   :  { %3666 = vset.pattern.permute.xlu1 %v7501_v15 }
 0x297   :  { %879 = vperm.xlu1 %3666, %v5320_v49  }
 0x298   :  { %1147 = vperm.xlu0 %3679, %v5324_v9  }
 0x29b   :  { %3668 = vset.pattern.permute.xlu1 %v7499_v26 }
 0x29c   :  { %1063 = vperm.xlu1 %3668, %v5320_v49   ;;  %3683 = vset.pattern.permute.xlu0 %v7501_v15 }
 0x29d   :  { %919 = vperm.xlu0 %3683, %v5331_v11  }
 0x2a0   :  { %1127 = vperm.xlu1 %3668, %v5230_v41  }
 0x2a1   :  { %999 = vperm.xlu0 %3683, %v5338_v57  }
 0x2a4   :  { %3669 = vset.pattern.permute.xlu1 %v7501_v15 }
 0x2a5   :  { %869 = vperm.xlu1 %3669, %v5345_v20   ;;  %909 = vperm.xlu0 %3683, %v5348_v21  }
 0x2a9   :  { %3670 = vset.pattern.permute.xlu1 %v7499_v26  ;;  %989 = vperm.xlu0 %3683, %v5355_v0  }
 0x2aa   :  { %1055 = vperm.xlu1 %3670, %v5345_v20  }
 0x2ae   :  { %1119 = vperm.xlu1 %3670, %v5237_v56  }
 0x2af   :  { %v5363_v35 = vpop.permute.xlu1 %934  ;;  %v5370_v29 = vpop.permute.xlu0 %1107 }
 0x2b0   :  { %7698 = vst [vmem:[#allocation33_spill] sm:$0xff] %v5363_v35  ;;  %7700 = vst [vmem:[#allocation35_spill] sm:$0xff] %v5370_v29 }
 0x2b2   :  { %3671 = vset.pattern.permute.xlu1 %v7501_v15 }
 0x2b3   :  { %894 = vperm.xlu1 %3671, %v5244_v22  }
 0x2b4   :  { %v5367_v43 = vpop.permute.xlu1 %1043  ;;  %v5378_v63 = vpop.permute.xlu0 %844 }
 0x2b5   :  { %7699 = vst [vmem:[#allocation34_spill] sm:$0xff] %v5367_v43 }
 0x2b7   :  { %974 = vperm.xlu1 %3671, %v5251_v16  }
 0x2b9   :  { %v5372_v2 = vpop.permute.xlu1 %1203  ;;  %v5383_v19 = vpop.permute.xlu0 %1099 }
 0x2ba   :  { %7701 = vst [vmem:[#allocation36_spill] sm:$0xff] %v5372_v2  ;;  %7704 = vst [vmem:[#allocation39_spill] sm:$0xff] %v5383_v19  ;;  %v7718_v19 = vmov 1  }
 0x2bb   :  { %3673 = vset.pattern.permute.xlu1 %v7497_v42 }
 0x2bc   :  { %1235 = vperm.xlu1 %3673, %v5244_v22  }
 0x2bd   :  { %v5376_v4 = vpop.permute.xlu1 %1267 }
 0x2be   :  { %7702 = vst [vmem:[#allocation37_spill] sm:$0xff] %v5376_v4  ;;  %v5390_v52 = vpop.permute.xlu0 %939 }
 0x2bf   :  { %7706 = vst [vmem:[#allocation41_spill] sm:$0xff] %v5390_v52 }
 0x2c0   :  { %1299 = vperm.xlu1 %3673, %v5251_v16   ;;  %v7726_v16 = vmov 2  }
 0x2c2   :  { %v5381_v40 = vpop.permute.xlu1 %924  ;;  %v5398_v48 = vpop.permute.xlu0 %929 }
 0x2c3   :  { %7703 = vst [vmem:[#allocation38_spill] sm:$0xff] %v5381_v40  ;;  %7708 = vst [vmem:[#allocation43_spill] sm:$0xff] %v5398_v48 }
 0x2c4   :  { %3674 = vset.pattern.permute.xlu1 %v7501_v15 }
 0x2c5   :  { %884 = vperm.xlu1 %3674, %v5258_v51  }
 0x2c7   :  { %v5387_v30 = vpop.permute.xlu1 %1035  ;;  %v5406_v14 = vpop.permute.xlu0 %1039 }
 0x2c8   :  { %7705 = vst [vmem:[#allocation40_spill] sm:$0xff] %v5387_v30  ;;  %7710 = vst [vmem:[#allocation45_spill] sm:$0xff] %v5406_v14 }
 0x2c9   :  { %964 = vperm.xlu1 %3674, %v5265_v39  }
 0x2cb   :  { %v5412_v46 = vpop.permute.xlu0 %1059 }
 0x2cc   :  { %v5392_v27 = vpop.permute.xlu1 %1259  ;;  %7712 = vst [vmem:[#allocation47_spill] sm:$0xff] %v5412_v46 }
 0x2cd   :  { %7707 = vst [vmem:[#allocation42_spill] sm:$0xff] %v5392_v27  ;;  %3675 = vset.pattern.permute.xlu1 %v7497_v42 }
 0x2ce   :  { %1227 = vperm.xlu1 %3675, %v5258_v51  }
 0x2cf   :  { %v5396_v8 = vpop.f32.mrf.mxu1 }
 0x2d1   :  { %v5400_v44 = vpop.permute.xlu1 %859  ;;  %v1852_v37 = vpop.f32.mrf.mxu1 }
 0x2d2   :  { %1291 = vperm.xlu1 %3675, %v5265_v39   ;;  %3910 = vtanh.f32 %v1852_v37 }
 0x2d3   :  { %v3549_v60 = vpop.f32.mrf.mxu1 }
 0x2d4   :  { %3912 = vtanh.f32 %v3549_v60 }
 0x2d5   :  { %v1855_v17 = vpop.f32.mrf.mxu1 }
 0x2d6   :  { %3677 = vset.pattern.permute.xlu1 %v7499_v26  ;;  %v5404_v38 = vpop.permute.xlu1 %1047  ;;  %3914 = vtanh.f32 %v1855_v17  ;;  %v5431_v26 = vpop.permute.xlu0 %1123 }
 0x2d7   :  { %7709 = vst [vmem:[#allocation44_spill] sm:$0xff] %v5404_v38  ;;  %1079 = vperm.xlu1 %3677, %v5271_v7   ;;  %v3552_v31 = vpop.f32.mrf.mxu1  ;;  %7714 = vst [vmem:[#allocation49_spill] sm:$0xff] %v5431_v26 }
 0x2d8   :  { %3916 = vtanh.f32 %v3552_v31 }
 0x2d9   :  { %v1868_v45 = vpop.f32.mrf.mxu1 }
 0x2da   :  { %v5409_v5 = vpop.permute.xlu1 %1111  ;;  %3918 = vtanh.f32 %v1868_v45  ;;  %v5425_v45 = vld [vmem:[%s7462_s6 + $0x1] ss:$0 sm:$0xff] }
 0x2db   :  { %7711 = vst [vmem:[#allocation46_spill] sm:$0xff] %v5409_v5  ;;  %1143 = vperm.xlu1 %3677, %v5279_v10   ;;  %v3553_v32 = vpop.f32.mrf.mxu1  ;;  %v5440_v5 = vld [vmem:[%s7461_s7] ss:$0 sm:$0xff] }
 0x2dc   :  { %3920 = vtanh.f32 %v3553_v32 }
 0x2dd   :  { %v1871_v54 = vpop.f32.mrf.mxu1 }
 0x2de   :  { %3922 = vtanh.f32 %v1871_v54 }
 0x2df   :  { %v3911_v50 = vpop.eup %3910  ;;  %1071 = vperm.xlu1 %3677, %v5286_v25   ;;  %v5415_v33 = vpop.permute.xlu1 %849 }
 0x2e0   :  { %v5417_v37 = vpop.f32.mrf.mxu1  ;;  %v2011_v60 = vmul.f32 %v3911_v50, %v5048_v13 }
 0x2e1   :  { %v3913_v17 = vpop.eup %3912 }
 0x2e2   :  { %v5420_v31 = vpop.f32.mrf.mxu1  ;;  %v5428_v32 = vadd.f32 %v5425_v45, %v2011_v60  ;;  %v2014_v54 = vmul.f32 %v3913_v17, %v5048_v13 }
 0x2e3   :  { %v3915_v42 = vpop.eup %3914  ;;  %1135 = vperm.xlu1 %3677, %v5293_v23  }
 0x2e4   :  { %7713 = vst [vmem:[#allocation48_spill] sm:$0xff] %v5428_v32  ;;  %v3557_v15 = vpop.f32.mrf.mxu1  ;;  %v5434_v50 = vpop.permute.xlu1 %1103  ;;  %2082 = vperm.xlu0 %3683, %v5428_v32   ;;  %v2012_v60 = vmul.f32 %v5440_v5, %v3915_v42  ;;  %v5444_v13 = vadd.f32 %v5425_v45, %v2014_v54 }
 0x2e5   :  { %7715 = vst [vmem:[#allocation50_spill] sm:$0xff] %v5434_v50  ;;  %3924 = vtanh.f32 %v3557_v15  ;;  %v3917_v17 = vpop.eup %3916  ;;  %v7717_v50 = vmov 0   ;;  %v5455_v54 = vpop.permute.xlu0 %1051 }
 0x2e6   :  { %7716 = vst [vmem:[#allocation51_spill] sm:$0xff] %v5444_v13  ;;  %v1887_v26 = vpop.f32.mrf.mxu1  ;;  %v5447_v27 = vadd.f32 %v5425_v45, %v2012_v60  ;;  %v2017_v46 = vmul.f32 %v5440_v5, %v3917_v17  ;;  %7719 = vst [vmem:[#allocation52_spill] sm:$0xff] %v5455_v54 }
 0x2e7   :  { %3926 = vtanh.f32 %v1887_v26  ;;  %3678 = vset.pattern.permute.xlu1 %v7717_v50  ;;  %v3919_v4 = vpop.eup %3918 }
 0x2e8   :  { %v5450_v15 = vpop.f32.mrf.mxu1  ;;  %914 = vperm.xlu1 %3678, %v5299_v62   ;;  %3690 = vset.pattern.permute.xlu0 %v7718_v19  ;;  %v5464_v14 = vadd.f32 %v5425_v45, %v2017_v46  ;;  %v2015_v17 = vmul.f32 %v5440_v5, %v3919_v4 }
 0x2e9   :  { %v3921_v42 = vpop.eup %3920  ;;  %v5457_v2 = vpop.permute.xlu1 %1199  ;;  %2309 = vperm.xlu0 %3690, %v5447_v27  }
 0x2ea   :  { %7720 = vst [vmem:[#allocation53_spill] sm:$0xff] %v5457_v2  ;;  %v5460_v26 = vpop.f32.mrf.mxu1  ;;  %v2018_v60 = vmul.f32 %v5440_v5, %v3921_v42  ;;  %7721 = vst [vmem:[#allocation54_spill] sm:$0xff] %v5464_v14  ;;  %v5478_v46 = vpop.permute.xlu0 %1115  ;;  %v5481_v4 = vadd.f32 %v5425_v45, %v2015_v17 }
 0x2eb   :  { %v3923_v29 = vpop.eup %3922  ;;  %7725 = vst [vmem:[#allocation58_spill] sm:$0xff] %v5478_v46 }
 0x2ec   :  { %994 = vperm.xlu1 %3678, %v5308_v12   ;;  %v3561_v38 = vpop.f32.mrf.mxu1  ;;  %v5469_v30 = vadd.f32 %v5425_v45, %v2018_v60  ;;  %v2016_v2 = vmul.f32 %v5440_v5, %v3923_v29 }
 0x2ed   :  { %3928 = vtanh.f32 %v3561_v38  ;;  %2329 = vperm.xlu0 %3690, %v5464_v14  }
 0x2ee   :  { %7722 = vst [vmem:[#allocation55_spill] sm:$0xff] %v5469_v30  ;;  %v5473_v54 = vpop.permute.xlu1 %874  ;;  %v1903_v42 = vpop.f32.mrf.mxu1  ;;  %v5476_v43 = vadd.f32 %v5425_v45, %v2016_v2 }
 0x2ef   :  { %7723 = vst [vmem:[#allocation56_spill] sm:$0xff] %v5473_v54  ;;  %3930 = vtanh.f32 %v1903_v42  ;;  %v5497_v53 = vpop.permute.xlu0 %959 }
 0x2f0   :  { %7724 = vst [vmem:[#allocation57_spill] sm:$0xff] %v5476_v43  ;;  %3680 = vset.pattern.permute.xlu1 %v7726_v16  ;;  %v5484_v60 = vpop.f32.mrf.mxu1  ;;  %7729 = vst [vmem:[#allocation61_spill] sm:$0xff] %v5497_v53 }
 0x2f1   :  { %1251 = vperm.xlu1 %3680, %v5299_v62   ;;  %2321 = vperm.xlu0 %3690, %v5481_v4  }
 0x2f2   :  { %v3925_v29 = vpop.eup %3924  ;;  %v5488_v38 = vpop.permute.xlu1 %954 }
 0x2f3   :  { %7727 = vst [vmem:[#allocation59_spill] sm:$0xff] %v5488_v38  ;;  %v5490_v39 = vpop.f32.mrf.mxu1  ;;  %v2022_v2 = vmul.f32 %v5440_v5, %v3925_v29 }
 0x2f4   :  { %v3927_v46 = vpop.eup %3926 }
 0x2f5   :  { %v3565_v42 = vpop.f32.mrf.mxu1  ;;  %v5494_v17 = vadd.f32 %v5425_v45, %v2022_v2  ;;  %v2020_v59 = vmul.f32 %v5440_v5, %v3927_v46  ;;  %1315 = vperm.xlu1 %3680, %v5308_v12   ;;  %3693 = vset.pattern.permute.xlu0 %v7717_v50 }
 0x2f6   :  { %3932 = vtanh.f32 %v3565_v42  ;;  %v5514_v42 = vpop.permute.xlu0 %949 }
 0x2f7   :  { %7728 = vst [vmem:[#allocation60_spill] sm:$0xff] %v5494_v17  ;;  %v1919_v61 = vpop.f32.mrf.mxu1  ;;  %2137 = vperm.xlu0 %3693, %v5494_v17   ;;  %v5502_v58 = vpop.permute.xlu1 %1219  ;;  %v5507_v2 = vadd.f32 %v5425_v45, %v2020_v59  ;;  %7732 = vst [vmem:[#allocation64_spill] sm:$0xff] %v5514_v42 }
 0x2f8   :  { %7730 = vst [vmem:[#allocation62_spill] sm:$0xff] %v5502_v58  ;;  %3934 = vtanh.f32 %v1919_v61 }
 0x2f9   :  { %v5504_v29 = vpop.f32.mrf.mxu1  ;;  %7731 = vst [vmem:[#allocation63_spill] sm:$0xff] %v5507_v2  ;;  %3681 = vset.pattern.permute.xlu1 %v7717_v50 }
 0x2fa   :  { %v3929_v46 = vpop.eup %3928  ;;  %904 = vperm.xlu1 %3681, %v5315_v6  }
 0x2fb   :  { %v5511_v12 = vpop.f32.mrf.mxu1  ;;  %2127 = vperm.xlu0 %3693, %v5507_v2   ;;  %v5516_v47 = vpop.permute.xlu1 %1283  ;;  %v2026_v61 = vmul.f32 %v5440_v5, %v3929_v46 }
 0x2fc   :  { %7733 = vst [vmem:[#allocation65_spill] sm:$0xff] %v5516_v47  ;;  %v3931_v58 = vpop.eup %3930  ;;  %v5529_v47 = vpop.permute.xlu0 %1075 }
 0x2fd   :  { %v3569_v62 = vpop.f32.mrf.mxu1  ;;  %v5520_v59 = vadd.f32 %v5425_v45, %v2026_v61  ;;  %v2024_v22 = vmul.f32 %v5440_v5, %v3931_v58  ;;  %7734 = vst [vmem:[#allocation66_spill] sm:$0xff] %v5529_v47 }
 0x2fe   :  { %3936 = vtanh.f32 %v3569_v62  ;;  %984 = vperm.xlu1 %3681, %v5324_v9  }
 0x2ff   :  { %v1935_v51 = vpop.f32.mrf.mxu1  ;;  %2157 = vperm.xlu0 %3693, %v5520_v59   ;;  %v5532_v46 = vadd.f32 %v5425_v45, %v2024_v22 }
 0x300   :  { %3938 = vtanh.f32 %v1935_v51  ;;  %v5525_v53 = vpop.permute.xlu1 %864  ;;  %v5547_v52 = vpop.permute.xlu0 %1139 }
 0x301   :  { %v5527_v42 = vpop.f32.mrf.mxu1  ;;  %7736 = vst [vmem:[#allocation68_spill] sm:$0xff] %v5547_v52 }
 0x302   :  { %3682 = vset.pattern.permute.xlu1 %v7726_v16 }
 0x303   :  { %v3933_v62 = vpop.eup %3932  ;;  %v5535_v61 = vpop.f32.mrf.mxu1  ;;  %1243 = vperm.xlu1 %3682, %v5315_v6   ;;  %2147 = vperm.xlu0 %3693, %v5532_v46  }
 0x304   :  { %v2030_v58 = vmul.f32 %v5440_v5, %v3933_v62  ;;  %v5540_v38 = vpop.permute.xlu1 %944 }
 0x305   :  { %v3935_v51 = vpop.eup %3934  ;;  %7735 = vst [vmem:[#allocation67_spill] sm:$0xff] %v5540_v38  ;;  %v3573_v34 = vpop.f32.mrf.mxu1 }
 0x306   :  { %3940 = vtanh.f32 %v3573_v34  ;;  %v5543_v47 = vadd.f32 %v5425_v45, %v2030_v58  ;;  %v2028_v22 = vmul.f32 %v5440_v5, %v3935_v51 }
 0x307   :  { %3942 = vtanh.f32 %v5396_v8  ;;  %v1951_v3 = vpop.f32.mrf.mxu1  ;;  %1307 = vperm.xlu1 %3682, %v5324_v9  }
 0x308   :  { %3944 = vtanh.f32 %v1951_v3  ;;  %2177 = vperm.xlu0 %3693, %v5543_v47   ;;  %v5554_v6 = vadd.f32 %v5425_v45, %v2028_v22  ;;  %v5561_v3 = vpop.permute.xlu0 %1067 }
 0x309   :  { %v5551_v62 = vpop.permute.xlu1 %1211  ;;  %3946 = vtanh.f32 %v5420_v31  ;;  %7738 = vst [vmem:[#allocation70_spill] sm:$0xff] %v5561_v3 }
 0x30a   :  { %7737 = vst [vmem:[#allocation69_spill] sm:$0xff] %v5551_v62  ;;  %3948 = vtanh.f32 %v5417_v37 }
 0x30b   :  { %v3937_v34 = vpop.eup %3936  ;;  %3684 = vset.pattern.permute.xlu1 %v7718_v19  ;;  %3950 = vtanh.f32 %v5460_v26 }
 0x30c   :  { %2167 = vperm.xlu0 %3693, %v5554_v6   ;;  %v2034_v8 = vmul.f32 %v5440_v5, %v3937_v34  ;;  %1095 = vperm.xlu1 %3684, %v5331_v11   ;;  %v5578_v52 = vpop.permute.xlu0 %1131  ;;  %3952 = vtanh.f32 %v5450_v15  ;;  %v3710_v15 = vld [vmem:[%s7463_s4 + $0x38] sm:$0xff]  }
 0x30d   :  { %v3939_v58 = vpop.eup %3938  ;;  %v5563_v51 = vpop.permute.xlu1 %1275  ;;  %7740 = vst [vmem:[#allocation72_spill] sm:$0xff] %v5578_v52  ;;  %3954 = vtanh.f32 %v5490_v39  ;;  %3578 = vmatprep.subr.bf16.mxu0 %v3710_v15 }
 0x30e   :  { %7739 = vst [vmem:[#allocation71_spill] sm:$0xff] %v5563_v51  ;;  %v5566_v62 = vadd.f32 %v5425_v45, %v2034_v8  ;;  %v2032_v22 = vmul.f32 %v5440_v5, %v3939_v58  ;;  %3579 = vmatpush3.bf16.msra.mxu0 %v3710_v15  ;;  %3956 = vtanh.f32 %v5484_v60  ;;  %v3712_v15 = vld [vmem:[%s7463_s4 + $0x28] sm:$0xff]  }
 0x30f   :  { %3958 = vtanh.f32 %v5511_v12 }
 0x310   :  { %2197 = vperm.xlu0 %3693, %v5566_v62   ;;  %1159 = vperm.xlu1 %3684, %v5338_v57   ;;  %v5573_v31 = vadd.f32 %v5425_v45, %v2032_v22  ;;  %3960 = vtanh.f32 %v5504_v29 }
 0x311   :  { %3962 = vtanh.f32 %v5535_v61 }
 0x312   :  { %v5576_v3 = vpop.permute.xlu1 %879  ;;  %3964 = vtanh.f32 %v5527_v42  ;;  %v3716_v42 = vld [vmem:[%s7463_s4 + $0x8] sm:$0xff]  }
 0x313   :  { %v3941_v34 = vpop.eup %3940 }
 0x314   :  { %v3943_v51 = vpop.eup %3942  ;;  %2187 = vperm.xlu0 %3693, %v5573_v31   ;;  %v2038_v8 = vmul.f32 %v5440_v5, %v3941_v34  ;;  %1087 = vperm.xlu1 %3684, %v5348_v21   ;;  %v5593_v34 = vpop.permute.xlu0 %899 }
 0x315   :  { %v3945_v37 = vpop.eup %3944  ;;  %v2013_v52 = vmul.f32 %v5440_v5, %v3943_v51  ;;  %7742 = vst [vmem:[#allocation74_spill] sm:$0xff] %v5593_v34 }
 0x316   :  { %v5584_v58 = vadd.f32 %v5425_v45, %v2038_v8  ;;  %v2036_v22 = vmul.f32 %v5440_v5, %v3945_v37  ;;  %v3947_v26 = vpop.eup %3946 }
 0x317   :  { %v5588_v9 = vpop.permute.xlu1 %1063  ;;  %v2019_v8 = vmul.f32 %v5440_v5, %v3947_v26  ;;  %v3949_v37 = vpop.eup %3948  ;;  %v5607_v51 = vadd.f32 %v5425_v45, %v2013_v52 }
 0x318   :  { %7741 = vst [vmem:[#allocation73_spill] sm:$0xff] %v5588_v9  ;;  %2217 = vperm.xlu0 %3693, %v5584_v58   ;;  %1151 = vperm.xlu1 %3684, %v5355_v0   ;;  %v5596_v38 = vadd.f32 %v5425_v45, %v2036_v22  ;;  %v3711_v22 = vld [vmem:[%s7463_s4 + $0x30] sm:$0xff]   ;;  %v2021_v26 = vmul.f32 %v5440_v5, %v3949_v37  ;;  %v3951_v52 = vpop.eup %3950 }
 0x319   :  { %v5616_v39 = vadd.f32 %v5425_v45, %v2019_v8  ;;  %3580 = vmatprep.subr.bf16.mxu0 %v3711_v22  ;;  %v2023_v8 = vmul.f32 %v5440_v5, %v3951_v52  ;;  %v3953_v37 = vpop.eup %3952 }
 0x31a   :  { %3581 = vmatpush3.bf16.msra.mxu0 %v3711_v22  ;;  %v5632_v60 = vadd.f32 %v5425_v45, %v2021_v26  ;;  %v2025_v26 = vmul.f32 %v5440_v5, %v3953_v37  ;;  %v3955_v52 = vpop.eup %3954  ;;  %v3576_v37 = vpop.f32.mrf.mxu1 }
 0x31b   :  { %v5603_v9 = vpop.permute.xlu1 %1127  ;;  %3582 = vmatprep.subr.bf16.mxu0 %v3712_v15  ;;  %v5646_v12 = vadd.f32 %v5425_v45, %v2023_v8  ;;  %v3957_v8 = vpop.eup %3956 }
 0x31c   :  { %7743 = vst [vmem:[#allocation75_spill] sm:$0xff] %v5603_v9  ;;  %2207 = vperm.xlu0 %3693, %v5596_v38   ;;  %3685 = vset.pattern.permute.xlu1 %v7717_v50  ;;  %v5619_v9 = vpop.permute.xlu0 %979  ;;  %v5655_v29 = vadd.f32 %v5425_v45, %v2025_v26  ;;  %v2029_v26 = vmul.f32 %v5440_v5, %v3957_v8  ;;  %v1964_v55 = vpop.f32.mrf.mxu1 }
 0x31d   :  { %2092 = vperm.xlu1 %3685, %v5607_v51   ;;  %7744 = vst [vmem:[#allocation76_spill] sm:$0xff] %v5619_v9  ;;  %v3713_v9 = vld [vmem:[%s7463_s4 + $0x20] sm:$0xff]   ;;  %3966 = vtanh.f32 %v1964_v55 }
 0x31e   :  { %3583 = vmatpush3.bf16.msra.mxu0 %v3712_v15  ;;  %v2027_v15 = vmul.f32 %v5440_v5, %v3955_v52  ;;  %v3715_v52 = vld [vmem:[%s7463_s4 + $0x10] sm:$0xff]   ;;  %v5686_v8 = vadd.f32 %v5425_v45, %v2029_v26  ;;  %v3577_v54 = vpop.f32.mrf.mxu1 }
 0x31f   :  { %3584 = vmatprep.subr.bf16.mxu0 %v3713_v9  ;;  %3968 = vtanh.f32 %v3577_v54 }
 0x320   :  { %3695 = vset.pattern.permute.xlu0 %v7718_v19  ;;  %v5622_v48 = vpop.permute.xlu1 %869  ;;  %v5639_v40 = vpop.permute.xlu0 %889  ;;  %v5669_v61 = vadd.f32 %v5425_v45, %v2027_v15 }
 0x321   :  { %7745 = vst [vmem:[#allocation77_spill] sm:$0xff] %v5622_v48  ;;  %2337 = vperm.xlu0 %3695, %v5616_v39   ;;  %3686 = vset.pattern.permute.xlu1 %v7718_v19  ;;  %7746 = vst [vmem:[#allocation78_spill] sm:$0xff] %v5639_v40 }
 0x322   :  { %2313 = vperm.xlu1 %3686, %v5607_v51   ;;  %3585 = vmatpush3.bf16.msra.mxu0 %v3713_v9 }
 0x325   :  { %2345 = vperm.xlu0 %3695, %v5632_v60   ;;  %v5641_v22 = vpop.permute.xlu1 %1055 }
 0x326   :  { %7747 = vst [vmem:[#allocation79_spill] sm:$0xff] %v5641_v22  ;;  %2305 = vperm.xlu1 %3686, %v5428_v32   ;;  %v5658_v22 = vpop.permute.xlu0 %969 }
 0x327   :  { %7749 = vst [vmem:[#allocation81_spill] sm:$0xff] %v5658_v22  ;;  %v3959_v22 = vpop.eup %3958 }
 0x328   :  { %v2031_v34 = vmul.f32 %v5440_v5, %v3959_v22  ;;  %v3961_v40 = vpop.eup %3960 }
 0x329   :  { %2353 = vperm.xlu0 %3695, %v5646_v12   ;;  %v5650_v35 = vpop.permute.xlu1 %1119  ;;  %v2033_v26 = vmul.f32 %v5440_v5, %v3961_v40  ;;  %v3963_v22 = vpop.eup %3962 }
 0x32a   :  { %7748 = vst [vmem:[#allocation80_spill] sm:$0xff] %v5650_v35  ;;  %3687 = vset.pattern.permute.xlu1 %v7717_v50  ;;  %v3714_v35 = vld [vmem:[%s7463_s4 + $0x18] sm:$0xff]   ;;  %v5681_v15 = vpop.permute.xlu0 %1091  ;;  %v5696_v55 = vadd.f32 %v5425_v45, %v2031_v34  ;;  %v2035_v34 = vmul.f32 %v5440_v5, %v3963_v22  ;;  %v3965_v40 = vpop.eup %3964 }
 0x32b   :  { %2097 = vperm.xlu1 %3687, %v5444_v13   ;;  %3586 = vmatprep.subr.bf16.mxu0 %v3714_v35  ;;  %7751 = vst [vmem:[#allocation83_spill] sm:$0xff] %v5681_v15  ;;  %v5706_v48 = vadd.f32 %v5425_v45, %v2033_v26  ;;  %v3967_v26 = vpop.eup %3966 }
 0x32c   :  { %3587 = vmatpush3.bf16.msra.mxu0 %v3714_v35 }
 0x32d   :  { %2361 = vperm.xlu0 %3695, %v5655_v29   ;;  %3588 = vmatprep.subr.bf16.mxu0 %v3715_v52 }
 0x32e   :  { %v5666_v9 = vpop.permute.xlu1 %894 }
 0x32f   :  { %7750 = vst [vmem:[#allocation82_spill] sm:$0xff] %v5666_v9  ;;  %3688 = vset.pattern.permute.xlu1 %v7718_v19  ;;  %v3717_v9 = vld [vmem:[%s7463_s4] sm:$0xff]  }
 0x330   :  { %2317 = vperm.xlu1 %3688, %v5444_v13   ;;  %3589 = vmatpush3.bf16.msra.mxu0 %v3715_v52  ;;  %v5699_v52 = vpop.permute.xlu0 %1155 }
 0x331   :  { %2369 = vperm.xlu0 %3695, %v5669_v61   ;;  %3590 = vmatprep.subr.bf16.mxu0 %v3716_v42  ;;  %7753 = vst [vmem:[#allocation85_spill] sm:$0xff] %v5699_v52  ;;  %v2037_v52 = vmul.f32 %v5440_v5, %v3965_v40 }
 0x332   :  { %v5683_v35 = vpop.permute.xlu1 %974 }
 0x333   :  { %7752 = vst [vmem:[#allocation84_spill] sm:$0xff] %v5683_v35  ;;  %v1967_v35 = vpop.f32.mrf.mxu1 }
 0x334   :  { %3689 = vset.pattern.permute.xlu1 %v7717_v50  ;;  %3591 = vmatpush3.bf16.msra.mxu0 %v3716_v42  ;;  %3970 = vtanh.f32 %v1967_v35  ;;  %v5712_v54 = vpop.permute.xlu0 %1083  ;;  %v2039_v35 = vmul.f32 %v5440_v5, %v3967_v26 }
 0x335   :  { %2377 = vperm.xlu0 %3695, %v5686_v8   ;;  %2087 = vperm.xlu1 %3689, %v5447_v27   ;;  %7756 = vst [vmem:[#allocation88_spill] sm:$0xff] %v5712_v54  ;;  %3972 = vtanh.f32 %v3576_v37 }
 0x336   :  { %3592 = vmatprep.subr.bf16.mxu0 %v3717_v9  ;;  %v5734_v37 = vadd.f32 %v5425_v45, %v2039_v35 }
 0x337   :  { %v5701_v15 = vpop.permute.xlu1 %1235 }
 0x338   :  { %7754 = vst [vmem:[#allocation86_spill] sm:$0xff] %v5701_v15  ;;  %3593 = vmatpush3.bf16.msra.mxu0 %v3717_v9  ;;  %v5716_v15 = vadd.f32 %v5425_v45, %v2035_v34  ;;  %v5724_v9 = vadd.f32 %v5425_v45, %v2037_v52  ;;  %v5727_v22 = vpop.permute.xlu0 %1147 }
 0x339   :  { %2385 = vperm.xlu0 %3695, %v5696_v55   ;;  %2112 = vperm.xlu1 %3689, %v5464_v14   ;;  %7758 = vst [vmem:[#allocation90_spill] sm:$0xff] %v5727_v22 }
 0x33b   :  { %v5709_v42 = vpop.permute.xlu1 %1299 }
 0x33c   :  { %7755 = vst [vmem:[#allocation87_spill] sm:$0xff] %v5709_v42  ;;  %v3969_v42 = vpop.eup %3968  ;;  %v5738_v52 = vpop.permute.xlu0 %919 }
 0x33d   :  { %2393 = vperm.xlu0 %3695, %v5706_v48   ;;  %2102 = vperm.xlu1 %3689, %v5481_v4   ;;  %v2042_v40 = vmul.f32 %v5440_v5, %v3969_v42  ;;  %7760 = vst [vmem:[#allocation92_spill] sm:$0xff] %v5738_v52 }
 0x33f   :  { %v5745_v22 = vadd.f32 %v5425_v45, %v2042_v40 }
 0x340   :  { %v5719_v14 = vpop.permute.xlu1 %884  ;;  %v5753_v52 = vpop.permute.xlu0 %999 }
 0x341   :  { %7757 = vst [vmem:[#allocation89_spill] sm:$0xff] %v5719_v14  ;;  %2401 = vperm.xlu0 %3695, %v5716_v15   ;;  %2117 = vperm.xlu1 %3689, %v5469_v30   ;;  %v3971_v54 = vpop.eup %3970  ;;  %7763 = vst [vmem:[#allocation95_spill] sm:$0xff] %v5753_v52 }
 0x342   :  { %v3973_v35 = vpop.eup %3972 }
 0x343   :  { %v2041_v40 = vmul.f32 %v5440_v5, %v3973_v35 }
 0x344   :  { %v5729_v34 = vpop.permute.xlu1 %964  ;;  %v5767_v14 = vpop.permute.xlu0 %909 }
 0x345   :  { %7759 = vst [vmem:[#allocation91_spill] sm:$0xff] %v5729_v34  ;;  %2409 = vperm.xlu0 %3695, %v5724_v9   ;;  %2107 = vperm.xlu1 %3689, %v5476_v43   ;;  %v2040_v34 = vmul.f32 %v5440_v5, %v3971_v54 }
 0x349   :  { %2417 = vperm.xlu0 %3695, %v5734_v37   ;;  %v5740_v26 = vpop.permute.xlu1 %1227  ;;  %3691 = vset.pattern.permute.xlu1 %v7718_v19 }
 0x34a   :  { %7761 = vst [vmem:[#allocation93_spill] sm:$0xff] %v5740_v26  ;;  %2325 = vperm.xlu1 %3691, %v5476_v43   ;;  %v5757_v26 = vadd.f32 %v5425_v45, %v2040_v34  ;;  %v5777_v34 = vpop.permute.xlu0 %989 }
 0x34d   :  { %3696 = vset.pattern.permute.xlu0 %v7717_v50  ;;  %v5749_v42 = vpop.permute.xlu1 %1291 }
 0x34e   :  { %7762 = vst [vmem:[#allocation94_spill] sm:$0xff] %v5749_v42  ;;  %2237 = vperm.xlu0 %3696, %v5745_v22   ;;  %3692 = vset.pattern.permute.xlu1 %v7717_v50  ;;  %v5765_v42 = vadd.f32 %v5425_v45, %v2041_v40 }
 0x34f   :  { %2132 = vperm.xlu1 %3692, %v5632_v60  }
 0x352   :  { %2227 = vperm.xlu0 %3696, %v5757_v26   ;;  %v5761_v54 = vpop.permute.xlu1 %1079 }
 0x353   :  { %7764 = vst [vmem:[#allocation96_spill] sm:$0xff] %v5761_v54  ;;  %2122 = vperm.xlu1 %3692, %v5616_v39  }
 0x356   :  { %3697 = vset.pattern.permute.xlu0 %v7718_v19  ;;  %v5770_v50 = vpop.permute.xlu1 %1143 }
 0x357   :  { %7765 = vst [vmem:[#allocation97_spill] sm:$0xff] %v5770_v50  ;;  %2425 = vperm.xlu0 %3697, %v5765_v42   ;;  %2152 = vperm.xlu1 %3692, %v5655_v29  }
 0x35a   :  { %v5774_v5 = vpop.permute.xlu1 %1071 }
 0x35b   :  { %7766 = vst [vmem:[#allocation98_spill] sm:$0xff] %v5774_v5  ;;  %3698 = vset.pattern.permute.xlu0 %v7726_v16  ;;  %2142 = vperm.xlu1 %3692, %v5646_v12  }
 0x35c   :  { %1195 = vperm.xlu0 %3698, %v5137_v18  }
 0x35e   :  { %v5781_v45 = vpop.permute.xlu1 %1135 }
 0x35f   :  { %7767 = vst [vmem:[#allocation99_spill] sm:$0xff] %v5781_v45  ;;  %2172 = vperm.xlu1 %3692, %v5686_v8   ;;  %v5785_v35 = vpop.permute.xlu0 %2082 }
 0x360   :  { %1207 = vperm.xlu0 %3698, %v5212_v36  }
 0x363   :  { %v5787_v40 = vpop.permute.xlu1 %914  ;;  %2162 = vperm.xlu1 %3692, %v5669_v61  }
 0x364   :  { %1215 = vperm.xlu0 %3698, %v5345_v20   ;;  %v5791_v5 = vpop.permute.xlu0 %2309 }
 0x365   :  { %7768 = vst [vmem:[#allocation100_spill] sm:$0xff] %v5791_v5 }
 0x367   :  { %v5793_v50 = vpop.permute.xlu1 %994  ;;  %2192 = vperm.xlu1 %3692, %v5706_v48  }
 0x368   :  { %1223 = vperm.xlu0 %3698, %v5320_v49   ;;  %v5797_v45 = vpop.permute.xlu0 %2329 }
 0x369   :  { %7769 = vst [vmem:[#allocation101_spill] sm:$0xff] %v5797_v45 }
 0x36b   :  { %2182 = vperm.xlu1 %3692, %v5696_v55  }
 0x36c   :  { %1231 = vperm.xlu0 %3698, %v5286_v25   ;;  %v5801_v54 = vpop.permute.xlu1 %1251  ;;  %v5803_v36 = vpop.permute.xlu0 %2321 }
 0x36d   :  { %7770 = vst [vmem:[#allocation102_spill] sm:$0xff] %v5801_v54  ;;  %7771 = vst [vmem:[#allocation103_spill] sm:$0xff] %v5803_v36 }
 0x36f   :  { %2212 = vperm.xlu1 %3692, %v5724_v9  }
 0x370   :  { %1239 = vperm.xlu0 %3698, %v5271_v7   ;;  %v5807_v5 = vpop.permute.xlu1 %1315 }
 0x371   :  { %7772 = vst [vmem:[#allocation104_spill] sm:$0xff] %v5807_v5 }
 0x372   :  { %v5809_v20 = vpop.permute.xlu0 %2137 }
 0x373   :  { %2202 = vperm.xlu1 %3692, %v5716_v15  }
 0x374   :  { %1247 = vperm.xlu0 %3698, %v5348_v21  }
 0x375   :  { %v5813_v45 = vpop.permute.xlu1 %904 }
 0x376   :  { %v5815_v49 = vpop.permute.xlu0 %2127 }
 0x377   :  { %2232 = vperm.xlu1 %3692, %v5765_v42  }
 0x378   :  { %1255 = vperm.xlu0 %3698, %v5331_v11  }
 0x379   :  { %v5819_v54 = vpop.permute.xlu1 %984 }
 0x37a   :  { %v5821_v36 = vpop.permute.xlu0 %2157 }
 0x37b   :  { %2222 = vperm.xlu1 %3692, %v5734_v37  }
 0x37c   :  { %1263 = vperm.xlu0 %3698, %v5180_v1  }
 0x37e   :  { %v5825_v5 = vpop.permute.xlu1 %1243  ;;  %v5827_v7 = vpop.permute.xlu0 %2147 }
 0x37f   :  { %7773 = vst [vmem:[#allocation105_spill] sm:$0xff] %v5825_v5  ;;  %3694 = vset.pattern.permute.xlu1 %v7718_v19 }
 0x380   :  { %1271 = vperm.xlu0 %3698, %v5170_v24   ;;  %2333 = vperm.xlu1 %3694, %v5469_v30  }
 0x382   :  { %v5832_v21 = vpop.permute.xlu1 %1307 }
 0x383   :  { %7774 = vst [vmem:[#allocation106_spill] sm:$0xff] %v5832_v21  ;;  %v5834_v11 = vpop.permute.xlu0 %2177 }
 0x384   :  { %1279 = vperm.xlu0 %3698, %v5237_v56   ;;  %2341 = vperm.xlu1 %3694, %v5507_v2  }
 0x387   :  { %v5838_v25 = vpop.permute.xlu0 %2167  ;;  %v5840_v1 = vpop.permute.xlu1 %1095 }
 0x388   :  { %7775 = vst [vmem:[#allocation107_spill] sm:$0xff] %v5840_v1  ;;  %1287 = vperm.xlu0 %3698, %v5230_v41   ;;  %2349 = vperm.xlu1 %3694, %v5494_v17  }
 0x38b   :  { %v5844_v19 = vpop.permute.xlu0 %2197  ;;  %v5846_v5 = vpop.permute.xlu1 %1159 }
 0x38c   :  { %7776 = vst [vmem:[#allocation108_spill] sm:$0xff] %v5846_v5  ;;  %1295 = vperm.xlu0 %3698, %v5293_v23   ;;  %2357 = vperm.xlu1 %3694, %v5532_v46  }
 0x38f   :  { %v5850_v21 = vpop.permute.xlu0 %2187  ;;  %v5852_v56 = vpop.permute.xlu1 %1087 }
 0x390   :  { %7777 = vst [vmem:[#allocation109_spill] sm:$0xff] %v5852_v56  ;;  %1303 = vperm.xlu0 %3698, %v5279_v10   ;;  %2365 = vperm.xlu1 %3694, %v5520_v59  }
 0x393   :  { %v5856_v1 = vpop.permute.xlu0 %2217  ;;  %v5858_v41 = vpop.permute.xlu1 %1151 }
 0x394   :  { %7778 = vst [vmem:[#allocation110_spill] sm:$0xff] %v5858_v41  ;;  %1311 = vperm.xlu0 %3698, %v5355_v0   ;;  %2373 = vperm.xlu1 %3694, %v5554_v6  }
 0x397   :  { %v5862_v5 = vpop.permute.xlu0 %2207 }
 0x398   :  { %1319 = vperm.xlu0 %3698, %v5338_v57   ;;  %v2093_v23 = vpop.permute.xlu1 %2092  ;;  %2381 = vperm.xlu1 %3694, %v5543_v47  }
 0x39c   :  { %2497 = vperm.xlu0 %3698, %v5428_v32   ;;  %v5867_v56 = vpop.permute.xlu0 %2337  ;;  %2389 = vperm.xlu1 %3694, %v5573_v31  }
 0x39d   :  { %7779 = vst [vmem:[#allocation111_spill] sm:$0xff] %v5867_v56  ;;  %v5870_v10 = vpop.permute.xlu1 %2313 }
 0x39e   :  { %7780 = vst [vmem:[#allocation112_spill] sm:$0xff] %v5870_v10 }
 0x3a0   :  { %2509 = vperm.xlu0 %3698, %v5444_v13   ;;  %v5873_v41 = vpop.permute.xlu0 %2345  ;;  %2397 = vperm.xlu1 %3694, %v5566_v62  }
 0x3a1   :  { %7781 = vst [vmem:[#allocation113_spill] sm:$0xff] %v5873_v41  ;;  %v5876_v0 = vpop.permute.xlu1 %2305 }
 0x3a2   :  { %7782 = vst [vmem:[#allocation114_spill] sm:$0xff] %v5876_v0 }
 0x3a4   :  { %2517 = vperm.xlu0 %3698, %v5476_v43   ;;  %v5879_v57 = vpop.permute.xlu0 %2353  ;;  %2405 = vperm.xlu1 %3694, %v5596_v38  }
 0x3a5   :  { %7783 = vst [vmem:[#allocation115_spill] sm:$0xff] %v5879_v57  ;;  %v5895_v57 = vld [vmem:[%s7457_s0 + $0x38] sm:$0xff] }
 0x3a6   :  { %v2098_v24 = vpop.permute.xlu1 %2097  ;;  %7787 = vst [vmem:[#allocation119_spill] sm:$0xff] %v5895_v57 }
 0x3a7   :  { %v2243_v0 = vmul.f32 %v5895_v57, %v2098_v24  ;;  %v5918_v57 = vld [vmem:[%s7457_s0 + $0x28] sm:$0xff] }
 0x3a8   :  { %2525 = vperm.xlu0 %3698, %v5469_v30   ;;  %v5883_v56 = vpop.permute.xlu0 %2361  ;;  %2413 = vperm.xlu1 %3694, %v5584_v58   ;;  %7791 = vst [vmem:[#allocation123_spill] sm:$0xff] %v5918_v57  ;;  %v2242_v30 = vmul.f32 %v5918_v57, %v2093_v23  ;;  %v5939_v23 = vld [vmem:[%s7457_s0 + $0x18] sm:$0xff] }
 0x3a9   :  { %7784 = vst [vmem:[#allocation116_spill] sm:$0xff] %v5883_v56  ;;  %v5901_v56 = vld [vmem:[%s7457_s0 + $0x8] sm:$0xff]  ;;  %7794 = vst [vmem:[#allocation126_spill] sm:$0xff] %v5939_v23 }
 0x3aa   :  { %7788 = vst [vmem:[#allocation120_spill] sm:$0xff] %v5901_v56 }
 0x3ab   :  { %v5886_v10 = vpop.permute.xlu1 %2317 }
 0x3ac   :  { %7785 = vst [vmem:[#allocation117_spill] sm:$0xff] %v5886_v10  ;;  %2533 = vperm.xlu0 %3698, %v5507_v2   ;;  %v5889_v41 = vpop.permute.xlu0 %2369  ;;  %2421 = vperm.xlu1 %3694, %v5757_v26   ;;  %v2240_v10 = vmul.f32 %v5901_v56, %v5785_v35  ;;  %v5911_v2 = vld [vmem:[%s7457_s0 + $0x30] sm:$0xff] }
 0x3ad   :  { %7786 = vst [vmem:[#allocation118_spill] sm:$0xff] %v5889_v41  ;;  %7790 = vst [vmem:[#allocation122_spill] sm:$0xff] %v5911_v2  ;;  %v1005_v24 = vmul.f32 %v5911_v2, %v5400_v44  ;;  %v5932_v44 = vld [vmem:[%s7457_s0 + $0x10] sm:$0xff] }
 0x3ae   :  { %7793 = vst [vmem:[#allocation125_spill] sm:$0xff] %v5932_v44  ;;  %v1003_v2 = vmul.f32 %v5932_v44, %v5415_v33 }
 0x3b0   :  { %2541 = vperm.xlu0 %3698, %v5494_v17   ;;  %v5906_v41 = vpop.permute.xlu0 %2377  ;;  %v2088_v35 = vpop.permute.xlu1 %2087  ;;  %2429 = vperm.xlu1 %3694, %v5745_v22   ;;  %v5945_v17 = vld [vmem:[%s7457_s0 + $0x20] sm:$0xff] }
 0x3b1   :  { %7789 = vst [vmem:[#allocation121_spill] sm:$0xff] %v5906_v41  ;;  %v5925_v41 = vld [vmem:[%s7457_s0] sm:$0xff]  ;;  %v2241_v57 = vmul.f32 %v5939_v23, %v2088_v35 }
 0x3b2   :  { %7792 = vst [vmem:[#allocation124_spill] sm:$0xff] %v5925_v41  ;;  %v1002_v56 = vmul.f32 %v5925_v41, %v5378_v63  ;;  %v1004_v63 = vmul.f32 %v5945_v17, %v5360_v28  ;;  %v2275_v41 = vadd.f32 %v2243_v0, %v1005_v24 }
 0x3b3   :  { %v2273_v13 = vadd.f32 %v2241_v57, %v1003_v2  ;;  %v5971_v57 = vld [vmem:[%s7457_s0 + $0x48] sm:$0xff] }
 0x3b4   :  { %v2272_v43 = vadd.f32 %v2240_v10, %v1002_v56  ;;  %2549 = vperm.xlu0 %3698, %v5532_v46   ;;  %v5950_v33 = vpop.permute.xlu0 %2385  ;;  %v2274_v44 = vadd.f32 %v2242_v30, %v1004_v63  ;;  %v2113_v32 = vpop.permute.xlu1 %2112  ;;  %3699 = vset.pattern.permute.xlu1 %v7726_v16  ;;  %7799 = vst [vmem:[#allocation131_spill] sm:$0xff] %v5971_v57  ;;  %v5980_v30 = vld [vmem:[%s7457_s0 + $0x70] sm:$0xff]  ;;  %v5987_v2 = vld [vmem:[%s7457_s0 + $0x68] sm:$0xff] }
 0x3b5   :  { %7795 = vst [vmem:[#allocation127_spill] sm:$0xff] %v5950_v33  ;;  %2501 = vperm.xlu1 %3699, %v5447_v27   ;;  %7801 = vst [vmem:[#allocation133_spill] sm:$0xff] %v5980_v30  ;;  %v2246_v24 = vmul.f32 %v5987_v2, %v2113_v32  ;;  %v6007_v32 = vld [vmem:[%s7457_s0 + $0x58] sm:$0xff] }
 0x3b6   :  { %v2688_v35 = vpack.c.bf16 %v2273_v13, %v2272_v43  ;;  %v2689_v23 = vpack.c.bf16 %v2275_v41, %v2274_v44  ;;  %v5965_v41 = vld [vmem:[%s7457_s0 + $0x78] sm:$0xff]  ;;  %v1009_v13 = vmul.f32 %v5980_v30, %v5576_v3  ;;  %v6000_v3 = vld [vmem:[%s7457_s0 + $0x50] sm:$0xff] }
 0x3b7   :  { %7798 = vst [vmem:[#allocation130_spill] sm:$0xff] %v5965_v41  ;;  %7803 = vst [vmem:[#allocation135_spill] sm:$0xff] %v6000_v3 }
 0x3b8   :  { %3594 = vmatprep.mubr.bf16.mxu0 %v2688_v35  ;;  %2557 = vperm.xlu0 %3698, %v5520_v59   ;;  %v5955_v52 = vpop.permute.xlu0 %2393  ;;  %v2103_v0 = vpop.permute.xlu1 %2102  ;;  %v7804_v35 = vld [vmem:[#allocation77_spill] sm:$0xff] }
 0x3b9   :  { %7796 = vst [vmem:[#allocation128_spill] sm:$0xff] %v5955_v52  ;;  %3595 = vmatmul.mubr.bf16.vlgmr.msra.gmra.mxu0 %v2689_v23  ;;  %2505 = vperm.xlu1 %3699, %v5607_v51   ;;  %v2244_v28 = vmul.f32 %v5971_v57, %v2103_v0  ;;  %v5993_v23 = vld [vmem:[%s7457_s0 + $0x40] sm:$0xff]  ;;  %v1007_v0 = vmul.f32 %v6000_v3, %v7804_v35  ;;  %7805 = vst [vmem:[#allocation77_spill] sm:$0xff] %v6007_v32 }
 0x3ba   :  { %7802 = vst [vmem:[#allocation134_spill] sm:$0xff] %v5993_v23  ;;  %v1006_v63 = vmul.f32 %v5993_v23, %v5525_v53  ;;  %v6014_v53 = vld [vmem:[%s7457_s0 + $0x60] sm:$0xff] }
 0x3bc   :  { %2565 = vperm.xlu0 %3698, %v5554_v6   ;;  %v5959_v56 = vpop.permute.xlu0 %2401  ;;  %v2118_v10 = vpop.permute.xlu1 %2117  ;;  %v2276_v30 = vadd.f32 %v2244_v28, %v1006_v63  ;;  %v6055_v63 = vld [vmem:[%s7457_s0 + $0xb8] sm:$0xff] }
 0x3bd   :  { %7797 = vst [vmem:[#allocation129_spill] sm:$0xff] %v5959_v56  ;;  %2513 = vperm.xlu1 %3699, %v5481_v4   ;;  %v2247_v16 = vmul.f32 %v5965_v41, %v2118_v10  ;;  %v7808_v56 = vld [vmem:[#allocation56_spill] sm:$0xff] }
 0x3be   :  { %v1008_v52 = vmul.f32 %v6014_v53, %v7808_v56 }
 0x3bf   :  { %v2279_v33 = vadd.f32 %v2247_v16, %v1009_v13  ;;  %v7814_v13 = vld [vmem:[#allocation82_spill] sm:$0xff] }
 0x3c0   :  { %2573 = vperm.xlu0 %3698, %v5543_v47   ;;  %v5975_v43 = vpop.permute.xlu0 %2409  ;;  %v2108_v44 = vpop.permute.xlu1 %2107  ;;  %v2278_v41 = vadd.f32 %v2246_v24, %v1008_v52  ;;  %v6032_v52 = vld [vmem:[%s7457_s0 + $0xa8] sm:$0xff]  ;;  %7815 = vst [vmem:[#allocation82_spill] sm:$0xff] %v6055_v63 }
 0x3c1   :  { %7800 = vst [vmem:[#allocation132_spill] sm:$0xff] %v5975_v43  ;;  %v2245_v10 = vmul.f32 %v6007_v32, %v2108_v44  ;;  %v7806_v43 = vld [vmem:[#allocation54_spill] sm:$0xff]  ;;  %7811 = vst [vmem:[#allocation137_spill] sm:$0xff] %v6032_v52 }
 0x3c2   :  { %2521 = vperm.xlu1 %3699, %v7806_v43   ;;  %7807 = vst [vmem:[#allocation54_spill] sm:$0xff] %v6014_v53  ;;  %v2691_v32 = vpack.c.bf16 %v2279_v33, %v2278_v41  ;;  %v6040_v33 = vld [vmem:[%s7457_s0 + $0x98] sm:$0xff] }
 0x3c3   :  { %v2277_v35 = vadd.f32 %v2245_v10, %v1007_v0  ;;  %7812 = vst [vmem:[#allocation138_spill] sm:$0xff] %v6040_v33  ;;  %v2249_v41 = vmul.f32 %v6040_v33, %v5815_v49  ;;  %v2251_v0 = vmul.f32 %v6055_v63, %v5809_v20  ;;  %v6062_v49 = vld [vmem:[%s7457_s0 + $0x90] sm:$0xff]  ;;  %v7817_v10 = vld [vmem:[#allocation78_spill] sm:$0xff]  ;;  %v6076_v20 = vld [vmem:[%s7457_s0 + $0x88] sm:$0xff] }
 0x3c4   :  { %2581 = vperm.xlu0 %3698, %v5573_v31   ;;  %v6019_v3 = vpop.permute.xlu0 %2417  ;;  %7816 = vst [vmem:[#allocation140_spill] sm:$0xff] %v6062_v49  ;;  %v7822_v33 = vld [vmem:[#allocation74_spill] sm:$0xff] }
 0x3c5   :  { %7809 = vst [vmem:[#allocation56_spill] sm:$0xff] %v6019_v3  ;;  %v6021_v23 = vpop.permute.xlu1 %2325  ;;  %v2690_v44 = vpack.c.bf16 %v2277_v35, %v2276_v30  ;;  %v6048_v30 = vld [vmem:[%s7457_s0 + $0xa0] sm:$0xff]  ;;  %v1011_v35 = vmul.f32 %v6062_v49, %v7817_v10  ;;  %v6083_v10 = vld [vmem:[%s7457_s0 + $0xb0] sm:$0xff] }
 0x3c6   :  { %7810 = vst [vmem:[#allocation136_spill] sm:$0xff] %v6021_v23  ;;  %2529 = vperm.xlu1 %3699, %v5616_v39   ;;  %7813 = vst [vmem:[#allocation139_spill] sm:$0xff] %v6048_v30  ;;  %v1012_v24 = vmul.f32 %v6048_v30, %v7814_v13  ;;  %v1013_v63 = vmul.f32 %v6083_v10, %v7822_v33 }
 0x3c7   :  { %3598 = vmatprep.mubr.bf16.mxu0 %v2690_v44  ;;  %v6069_v44 = vld [vmem:[%s7457_s0 + $0x80] sm:$0xff]  ;;  %7821 = vst [vmem:[#allocation141_spill] sm:$0xff] %v6083_v10 }
 0x3c8   :  { %2589 = vperm.xlu0 %3698, %v5566_v62   ;;  %3599 = vmatmul.mubr.bf16.gmra.mxu0 %v2691_v32  ;;  %7818 = vst [vmem:[#allocation78_spill] sm:$0xff] %v6069_v44 }
 0x3c9   :  { %v6025_v57 = vpop.permute.xlu0 %2237 }
 0x3ca   :  { %2537 = vperm.xlu1 %3699, %v5632_v60   ;;  %v2133_v56 = vpop.permute.xlu1 %2132 }
 0x3cb   :  { %v2250_v16 = vmul.f32 %v6032_v52, %v2133_v56  ;;  %v7819_v56 = vld [vmem:[#allocation89_spill] sm:$0xff]  ;;  %v2281_v52 = vadd.f32 %v2249_v41, %v1011_v35  ;;  %v6138_v35 = vld [vmem:[%s7457_s0 + $0xc8] sm:$0xff] }
 0x3cc   :  { %2597 = vperm.xlu0 %3698, %v5596_v38   ;;  %v1010_v13 = vmul.f32 %v6069_v44, %v7819_v56  ;;  %7820 = vst [vmem:[#allocation89_spill] sm:$0xff] %v6076_v20  ;;  %v2283_v44 = vadd.f32 %v2251_v0, %v1013_v63  ;;  %v6124_v0 = vld [vmem:[%s7457_s0 + $0xd0] sm:$0xff]  ;;  %7829 = vst [vmem:[#allocation147_spill] sm:$0xff] %v6138_v35 }
 0x3cd   :  { %v6035_v28 = vpop.permute.xlu0 %2227  ;;  %v2282_v49 = vadd.f32 %v2250_v16, %v1012_v24  ;;  %7828 = vst [vmem:[#allocation146_spill] sm:$0xff] %v6124_v0 }
 0x3ce   :  { %2545 = vperm.xlu1 %3699, %v5646_v12   ;;  %v2123_v32 = vpop.permute.xlu1 %2122 }
 0x3cf   :  { %v2248_v3 = vmul.f32 %v6076_v20, %v2123_v32  ;;  %v6094_v20 = vld [vmem:[%s7457_s0 + $0xe8] sm:$0xff]  ;;  %v2693_v33 = vpack.c.bf16 %v2283_v44, %v2282_v49  ;;  %v6131_v49 = vld [vmem:[%s7457_s0 + $0xc0] sm:$0xff] }
 0x3d0   :  { %2605 = vperm.xlu0 %3698, %v5584_v58   ;;  %7824 = vst [vmem:[#allocation142_spill] sm:$0xff] %v6094_v20 }
 0x3d1   :  { %v2280_v56 = vadd.f32 %v2248_v3, %v1010_v13  ;;  %v6100_v3 = vld [vmem:[%s7457_s0 + $0xd8] sm:$0xff]  ;;  %v7831_v13 = vld [vmem:[#allocation92_spill] sm:$0xff] }
 0x3d2   :  { %2553 = vperm.xlu1 %3699, %v5655_v29   ;;  %v6088_v23 = vpop.permute.xlu0 %2425  ;;  %v2153_v30 = vpop.permute.xlu1 %2152  ;;  %7825 = vst [vmem:[#allocation143_spill] sm:$0xff] %v6100_v3  ;;  %v2253_v16 = vmul.f32 %v6100_v3, %v5827_v7 }
 0x3d3   :  { %7823 = vst [vmem:[#allocation74_spill] sm:$0xff] %v6088_v23  ;;  %v2692_v32 = vpack.c.bf16 %v2281_v52, %v2280_v56  ;;  %v2254_v53 = vmul.f32 %v6094_v20, %v2153_v30  ;;  %v6108_v52 = vld [vmem:[%s7457_s0 + $0xe0] sm:$0xff]  ;;  %v6115_v30 = vld [vmem:[%s7457_s0 + $0xf8] sm:$0xff]  ;;  %v6156_v20 = vld [vmem:[%s7457_s0 + $0x128] sm:$0xff] }
 0x3d4   :  { %2613 = vperm.xlu0 %3698, %v5757_v26   ;;  %v1016_v41 = vmul.f32 %v6108_v52, %v5787_v40  ;;  %7826 = vst [vmem:[#allocation144_spill] sm:$0xff] %v6115_v30  ;;  %v2255_v24 = vmul.f32 %v6115_v30, %v5821_v36  ;;  %v1015_v40 = vmul.f32 %v6124_v0, %v5767_v14  ;;  %v6145_v14 = vld [vmem:[%s7457_s0 + $0xf0] sm:$0xff]  ;;  %7833 = vst [vmem:[#allocation149_spill] sm:$0xff] %v6156_v20 }
 0x3d5   :  { %3602 = vmatprep.mubr.bf16.mxu0 %v2692_v32  ;;  %v1014_v36 = vmul.f32 %v6131_v49, %v5813_v45  ;;  %7830 = vst [vmem:[#allocation148_spill] sm:$0xff] %v6145_v14  ;;  %v1017_v56 = vmul.f32 %v6145_v14, %v7831_v13 }
 0x3d6   :  { %2561 = vperm.xlu1 %3699, %v5669_v61   ;;  %v2143_v7 = vpop.permute.xlu1 %2142  ;;  %3603 = vmatmul.mubr.bf16.gmra.mxu0 %v2693_v33  ;;  %v2286_v32 = vadd.f32 %v2254_v53, %v1016_v41  ;;  %v2285_v33 = vadd.f32 %v2253_v16, %v1015_v40  ;;  %v7834_v53 = vld [vmem:[#allocation3_spill] sm:$0xff]  ;;  %v6163_v41 = vld [vmem:[%s7457_s0 + $0x118] sm:$0xff]  ;;  %v6171_v40 = vld [vmem:[%s7457_s0 + $0x120] sm:$0xff] }
 0x3d7   :  { %v6119_v63 = vpop.permute.xlu0 %1195  ;;  %v2252_v44 = vmul.f32 %v6138_v35, %v2143_v7  ;;  %v2287_v23 = vadd.f32 %v2255_v24, %v1017_v56  ;;  %v7579_v7 = vmov 3   ;;  %7835 = vst [vmem:[#allocation3_spill] sm:$0xff] %v6163_v41  ;;  %v2257_v24 = vmul.f32 %v6163_v41, %v5838_v25  ;;  %v7843_v41 = vld [vmem:[#allocation11_spill] sm:$0xff] }
 0x3d8   :  { %7827 = vst [vmem:[#allocation145_spill] sm:$0xff] %v6119_v63  ;;  %2621 = vperm.xlu0 %3698, %v5745_v22  }
 0x3d9   :  { %v2284_v45 = vadd.f32 %v2252_v44, %v1014_v36  ;;  %v2695_v16 = vpack.c.bf16 %v2287_v23, %v2286_v32  ;;  %v6178_v23 = vld [vmem:[%s7457_s0 + $0x138] sm:$0xff]  ;;  %v7839_v32 = vld [vmem:[#allocation38_spill] sm:$0xff] }
 0x3da   :  { %2569 = vperm.xlu1 %3699, %v5686_v8   ;;  %v2173_v3 = vpop.permute.xlu1 %2172  ;;  %v2259_v44 = vmul.f32 %v6178_v23, %v5834_v11 }
 0x3db   :  { %v6150_v30 = vpop.permute.xlu0 %1207  ;;  %v2694_v0 = vpack.c.bf16 %v2285_v33, %v2284_v45  ;;  %v2258_v13 = vmul.f32 %v6156_v20, %v2173_v3  ;;  %v7836_v3 = vld [vmem:[#allocation33_spill] sm:$0xff]  ;;  %v6194_v45 = vld [vmem:[%s7457_s0 + $0x110] sm:$0xff] }
 0x3dc   :  { %7832 = vst [vmem:[#allocation92_spill] sm:$0xff] %v6150_v30  ;;  %3701 = vset.pattern.permute.xlu0 %v7579_v7  ;;  %v1020_v36 = vmul.f32 %v6171_v40, %v7836_v3  ;;  %7837 = vst [vmem:[#allocation33_spill] sm:$0xff] %v6178_v23  ;;  %v6207_v7 = vld [vmem:[%s7457_s0 + $0x130] sm:$0xff] }
 0x3dd   :  { %2941 = vperm.xlu0 %3701, %v7834_v53   ;;  %3606 = vmatprep.mubr.bf16.mxu0 %v2694_v0  ;;  %v6187_v0 = vld [vmem:[%s7457_s0 + $0x100] sm:$0xff]  ;;  %v7840_v53 = vld [vmem:[#allocation43_spill] sm:$0xff] }
 0x3de   :  { %2577 = vperm.xlu1 %3699, %v5696_v55   ;;  %v2163_v25 = vpop.permute.xlu1 %2162  ;;  %3607 = vmatmul.mubr.bf16.gmra.mxu0 %v2695_v16  ;;  %v1018_v33 = vmul.f32 %v6187_v0, %v7839_v32  ;;  %v1019_v11 = vmul.f32 %v6194_v45, %v7840_v53  ;;  %v6201_v16 = vld [vmem:[%s7457_s0 + $0x108] sm:$0xff]  ;;  %v7842_v32 = vld [vmem:[#allocation41_spill] sm:$0xff]  ;;  %v2290_v30 = vadd.f32 %v2258_v13, %v1020_v36  ;;  %v6233_v36 = vld [vmem:[%s7457_s0 + $0x160] sm:$0xff] }
 0x3df   :  { %v6182_v56 = vpop.permute.xlu0 %1215  ;;  %7841 = vst [vmem:[#allocation38_spill] sm:$0xff] %v6201_v16  ;;  %v2256_v3 = vmul.f32 %v6201_v16, %v2163_v25  ;;  %v6218_v16 = vld [vmem:[%s7457_s0 + $0x168] sm:$0xff] }
 0x3e0   :  { %7838 = vst [vmem:[#allocation150_spill] sm:$0xff] %v6182_v56  ;;  %v1021_v56 = vmul.f32 %v6207_v7, %v7842_v32  ;;  %v2289_v23 = vadd.f32 %v2257_v24, %v1019_v11  ;;  %7845 = vst [vmem:[#allocation41_spill] sm:$0xff] %v6218_v16  ;;  %v7846_v32 = vld [vmem:[#allocation9_spill] sm:$0xff] }
 0x3e1   :  { %2953 = vperm.xlu0 %3701, %v7843_v41   ;;  %v2288_v53 = vadd.f32 %v2256_v3, %v1018_v33  ;;  %v6225_v41 = vld [vmem:[%s7457_s0 + $0x158] sm:$0xff]  ;;  %v7852_v33 = vld [vmem:[#allocation64_spill] sm:$0xff]  ;;  %v6256_v3 = vld [vmem:[%s7457_s0 + $0x140] sm:$0xff] }
 0x3e2   :  { %2585 = vperm.xlu1 %3699, %v5706_v48   ;;  %v2291_v20 = vadd.f32 %v2259_v44, %v1021_v56  ;;  %v2193_v35 = vpop.permute.xlu1 %2192  ;;  %7847 = vst [vmem:[#allocation11_spill] sm:$0xff] %v6225_v41  ;;  %v2261_v24 = vmul.f32 %v6225_v41, %v5850_v21  ;;  %v6249_v56 = vld [vmem:[%s7457_s0 + $0x150] sm:$0xff]  ;;  %v7857_v41 = vld [vmem:[#allocation17_spill] sm:$0xff] }
 0x3e3   :  { %v6213_v14 = vpop.permute.xlu0 %1223  ;;  %v2696_v25 = vpack.c.bf16 %v2289_v23, %v2288_v53  ;;  %v2262_v10 = vmul.f32 %v6218_v16, %v2193_v35  ;;  %v7848_v35 = vld [vmem:[#allocation59_spill] sm:$0xff]  ;;  %7851 = vst [vmem:[#allocation151_spill] sm:$0xff] %v6249_v56  ;;  %v1023_v11 = vmul.f32 %v6249_v56, %v7852_v33 }
 0x3e4   :  { %7844 = vst [vmem:[#allocation43_spill] sm:$0xff] %v6213_v14  ;;  %v2697_v13 = vpack.c.bf16 %v2291_v20, %v2290_v30  ;;  %v1024_v23 = vmul.f32 %v6233_v36, %v7848_v35  ;;  %v6240_v20 = vld [vmem:[%s7457_s0 + $0x178] sm:$0xff]  ;;  %v7853_v53 = vld [vmem:[#allocation67_spill] sm:$0xff] }
 0x3e5   :  { %2961 = vperm.xlu0 %3701, %v7846_v32   ;;  %3610 = vmatprep.mubr.bf16.mxu0 %v2696_v25  ;;  %7849 = vst [vmem:[#allocation9_spill] sm:$0xff] %v6240_v20  ;;  %v2263_v30 = vmul.f32 %v6240_v20, %v5844_v19  ;;  %v1022_v19 = vmul.f32 %v6256_v3, %v7853_v53  ;;  %v6263_v25 = vld [vmem:[%s7457_s0 + $0x148] sm:$0xff]  ;;  %v7856_v35 = vld [vmem:[#allocation61_spill] sm:$0xff] }
 0x3e6   :  { %2593 = vperm.xlu1 %3699, %v5716_v15   ;;  %v2183_v21 = vpop.permute.xlu1 %2182  ;;  %3611 = vmatmul.mubr.bf16.gmra.mxu0 %v2697_v13  ;;  %7854 = vst [vmem:[#allocation64_spill] sm:$0xff] %v6263_v25  ;;  %v6269_v13 = vld [vmem:[%s7457_s0 + $0x170] sm:$0xff]  ;;  %v2293_v14 = vadd.f32 %v2261_v24, %v1023_v11 }
 0x3e7   :  { %v6244_v44 = vpop.permute.xlu0 %1231  ;;  %v2260_v32 = vmul.f32 %v6263_v25, %v2183_v21  ;;  %7855 = vst [vmem:[#allocation67_spill] sm:$0xff] %v6269_v13  ;;  %v1025_v33 = vmul.f32 %v6269_v13, %v7856_v35  ;;  %v6280_v25 = vld [vmem:[%s7457_s0 + $0x1a8] sm:$0xff]  ;;  %v6311_v11 = vld [vmem:[%s7457_s0 + $0x190] sm:$0xff] }
 0x3e8   :  { %7850 = vst [vmem:[#allocation59_spill] sm:$0xff] %v6244_v44  ;;  %v2294_v44 = vadd.f32 %v2262_v10, %v1024_v23  ;;  %7859 = vst [vmem:[#allocation17_spill] sm:$0xff] %v6280_v25  ;;  %v7860_v35 = vld [vmem:[#allocation15_spill] sm:$0xff] }
 0x3e9   :  { %2969 = vperm.xlu0 %3701, %v7857_v41   ;;  %v2292_v53 = vadd.f32 %v2260_v32, %v1022_v19  ;;  %v2295_v20 = vadd.f32 %v2263_v30, %v1025_v33  ;;  %v6287_v41 = vld [vmem:[%s7457_s0 + $0x198] sm:$0xff]  ;;  %7865 = vst [vmem:[#allocation153_spill] sm:$0xff] %v6311_v11  ;;  %v6318_v33 = vld [vmem:[%s7457_s0 + $0x180] sm:$0xff] }
 0x3ea   :  { %2601 = vperm.xlu1 %3699, %v5724_v9   ;;  %v2213_v16 = vpop.permute.xlu1 %2212  ;;  %7861 = vst [vmem:[#allocation15_spill] sm:$0xff] %v6287_v41  ;;  %v2265_v24 = vmul.f32 %v6287_v41, %v5862_v5  ;;  %v7866_v19 = vld [vmem:[#allocation81_spill] sm:$0xff] }
 0x3eb   :  { %v6275_v56 = vpop.permute.xlu0 %1239  ;;  %v2698_v21 = vpack.c.bf16 %v2293_v14, %v2292_v53  ;;  %v2266_v63 = vmul.f32 %v6280_v25, %v2213_v16  ;;  %v2699_v10 = vpack.c.bf16 %v2295_v20, %v2294_v44  ;;  %v6295_v14 = vld [vmem:[%s7457_s0 + $0x1a0] sm:$0xff]  ;;  %v7862_v16 = vld [vmem:[#allocation84_spill] sm:$0xff]  ;;  %v6302_v20 = vld [vmem:[%s7457_s0 + $0x1b8] sm:$0xff]  ;;  %v1027_v32 = vmul.f32 %v6311_v11, %v7866_v19 }
 0x3ec   :  { %7858 = vst [vmem:[#allocation61_spill] sm:$0xff] %v6275_v56  ;;  %v1028_v23 = vmul.f32 %v6295_v14, %v7862_v16  ;;  %7863 = vst [vmem:[#allocation84_spill] sm:$0xff] %v6302_v20  ;;  %v2267_v30 = vmul.f32 %v6302_v20, %v5856_v1  ;;  %v7867_v53 = vld [vmem:[#allocation91_spill] sm:$0xff]  ;;  %v7870_v16 = vld [vmem:[#allocation76_spill] sm:$0xff] }
 0x3ed   :  { %2977 = vperm.xlu0 %3701, %v7860_v35   ;;  %3614 = vmatprep.mubr.bf16.mxu0 %v2698_v21  ;;  %v1026_v1 = vmul.f32 %v6318_v33, %v7867_v53  ;;  %v6325_v21 = vld [vmem:[%s7457_s0 + $0x188] sm:$0xff]  ;;  %v7871_v56 = vld [vmem:[#allocation25_spill] sm:$0xff]  ;;  %v2297_v41 = vadd.f32 %v2265_v24, %v1027_v32  ;;  %v6374_v32 = vld [vmem:[%s7457_s0 + $0x1d0] sm:$0xff] }
 0x3ee   :  { %2609 = vperm.xlu1 %3699, %v5734_v37   ;;  %v2203_v5 = vpop.permute.xlu1 %2202  ;;  %3615 = vmatmul.mubr.bf16.gmra.mxu0 %v2699_v10  ;;  %7868 = vst [vmem:[#allocation81_spill] sm:$0xff] %v6325_v21  ;;  %v6331_v10 = vld [vmem:[%s7457_s0 + $0x1b0] sm:$0xff] }
 0x3ef   :  { %v6306_v44 = vpop.permute.xlu0 %1247  ;;  %v2264_v35 = vmul.f32 %v6325_v21, %v2203_v5  ;;  %7869 = vst [vmem:[#allocation91_spill] sm:$0xff] %v6331_v10  ;;  %v1029_v19 = vmul.f32 %v6331_v10, %v7870_v16  ;;  %v6342_v21 = vld [vmem:[%s7457_s0 + $0x1e8] sm:$0xff] }
 0x3f0   :  { %7864 = vst [vmem:[#allocation152_spill] sm:$0xff] %v6306_v44  ;;  %v2298_v44 = vadd.f32 %v2266_v63, %v1028_v23  ;;  %7873 = vst [vmem:[#allocation25_spill] sm:$0xff] %v6342_v21  ;;  %v7874_v16 = vld [vmem:[#allocation23_spill] sm:$0xff]  ;;  %v7875_v23 = vmov 3  }
 0x3f1   :  { %2985 = vperm.xlu0 %3701, %v7871_v56   ;;  %v2296_v53 = vadd.f32 %v2264_v35, %v1026_v1  ;;  %v2299_v20 = vadd.f32 %v2267_v30, %v1029_v19  ;;  %v6349_v56 = vld [vmem:[%s7457_s0 + $0x1d8] sm:$0xff]  ;;  %v6381_v1 = vld [vmem:[%s7457_s0 + $0x1c0] sm:$0xff]  ;;  %v6394_v19 = vld [vmem:[%s7457_s0 + $0x1f0] sm:$0xff] }
 0x3f2   :  { %2617 = vperm.xlu1 %3699, %v5765_v42   ;;  %v2233_v25 = vpop.permute.xlu1 %2232  ;;  %v2269_v24 = vmul.f32 %v6349_v56, %v6035_v28  ;;  %7878 = vst [vmem:[#allocation155_spill] sm:$0xff] %v6381_v1 }
 0x3f3   :  { %v6337_v11 = vpop.permute.xlu0 %1255  ;;  %v2700_v5 = vpack.c.bf16 %v2297_v41, %v2296_v53  ;;  %v2270_v13 = vmul.f32 %v6342_v21, %v2233_v25  ;;  %v2701_v63 = vpack.c.bf16 %v2299_v20, %v2298_v44  ;;  %v6357_v41 = vld [vmem:[%s7457_s0 + $0x1e0] sm:$0xff]  ;;  %v6364_v20 = vld [vmem:[%s7457_s0 + $0x1f8] sm:$0xff] }
 0x3f4   :  { %7872 = vst [vmem:[#allocation76_spill] sm:$0xff] %v6337_v11  ;;  %v1032_v25 = vmul.f32 %v6357_v41, %v5793_v50  ;;  %7876 = vst [vmem:[#allocation23_spill] sm:$0xff] %v6364_v20  ;;  %v2271_v30 = vmul.f32 %v6364_v20, %v6025_v57  ;;  %v1031_v50 = vmul.f32 %v6374_v32, %v5777_v34  ;;  %v7880_v34 = vld [vmem:[#allocation95_spill] sm:$0xff] }
 0x3f5   :  { %2993 = vperm.xlu0 %3701, %v7874_v16   ;;  %3618 = vmatprep.mubr.bf16.mxu0 %v2700_v5  ;;  %v1030_v57 = vmul.f32 %v6381_v1, %v5819_v54  ;;  %v1033_v53 = vmul.f32 %v6394_v19, %v7880_v34  ;;  %v7881_v16 = vld [vmem:[#allocation2_spill] sm:$0xff]  ;;  %v7885_v1 = vld [vmem:[#allocation4_spill] sm:$0xff]  ;;  %v7894_v34 = vld [vmem:[#allocation21_spill] sm:$0xff] }
 0x3f6   :  { %3700 = vset.pattern.permute.xlu1 %v7875_v23  ;;  %v2223_v28 = vpop.permute.xlu1 %2222  ;;  %3619 = vmatmul.mubr.bf16.gmra.mxu0 %v2701_v63  ;;  %v2302_v5 = vadd.f32 %v2270_v13, %v1032_v25  ;;  %v2301_v63 = vadd.f32 %v2269_v24, %v1031_v50  ;;  %v7887_v24 = vld [vmem:[#allocation12_spill] sm:$0xff] }
 0x3f7   :  { %2937 = vperm.xlu1 %3700, %v5137_v18   ;;  %v6369_v44 = vpop.permute.xlu0 %1263  ;;  %v6388_v18 = vld [vmem:[%s7457_s0 + $0x1c8] sm:$0xff]  ;;  %v2303_v23 = vadd.f32 %v2271_v30, %v1033_v53  ;;  %v7888_v30 = vld [vmem:[#allocation30_spill] sm:$0xff] }
 0x3f8   :  { %7877 = vst [vmem:[#allocation154_spill] sm:$0xff] %v6369_v44  ;;  %7879 = vst [vmem:[#allocation156_spill] sm:$0xff] %v6388_v18  ;;  %v2268_v35 = vmul.f32 %v6388_v18, %v2223_v28  ;;  %v7882_v44 = vld [vmem:[#allocation5_spill] sm:$0xff]  ;;  %v7884_v18 = vld [vmem:[#allocation6_spill] sm:$0xff] }
 0x3f9   :  { %3001 = vperm.xlu0 %3701, %v7881_v16   ;;  %v2703_v10 = vpack.c.bf16 %v2303_v23, %v2302_v5  ;;  %v7896_v16 = vld [vmem:[#allocation16_spill] sm:$0xff] }
 0x3fa   :  { %v2300_v54 = vadd.f32 %v2268_v35, %v1030_v57  ;;  %v7890_v57 = vld [vmem:[#allocation10_spill] sm:$0xff] }
 0x3fb   :  { %2945 = vperm.xlu1 %3700, %v7882_v44   ;;  %v6400_v11 = vpop.permute.xlu0 %1271  ;;  %v6402_v21 = vpop.permute.xlu1 %2333 }
 0x3fc   :  { %7883 = vst [vmem:[#allocation95_spill] sm:$0xff] %v6400_v11  ;;  %v2702_v28 = vpack.c.bf16 %v2301_v63, %v2300_v54  ;;  %v7897_v63 = vld [vmem:[#allocation19_spill] sm:$0xff] }
 0x3fd   :  { %3009 = vperm.xlu0 %3701, %v7884_v18   ;;  %v7891_v18 = vld [vmem:[#allocation26_spill] sm:$0xff] }
 0x3fe   :  { %3622 = vmatprep.mubr.bf16.mxu0 %v2702_v28  ;;  %v7899_v28 = vld [vmem:[#allocation27_spill] sm:$0xff] }
 0x3ff   :  { %2949 = vperm.xlu1 %3700, %v7885_v1   ;;  %3623 = vmatmul.mubr.bf16.gmra.mxu0 %v2703_v10  ;;  %v6406_v13 = vpop.permute.xlu0 %1279  ;;  %v6408_v25 = vpop.permute.xlu1 %2341  ;;  %v7893_v10 = vld [vmem:[#allocation18_spill] sm:$0xff] }
 0x400   :  { %7886 = vst [vmem:[#allocation2_spill] sm:$0xff] %v6406_v13 }
 0x401   :  { %3017 = vperm.xlu0 %3701, %v7887_v24   ;;  %v7900_v24 = vld [vmem:[#allocation31_spill] sm:$0xff] }
 0x403   :  { %2957 = vperm.xlu1 %3700, %v7888_v30   ;;  %v6412_v44 = vpop.permute.xlu0 %1287  ;;  %v6414_v50 = vpop.permute.xlu1 %2349 }
 0x404   :  { %7889 = vst [vmem:[#allocation5_spill] sm:$0xff] %v6412_v44 }
 0x405   :  { %3025 = vperm.xlu0 %3701, %v7890_v57  }
 0x407   :  { %2965 = vperm.xlu1 %3700, %v7891_v18   ;;  %v6418_v35 = vpop.permute.xlu0 %1295  ;;  %v6420_v1 = vpop.permute.xlu1 %2357  ;;  %v7902_v18 = vld [vmem:[#allocation24_spill] sm:$0xff] }
 0x408   :  { %7892 = vst [vmem:[#allocation6_spill] sm:$0xff] %v6418_v35 }
 0x409   :  { %3033 = vperm.xlu0 %3701, %v7893_v10   ;;  %v7903_v10 = vld [vmem:[#allocation28_spill] sm:$0xff] }
 0x40b   :  { %2973 = vperm.xlu1 %3700, %v7894_v34   ;;  %v6424_v53 = vpop.permute.xlu0 %1303  ;;  %v6426_v5 = vpop.permute.xlu1 %2365 }
 0x40c   :  { %7895 = vst [vmem:[#allocation4_spill] sm:$0xff] %v6424_v53  ;;  %v7906_v53 = vld [vmem:[#allocation8_spill] sm:$0xff] }
 0x40d   :  { %3041 = vperm.xlu0 %3701, %v7896_v16  }
 0x40f   :  { %2981 = vperm.xlu1 %3700, %v7897_v63   ;;  %v6430_v54 = vpop.permute.xlu0 %1311  ;;  %v6432_v23 = vpop.permute.xlu1 %2373  ;;  %v7905_v63 = vld [vmem:[#allocation48_spill] sm:$0xff] }
 0x410   :  { %7898 = vst [vmem:[#allocation12_spill] sm:$0xff] %v6432_v23 }
 0x411   :  { %3049 = vperm.xlu0 %3701, %v7899_v28  }
 0x413   :  { %2989 = vperm.xlu1 %3700, %v7900_v24   ;;  %v6436_v30 = vpop.permute.xlu0 %1319  ;;  %v6438_v57 = vpop.permute.xlu1 %2381  ;;  %v7909_v24 = vld [vmem:[#allocation7_spill] sm:$0xff] }
 0x414   :  { %7901 = vst [vmem:[#allocation30_spill] sm:$0xff] %v6438_v57 }
 0x415   :  { %3057 = vperm.xlu0 %3701, %v7902_v18  }
 0x417   :  { %2997 = vperm.xlu1 %3700, %v7903_v10   ;;  %v6442_v34 = vpop.permute.xlu0 %2497  ;;  %v6444_v16 = vpop.permute.xlu1 %2389  ;;  %v7912_v10 = vld [vmem:[#allocation14_spill] sm:$0xff] }
 0x418   :  { %7904 = vst [vmem:[#allocation10_spill] sm:$0xff] %v6444_v16 }
 0x419   :  { %3161 = vperm.xlu0 %3701, %v7905_v63  }
 0x41b   :  { %3005 = vperm.xlu1 %3700, %v7906_v53   ;;  %v6448_v35 = vpop.permute.xlu0 %2509  ;;  %v6450_v28 = vpop.permute.xlu1 %2397  ;;  %v7915_v53 = vld [vmem:[#allocation13_spill] sm:$0xff] }
 0x41c   :  { %7907 = vst [vmem:[#allocation26_spill] sm:$0xff] %v6448_v35  ;;  %7908 = vst [vmem:[#allocation18_spill] sm:$0xff] %v6450_v28  ;;  %v7960_v35 = vld [vmem:[#allocation117_spill] sm:$0xff]  ;;  %v7964_v28 = vld [vmem:[#allocation122_spill] sm:$0xff] }
 0x41d   :  { %3169 = vperm.xlu0 %3701, %v5607_v51  }
 0x41f   :  { %3013 = vperm.xlu1 %3700, %v7909_v24   ;;  %v6454_v44 = vpop.permute.xlu0 %2517  ;;  %v6456_v18 = vpop.permute.xlu1 %2405  ;;  %v7918_v24 = vld [vmem:[#allocation22_spill] sm:$0xff] }
 0x420   :  { %7910 = vst [vmem:[#allocation21_spill] sm:$0xff] %v6454_v44  ;;  %7911 = vst [vmem:[#allocation16_spill] sm:$0xff] %v6456_v18 }
 0x421   :  { %3177 = vperm.xlu0 %3701, %v5481_v4  }
 0x423   :  { %3021 = vperm.xlu1 %3700, %v7912_v10   ;;  %v6460_v13 = vpop.permute.xlu0 %2525  ;;  %v6462_v63 = vpop.permute.xlu1 %2413  ;;  %v7921_v10 = vld [vmem:[#allocation20_spill] sm:$0xff] }
 0x424   :  { %7913 = vst [vmem:[#allocation19_spill] sm:$0xff] %v6460_v13  ;;  %7914 = vst [vmem:[#allocation27_spill] sm:$0xff] %v6462_v63 }
 0x425   :  { %3185 = vperm.xlu0 %3701, %v7806_v43  }
 0x427   :  { %3029 = vperm.xlu1 %3700, %v7915_v53   ;;  %v6466_v11 = vpop.permute.xlu0 %2533  ;;  %v6468_v51 = vpop.permute.xlu1 %2421  ;;  %v7924_v53 = vld [vmem:[#allocation32_spill] sm:$0xff] }
 0x428   :  { %7916 = vst [vmem:[#allocation31_spill] sm:$0xff] %v6466_v11  ;;  %7917 = vst [vmem:[#allocation24_spill] sm:$0xff] %v6468_v51  ;;  %v7957_v11 = vld [vmem:[#allocation120_spill] sm:$0xff] }
 0x429   :  { %3193 = vperm.xlu0 %3701, %v5616_v39  }
 0x42b   :  { %3037 = vperm.xlu1 %3700, %v7918_v24   ;;  %v6472_v18 = vpop.permute.xlu0 %2541  ;;  %v6474_v4 = vpop.permute.xlu1 %2429  ;;  %v7926_v24 = vld [vmem:[#allocation29_spill] sm:$0xff] }
 0x42c   :  { %7919 = vst [vmem:[#allocation28_spill] sm:$0xff] %v6472_v18  ;;  %7920 = vst [vmem:[#allocation48_spill] sm:$0xff] %v6474_v4 }
 0x42d   :  { %3201 = vperm.xlu0 %3701, %v5632_v60  }
 0x42f   :  { %3045 = vperm.xlu1 %3700, %v7921_v10   ;;  %v6478_v13 = vpop.permute.xlu0 %2549 }
 0x430   :  { %7922 = vst [vmem:[#allocation8_spill] sm:$0xff] %v6478_v13  ;;  %v6480_v43 = vpop.permute.xlu1 %2501 }
 0x431   :  { %7923 = vst [vmem:[#allocation7_spill] sm:$0xff] %v6480_v43  ;;  %3209 = vperm.xlu0 %3701, %v5646_v12  }
 0x433   :  { %3053 = vperm.xlu1 %3700, %v7924_v53   ;;  %v6484_v51 = vpop.permute.xlu0 %2557  ;;  %v7929_v53 = vld [vmem:[#allocation51_spill] sm:$0xff] }
 0x434   :  { %7925 = vst [vmem:[#allocation14_spill] sm:$0xff] %v6484_v51  ;;  %v6486_v39 = vpop.permute.xlu1 %2505 }
 0x435   :  { %3217 = vperm.xlu0 %3701, %v5655_v29  }
 0x437   :  { %3061 = vperm.xlu1 %3700, %v7926_v24   ;;  %v6490_v18 = vpop.permute.xlu0 %2565  ;;  %v7931_v24 = vld [vmem:[#allocation57_spill] sm:$0xff] }
 0x438   :  { %7927 = vst [vmem:[#allocation13_spill] sm:$0xff] %v6490_v18  ;;  %v6492_v60 = vpop.permute.xlu1 %2513 }
 0x439   :  { %3225 = vperm.xlu0 %3701, %v5669_v61  }
 0x43b   :  { %3165 = vperm.xlu1 %3700, %v5447_v27   ;;  %v6496_v10 = vpop.permute.xlu0 %2573  ;;  %v7934_v27 = vld [vmem:[#allocation55_spill] sm:$0xff] }
 0x43c   :  { %7928 = vst [vmem:[#allocation22_spill] sm:$0xff] %v6496_v10 }
 0x43d   :  { %v6498_v12 = vpop.permute.xlu1 %2521  ;;  %3233 = vperm.xlu0 %3701, %v5686_v8  }
 0x43f   :  { %3173 = vperm.xlu1 %3700, %v7929_v53   ;;  %v6502_v51 = vpop.permute.xlu0 %2581  ;;  %v7937_v53 = vld [vmem:[#allocation63_spill] sm:$0xff] }
 0x440   :  { %7930 = vst [vmem:[#allocation20_spill] sm:$0xff] %v6502_v51 }
 0x441   :  { %v6504_v29 = vpop.permute.xlu1 %2529  ;;  %3241 = vperm.xlu0 %3701, %v5696_v55  }
 0x443   :  { %3181 = vperm.xlu1 %3700, %v7931_v24   ;;  %v6508_v18 = vpop.permute.xlu0 %2589  ;;  %v7940_v24 = vld [vmem:[#allocation60_spill] sm:$0xff] }
 0x444   :  { %7932 = vst [vmem:[#allocation32_spill] sm:$0xff] %v6508_v18 }
 0x445   :  { %v6510_v61 = vpop.permute.xlu1 %2537  ;;  %3249 = vperm.xlu0 %3701, %v5706_v48   ;;  %v1351_v48 = vmul.f32 %v6374_v32, %v6430_v54 }
 0x446   :  { %7933 = vst [vmem:[#allocation29_spill] sm:$0xff] %v6510_v61 }
 0x447   :  { %3189 = vperm.xlu1 %3700, %v7934_v27   ;;  %v6514_v10 = vpop.permute.xlu0 %2597 }
 0x448   :  { %7935 = vst [vmem:[#allocation51_spill] sm:$0xff] %v6514_v10 }
 0x449   :  { %v6516_v8 = vpop.permute.xlu1 %2545  ;;  %3257 = vperm.xlu0 %3701, %v5716_v15  }
 0x44a   :  { %7936 = vst [vmem:[#allocation57_spill] sm:$0xff] %v6516_v8 }
 0x44b   :  { %3197 = vperm.xlu1 %3700, %v7937_v53   ;;  %v6520_v51 = vpop.permute.xlu0 %2605 }
 0x44c   :  { %7938 = vst [vmem:[#allocation55_spill] sm:$0xff] %v6520_v51 }
 0x44d   :  { %v6522_v55 = vpop.permute.xlu1 %2553  ;;  %3265 = vperm.xlu0 %3701, %v5724_v9   ;;  %v1353_v9 = vmul.f32 %v6394_v19, %v6436_v30 }
 0x44e   :  { %7939 = vst [vmem:[#allocation63_spill] sm:$0xff] %v6522_v55  ;;  %v7966_v55 = vld [vmem:[#allocation126_spill] sm:$0xff] }
 0x44f   :  { %3205 = vperm.xlu1 %3700, %v7940_v24   ;;  %v2614_v18 = vpop.permute.xlu0 %2613 }
 0x450   :  { %v2653_v27 = vmul.f32 %v6349_v56, %v2614_v18 }
 0x451   :  { %v6529_v10 = vpop.permute.xlu1 %2561  ;;  %3273 = vperm.xlu0 %3701, %v5734_v37  }
 0x452   :  { %7941 = vst [vmem:[#allocation60_spill] sm:$0xff] %v6529_v10  ;;  %v6532_v15 = vadd.f32 %v2653_v27, %v1351_v48  ;;  %v7965_v10 = vld [vmem:[#allocation100_spill] sm:$0xff] }
 0x453   :  { %3213 = vperm.xlu1 %3700, %v5532_v46   ;;  %v2622_v53 = vpop.permute.xlu0 %2621 }
 0x454   :  { %7942 = vst [vmem:[#allocation157_spill] sm:$0xff] %v6532_v15  ;;  %v2655_v24 = vmul.f32 %v6364_v20, %v2622_v53  ;;  %v7953_v15 = vld [vmem:[#allocation123_spill] sm:$0xff] }
 0x455   :  { %v6538_v51 = vpop.permute.xlu1 %2569  ;;  %3281 = vperm.xlu0 %3701, %v5765_v42  }
 0x456   :  { %7943 = vst [vmem:[#allocation158_spill] sm:$0xff] %v6538_v51  ;;  %v6541_v54 = vadd.f32 %v2655_v24, %v1353_v9 }
 0x457   :  { %3221 = vperm.xlu1 %3700, %v5520_v59  }
 0x458   :  { %7944 = vst [vmem:[#allocation159_spill] sm:$0xff] %v6541_v54  ;;  %v2942_v56 = vpop.permute.xlu0 %2941  ;;  %v7952_v54 = vld [vmem:[#allocation112_spill] sm:$0xff] }
 0x459   :  { %v6544_v37 = vpop.permute.xlu1 %2577 }
 0x45a   :  { %7945 = vst [vmem:[#allocation160_spill] sm:$0xff] %v6544_v37 }
 0x45b   :  { %3229 = vperm.xlu1 %3700, %v5554_v6  }
 0x45c   :  { %v6547_v46 = vpop.permute.xlu0 %2953 }
 0x45d   :  { %v6549_v18 = vpop.permute.xlu1 %2585 }
 0x45e   :  { %7946 = vst [vmem:[#allocation161_spill] sm:$0xff] %v6549_v18  ;;  %v7959_v18 = vld [vmem:[#allocation124_spill] sm:$0xff] }
 0x45f   :  { %3237 = vperm.xlu1 %3700, %v5543_v47  }
 0x460   :  { %v6552_v30 = vpop.permute.xlu0 %2961 }
 0x461   :  { %v6554_v48 = vpop.permute.xlu1 %2593 }
 0x462   :  { %7947 = vst [vmem:[#allocation162_spill] sm:$0xff] %v6554_v48  ;;  %v7958_v48 = vld [vmem:[#allocation40_spill] sm:$0xff] }
 0x463   :  { %3245 = vperm.xlu1 %3700, %v5573_v31   ;;  %v1162_v44 = vmul.f32 %v7959_v18, %v7958_v48 }
 0x464   :  { %v6557_v42 = vpop.permute.xlu0 %2969 }
 0x465   :  { %v6559_v59 = vpop.permute.xlu1 %2601 }
 0x466   :  { %7948 = vst [vmem:[#allocation163_spill] sm:$0xff] %v6559_v59 }
 0x467   :  { %3253 = vperm.xlu1 %3700, %v5566_v62  }
 0x468   :  { %v6562_v27 = vpop.permute.xlu0 %2977 }
 0x469   :  { %v6564_v6 = vpop.permute.xlu1 %2609 }
 0x46a   :  { %7949 = vst [vmem:[#allocation164_spill] sm:$0xff] %v6564_v6  ;;  %v7955_v6 = vld [vmem:[#allocation34_spill] sm:$0xff] }
 0x46b   :  { %3261 = vperm.xlu1 %3700, %v5596_v38   ;;  %v6581_v38 = vld [vmem:[%s7464_s5] ss:$0 sm:$0xff]  ;;  %v1164_v59 = vmul.f32 %v5945_v17, %v7955_v6 }
 0x46c   :  { %v6567_v53 = vpop.permute.xlu0 %2985 }
 0x46d   :  { %v6569_v47 = vpop.permute.xlu1 %2617 }
 0x46e   :  { %7950 = vst [vmem:[#allocation165_spill] sm:$0xff] %v6569_v47  ;;  %v2434_v47 = vmul.f32 %v7953_v15, %v7952_v54  ;;  %v7961_v54 = vld [vmem:[#allocation119_spill] sm:$0xff] }
 0x46f   :  { %3269 = vperm.xlu1 %3700, %v5584_v58   ;;  %v2435_v51 = vmul.f32 %v7961_v54, %v7960_v35 }
 0x470   :  { %v6572_v9 = vpop.permute.xlu0 %2993  ;;  %v2466_v37 = vadd.f32 %v2434_v47, %v1164_v59 }
 0x472   :  { %v2938_v31 = vpop.permute.xlu1 %2937 }
 0x473   :  { %3277 = vperm.xlu1 %3700, %v5757_v26   ;;  %v7956_v26 = vld [vmem:[#allocation114_spill] sm:$0xff] }
 0x474   :  { %v6575_v24 = vpop.permute.xlu0 %3001  ;;  %v2432_v20 = vmul.f32 %v7957_v11, %v7956_v26  ;;  %v7963_v26 = vld [vmem:[#allocation44_spill] sm:$0xff] }
 0x475   :  { %7951 = vst [vmem:[#allocation166_spill] sm:$0xff] %v6575_v24  ;;  %v2433_v24 = vmul.f32 %v7966_v55, %v7965_v10 }
 0x476   :  { %v2946_v62 = vpop.permute.xlu1 %2945  ;;  %v2464_v48 = vadd.f32 %v2432_v20, %v1162_v44 }
 0x477   :  { %3285 = vperm.xlu1 %3700, %v5745_v22  }
 0x478   :  { %v6585_v13 = vpop.permute.xlu0 %3009 }
 0x479   :  { %7954 = vst [vmem:[#allocation112_spill] sm:$0xff] %v6585_v13  ;;  %v3596_v58 = vpop.f32.mrf.mxu0 }
 0x47a   :  { %v6592_v4 = vadd.f32 %v3596_v58, %v6581_v38  ;;  %v2950_v22 = vpop.permute.xlu1 %2949  ;;  %v1165_v58 = vmul.f32 %v7964_v28, %v7963_v26 }
 0x47b   :  { %v2809_v63 = vpop.f32.mrf.mxu0 }
 0x47c   :  { %v3066_v16 = vmul.f32 %v2946_v62, %v6592_v4  ;;  %v6600_v43 = vadd.f32 %v6581_v38, %v2809_v63  ;;  %v6602_v6 = vpop.permute.xlu0 %3017  ;;  %v7968_v63 = vld [vmem:[#allocation45_spill] sm:$0xff]  ;;  %v2467_v57 = vadd.f32 %v2435_v51, %v1165_v58 }
 0x47d   :  { %7962 = vst [vmem:[#allocation123_spill] sm:$0xff] %v6602_v6  ;;  %v3597_v23 = vpop.f32.mrf.mxu0  ;;  %v7969_v62 = vld [vmem:[#allocation125_spill] sm:$0xff] }
 0x47e   :  { %v3098_v13 = vadd.f32 %v3066_v16, %v2466_v37  ;;  %v3064_v59 = vmul.f32 %v2938_v31, %v6600_v43  ;;  %v6610_v35 = vadd.f32 %v3597_v23, %v6581_v38  ;;  %v6612_v47 = vpop.permute.xlu1 %2957  ;;  %v1163_v54 = vmul.f32 %v7969_v62, %v7968_v63  ;;  %v7978_v58 = vld [vmem:[#allocation101_spill] sm:$0xff] }
 0x47f   :  { %v2812_v6 = vpop.f32.mrf.mxu0  ;;  %v7980_v63 = vld [vmem:[#allocation37_spill] sm:$0xff] }
 0x480   :  { %7967 = vst [vmem:[#allocation34_spill] sm:$0xff] %v6610_v35  ;;  %3130 = vst [vmem:[%s7465_s8 + $0x20] sm:$0xff] %v3098_v13  ;;  %v3096_v28 = vadd.f32 %v3064_v59, %v2464_v48  ;;  %v3067_v20 = vmul.f32 %v2950_v22, %v6610_v35  ;;  %v6621_v44 = vadd.f32 %v6581_v38, %v2812_v6  ;;  %v6623_v16 = vpop.permute.xlu0 %3025  ;;  %v7976_v6 = vld [vmem:[#allocation39_spill] sm:$0xff]  ;;  %v7991_v35 = vld [vmem:[#allocation134_spill] sm:$0xff] }
 0x481   :  { %7971 = vst [vmem:[#allocation120_spill] sm:$0xff] %v6623_v16  ;;  %v2465_v23 = vadd.f32 %v2433_v24, %v1163_v54  ;;  %v7973_v24 = vld [vmem:[#allocation35_spill] sm:$0xff]  ;;  %v6649_v26 = vmul.f32 %v6187_v0, %v7976_v6  ;;  %v2438_v48 = vmul.f32 %v5987_v2, %v7978_v58  ;;  %v6657_v54 = vmul.f32 %v6171_v40, %v7980_v63  ;;  %v7988_v6 = vld [vmem:[#allocation49_spill] sm:$0xff] }
 0x482   :  { %7970 = vst [vmem:[#allocation114_spill] sm:$0xff] %v6621_v44  ;;  %3128 = vst [vmem:[%s7465_s8] sm:$0xff] %v3096_v28  ;;  %v3099_v10 = vadd.f32 %v3067_v20, %v2467_v57  ;;  %v3065_v51 = vmul.f32 %v2942_v56, %v6621_v44  ;;  %v2966_v55 = vpop.permute.xlu1 %2965  ;;  %v6641_v22 = vmul.f32 %v6171_v40, %v7973_v24  ;;  %v7975_v57 = vld [vmem:[#allocation36_spill] sm:$0xff]  ;;  %v7982_v28 = vld [vmem:[#allocation47_spill] sm:$0xff] }
 0x483   :  { %v6645_v56 = vmul.f32 %v5945_v17, %v7975_v57  ;;  %7977 = vst [vmem:[#allocation117_spill] sm:$0xff] %v6649_v26  ;;  %7981 = vst [vmem:[#allocation44_spill] sm:$0xff] %v6657_v54  ;;  %v7983_v20 = vld [vmem:[#allocation54_spill] sm:$0xff]  ;;  %v6669_v58 = vmul.f32 %v6233_v36, %v7988_v6  ;;  %v8000_v16 = vld [vmem:[#allocation53_spill] sm:$0xff] }
 0x484   :  { %3131 = vst [vmem:[%s7465_s8 + $0x30] sm:$0xff] %v3099_v10  ;;  %v3097_v13 = vadd.f32 %v3065_v51, %v2465_v23  ;;  %v6632_v37 = vpop.permute.xlu0 %3033  ;;  %7974 = vst [vmem:[#allocation124_spill] sm:$0xff] %v6641_v22  ;;  %v1168_v23 = vmul.f32 %v7983_v20, %v7982_v28  ;;  %v7984_v10 = vld [vmem:[#allocation42_spill] sm:$0xff]  ;;  %v7986_v51 = vld [vmem:[#allocation103_spill] sm:$0xff] }
 0x485   :  { %7972 = vst [vmem:[#allocation40_spill] sm:$0xff] %v6632_v37  ;;  %v6663_v17 = vmul.f32 %v6187_v0, %v7984_v10  ;;  %7989 = vst [vmem:[#allocation100_spill] sm:$0xff] %v6669_v58  ;;  %v7990_v37 = vld [vmem:[#allocation52_spill] sm:$0xff]  ;;  %v7992_v40 = vld [vmem:[#allocation58_spill] sm:$0xff] }
 0x486   :  { %3129 = vst [vmem:[%s7465_s8 + $0x10] sm:$0xff] %v3097_v13  ;;  %v6637_v31 = vpop.permute.xlu1 %2973  ;;  %v7987_v13 = vld [vmem:[#allocation131_spill] sm:$0xff]  ;;  %v6675_v63 = vmul.f32 %v6256_v3, %v7992_v40  ;;  %v7994_v10 = vld [vmem:[#allocation46_spill] sm:$0xff]  ;;  %v6696_v40 = vmul.f32 %v7969_v62, %v8000_v16  ;;  %v2470_v8 = vadd.f32 %v2438_v48, %v1168_v23  ;;  %v8008_v48 = vld [vmem:[#allocation73_spill] sm:$0xff] }
 0x487   :  { %7985 = vst [vmem:[#allocation122_spill] sm:$0xff] %v6663_v17  ;;  %v2436_v24 = vmul.f32 %v7987_v13, %v7986_v51  ;;  %v6684_v51 = vmul.f32 %v6207_v7, %v7994_v10  ;;  %v7996_v54 = vld [vmem:[#allocation50_spill] sm:$0xff]  ;;  %v7999_v17 = vld [vmem:[#allocation139_spill] sm:$0xff]  ;;  %v8009_v23 = vld [vmem:[#allocation133_spill] sm:$0xff] }
 0x488   :  { %v6653_v59 = vpop.permute.xlu0 %3041  ;;  %v3600_v57 = vpop.f32.mrf.mxu0  ;;  %7993 = vst [vmem:[#allocation126_spill] sm:$0xff] %v6675_v63  ;;  %v6688_v6 = vmul.f32 %v6194_v45, %v7996_v54  ;;  %v7998_v44 = vld [vmem:[#allocation66_spill] sm:$0xff]  ;;  %8001 = vst [vmem:[#allocation35_spill] sm:$0xff] %v6696_v40  ;;  %v8004_v54 = vld [vmem:[#allocation68_spill] sm:$0xff]  ;;  %v1169_v40 = vmul.f32 %v8009_v23, %v8008_v48 }
 0x489   :  { %7979 = vst [vmem:[#allocation119_spill] sm:$0xff] %v6653_v59  ;;  %v1166_v59 = vmul.f32 %v7991_v35, %v7990_v37  ;;  %v6678_v28 = vadd.f32 %v3600_v57, %v6581_v38  ;;  %7995 = vst [vmem:[#allocation45_spill] sm:$0xff] %v6684_v51  ;;  %v6692_v37 = vmul.f32 %v7999_v17, %v7998_v44  ;;  %v8002_v58 = vld [vmem:[#allocation130_spill] sm:$0xff]  ;;  %v8010_v51 = vld [vmem:[#allocation136_spill] sm:$0xff] }
 0x48a   :  { %v6680_v0 = vpop.permute.xlu1 %2981  ;;  %7997 = vst [vmem:[#allocation125_spill] sm:$0xff] %v6688_v6  ;;  %v2825_v57 = vpop.f32.mrf.mxu0  ;;  %v2439_v63 = vmul.f32 %v8002_v58, %v6402_v21  ;;  %v6709_v44 = vmul.f32 %v6295_v14, %v8004_v54  ;;  %v8006_v6 = vld [vmem:[#allocation70_spill] sm:$0xff] }
 0x48b   :  { %v3070_v7 = vmul.f32 %v6552_v30, %v6678_v28  ;;  %v6703_v10 = vadd.f32 %v6581_v38, %v2825_v57  ;;  %v8007_v62 = vld [vmem:[#allocation78_spill] sm:$0xff]  ;;  %v2468_v21 = vadd.f32 %v2436_v24, %v1166_v59  ;;  %v8011_v30 = vld [vmem:[#allocation77_spill] sm:$0xff] }
 0x48c   :  { %v6705_v45 = vpop.permute.xlu0 %3049  ;;  %8005 = vst [vmem:[#allocation39_spill] sm:$0xff] %v6709_v44  ;;  %v6713_v16 = vmul.f32 %v8007_v62, %v8006_v6  ;;  %v3601_v58 = vpop.f32.mrf.mxu0  ;;  %v2437_v22 = vmul.f32 %v8011_v30, %v8010_v51  ;;  %v8013_v44 = vld [vmem:[#allocation72_spill] sm:$0xff]  ;;  %v8014_v26 = vld [vmem:[#allocation62_spill] sm:$0xff]  ;;  %v8015_v24 = vld [vmem:[#allocation65_spill] sm:$0xff]  ;;  %v2471_v23 = vadd.f32 %v2439_v63, %v1169_v40 }
 0x48d   :  { %8003 = vst [vmem:[#allocation36_spill] sm:$0xff] %v6705_v45  ;;  %v3102_v57 = vadd.f32 %v3070_v7, %v2470_v8  ;;  %v3068_v45 = vmul.f32 %v6547_v46, %v6703_v10  ;;  %v6722_v61 = vadd.f32 %v3601_v58, %v6581_v38  ;;  %v6728_v6 = vmul.f32 %v6318_v33, %v8013_v44  ;;  %v8017_v8 = vld [vmem:[#allocation79_spill] sm:$0xff]  ;;  %v8023_v63 = vld [vmem:[#allocation85_spill] sm:$0xff] }
 0x48e   :  { %v6724_v54 = vpop.permute.xlu1 %2989  ;;  %v6732_v59 = vmul.f32 %v7983_v20, %v8014_v26  ;;  %v6736_v51 = vmul.f32 %v6233_v36, %v8015_v24  ;;  %v8018_v7 = vld [vmem:[#allocation135_spill] sm:$0xff]  ;;  %v2828_v48 = vpop.f32.mrf.mxu0  ;;  %v8022_v24 = vld [vmem:[#allocation69_spill] sm:$0xff]  ;;  %v6757_v40 = vmul.f32 %v6357_v41, %v8023_v63  ;;  %v8025_v41 = vld [vmem:[#allocation88_spill] sm:$0xff] }
 0x48f   :  { %8012 = vst [vmem:[#allocation101_spill] sm:$0xff] %v6722_v61  ;;  %v1167_v46 = vmul.f32 %v8018_v7, %v8017_v8  ;;  %3134 = vst [vmem:[%s7465_s8 + $0x60] sm:$0xff] %v3102_v57  ;;  %v3100_v58 = vadd.f32 %v3068_v45, %v2468_v21  ;;  %v3071_v44 = vmul.f32 %v2966_v55, %v6722_v61  ;;  %v8021_v20 = vld [vmem:[#allocation83_spill] sm:$0xff]  ;;  %v8030_v63 = vld [vmem:[#allocation145_spill] sm:$0xff] }
 0x490   :  { %8016 = vst [vmem:[#allocation37_spill] sm:$0xff] %v6736_v51  ;;  %v6745_v30 = vadd.f32 %v6581_v38, %v2828_v48  ;;  %v6747_v26 = vpop.permute.xlu0 %3057  ;;  %v6751_v36 = vmul.f32 %v6108_v52, %v8021_v20  ;;  %v1326_v8 = vmul.f32 %v7991_v35, %v8022_v24  ;;  %v2624_v45 = vmul.f32 %v7957_v11, %v6442_v34  ;;  %v8024_v55 = vld [vmem:[#allocation71_spill] sm:$0xff]  ;;  %v8026_v11 = vld [vmem:[#allocation90_spill] sm:$0xff]  ;;  %v8054_v51 = vld [vmem:[#allocation105_spill] sm:$0xff] }
 0x491   :  { %8020 = vst [vmem:[#allocation54_spill] sm:$0xff] %v6747_v26  ;;  %v6763_v21 = vmul.f32 %v6256_v3, %v8024_v55  ;;  %v2469_v57 = vadd.f32 %v2437_v22, %v1167_v46  ;;  %3132 = vst [vmem:[%s7465_s8 + $0x40] sm:$0xff] %v3100_v58  ;;  %v3103_v7 = vadd.f32 %v3071_v44, %v2471_v23  ;;  %v8027_v34 = vld [vmem:[#allocation155_spill] sm:$0xff]  ;;  %v8031_v58 = vld [vmem:[#allocation80_spill] sm:$0xff] }
 0x492   :  { %8019 = vst [vmem:[#allocation47_spill] sm:$0xff] %v6745_v30  ;;  %v3069_v35 = vmul.f32 %v6612_v47, %v6745_v30  ;;  %v6770_v48 = vpop.permute.xlu1 %2997  ;;  %v6774_v20 = vmul.f32 %v6131_v49, %v8025_v41  ;;  %v6778_v24 = vmul.f32 %v8027_v34, %v8026_v11  ;;  %v8028_v3 = vld [vmem:[#allocation75_spill] sm:$0xff]  ;;  %v1322_v23 = vmul.f32 %v7959_v18, %v8030_v63  ;;  %v8033_v55 = vld [vmem:[#allocation86_spill] sm:$0xff] }
 0x493   :  { %v8029_v22 = vld [vmem:[#allocation67_spill] sm:$0xff]  ;;  %v6792_v61 = vmul.f32 %v7999_v17, %v8033_v55  ;;  %3135 = vst [vmem:[%s7465_s8 + $0x70] sm:$0xff] %v3103_v7  ;;  %v2626_v63 = vmul.f32 %v7953_v15, %v6486_v39  ;;  %v8040_v55 = vld [vmem:[#allocation141_spill] sm:$0xff]  ;;  %v8047_v15 = vld [vmem:[#allocation140_spill] sm:$0xff] }
 0x494   :  { %v6782_v46 = vmul.f32 %v8029_v22, %v8028_v3  ;;  %v8032_v44 = vld [vmem:[#allocation151_spill] sm:$0xff]  ;;  %v3101_v11 = vadd.f32 %v3069_v35, %v2469_v57  ;;  %v3162_v34 = vpop.permute.xlu0 %3161  ;;  %v8036_v3 = vld [vmem:[#allocation93_spill] sm:$0xff]  ;;  %v2656_v22 = vadd.f32 %v2624_v45, %v1322_v23 }
 0x495   :  { %v6788_v47 = vmul.f32 %v8032_v44, %v8031_v58  ;;  %v8034_v41 = vld [vmem:[#allocation87_spill] sm:$0xff]  ;;  %v6803_v18 = vmul.f32 %v8007_v62, %v8036_v3  ;;  %v3288_v17 = vmul.f32 %v3162_v34, %v6600_v43  ;;  %v8037_v58 = vld [vmem:[#allocation94_spill] sm:$0xff]  ;;  %v8039_v44 = vld [vmem:[#allocation96_spill] sm:$0xff] }
 0x496   :  { %v6796_v26 = vmul.f32 %v6295_v14, %v8034_v41  ;;  %v6810_v14 = vmul.f32 %v6318_v33, %v8037_v58  ;;  %v1173_v41 = vmul.f32 %v8040_v55, %v8039_v44  ;;  %v8041_v7 = vld [vmem:[#allocation97_spill] sm:$0xff]  ;;  %v8042_v57 = vld [vmem:[#allocation91_spill] sm:$0xff]  ;;  %3133 = vst [vmem:[%s7465_s8 + $0x50] sm:$0xff] %v3101_v11  ;;  %v6823_v39 = vpop.permute.xlu1 %3005  ;;  %v8046_v43 = vld [vmem:[#allocation98_spill] sm:$0xff]  ;;  %v6839_v11 = vmul.f32 %v6131_v49, %v8054_v51 }
 0x497   :  { %v6816_v35 = vmul.f32 %v8042_v57, %v8041_v7  ;;  %v8045_v62 = vld [vmem:[#allocation137_spill] sm:$0xff]  ;;  %v1171_v33 = vmul.f32 %v8047_v15, %v8046_v43  ;;  %v8048_v45 = vld [vmem:[#allocation99_spill] sm:$0xff]  ;;  %v3320_v7 = vadd.f32 %v3288_v17, %v2656_v22  ;;  %v3604_v57 = vpop.f32.mrf.mxu0  ;;  %v2658_v17 = vadd.f32 %v2626_v63, %v6645_v56 }
 0x498   :  { %8035 = vst [vmem:[#allocation42_spill] sm:$0xff] %v6796_v26  ;;  %8038 = vst [vmem:[#allocation103_spill] sm:$0xff] %v6810_v14  ;;  %v8044_v26 = vld [vmem:[#allocation113_spill] sm:$0xff]  ;;  %v8051_v58 = vld [vmem:[#allocation111_spill] sm:$0xff]  ;;  %v6846_v15 = vadd.f32 %v3604_v57, %v6581_v38 }
 0x499   :  { %8043 = vst [vmem:[#allocation131_spill] sm:$0xff] %v6816_v35  ;;  %v2442_v3 = vmul.f32 %v8045_v62, %v8044_v26  ;;  %v8049_v23 = vld [vmem:[#allocation153_spill] sm:$0xff]  ;;  %v8053_v14 = vld [vmem:[#allocation102_spill] sm:$0xff]  ;;  %v8055_v30 = vld [vmem:[#allocation107_spill] sm:$0xff]  ;;  %v2841_v49 = vpop.f32.mrf.mxu0 }
 0x49a   :  { %v6829_v34 = vmul.f32 %v8049_v23, %v8048_v45  ;;  %v8052_v44 = vld [vmem:[#allocation89_spill] sm:$0xff]  ;;  %v6835_v26 = vmul.f32 %v6108_v52, %v8053_v14  ;;  %v8056_v35 = vld [vmem:[#allocation148_spill] sm:$0xff]  ;;  %v3170_v45 = vpop.permute.xlu0 %3169  ;;  %v2628_v52 = vmul.f32 %v7987_v13, %v6492_v60  ;;  %3352 = vst [vmem:[%s7465_s8 + $0x8] sm:$0xff] %v3320_v7  ;;  %v8059_v14 = vld [vmem:[#allocation82_spill] sm:$0xff]  ;;  %v6865_v56 = vadd.f32 %v6581_v38, %v2841_v49  ;;  %v6867_v63 = vpop.permute.xlu1 %3013 }
 0x49b   :  { %v2440_v55 = vmul.f32 %v8052_v44, %v8051_v58  ;;  %v6843_v43 = vmul.f32 %v8056_v35, %v8055_v30  ;;  %v8057_v23 = vld [vmem:[#allocation108_spill] sm:$0xff]  ;;  %v3290_v51 = vmul.f32 %v3170_v45, %v6592_v4  ;;  %v2474_v30 = vadd.f32 %v2442_v3, %v6692_v37  ;;  %v8060_v13 = vld [vmem:[#allocation115_spill] sm:$0xff]  ;;  %v8063_v4 = vld [vmem:[#allocation142_spill] sm:$0xff]  ;;  %v3605_v3 = vpop.f32.mrf.mxu0 }
 0x49c   :  { %8050 = vst [vmem:[#allocation49_spill] sm:$0xff] %v6829_v34  ;;  %v6850_v22 = vmul.f32 %v6394_v19, %v8057_v23  ;;  %v2443_v35 = vmul.f32 %v8059_v14, %v6414_v50  ;;  %v3074_v19 = vmul.f32 %v6562_v27, %v6846_v15  ;;  %v8061_v58 = vld [vmem:[#allocation147_spill] sm:$0xff]  ;;  %v8062_v57 = vld [vmem:[#allocation116_spill] sm:$0xff]  ;;  %v8064_v50 = vld [vmem:[#allocation138_spill] sm:$0xff]  ;;  %v3072_v27 = vmul.f32 %v6557_v42, %v6865_v56 }
 0x49d   :  { %v2472_v60 = vadd.f32 %v2440_v55, %v6713_v16  ;;  %v2444_v7 = vmul.f32 %v8061_v58, %v8060_v13  ;;  %v2446_v45 = vmul.f32 %v8063_v4, %v8062_v57  ;;  %v3322_v37 = vadd.f32 %v3290_v51, %v2658_v17  ;;  %v8065_v16 = vld [vmem:[#allocation109_spill] sm:$0xff]  ;;  %v8066_v55 = vld [vmem:[#allocation146_spill] sm:$0xff] }
 0x49e   :  { %8058 = vst [vmem:[#allocation52_spill] sm:$0xff] %v6850_v22  ;;  %v2441_v23 = vmul.f32 %v8064_v50, %v6408_v25  ;;  %v3106_v14 = vadd.f32 %v3074_v19, %v2474_v30  ;;  %v6879_v49 = vadd.f32 %v3605_v3, %v6581_v38  ;;  %v3178_v22 = vpop.permute.xlu0 %3177  ;;  %v6883_v34 = vmul.f32 %v8066_v55, %v8065_v16  ;;  %v2844_v25 = vpop.f32.mrf.mxu0  ;;  %v8068_v3 = vld [vmem:[#allocation118_spill] sm:$0xff]  ;;  %v8072_v16 = vld [vmem:[#allocation149_spill] sm:$0xff] }
 0x49f   :  { %v2660_v13 = vadd.f32 %v2628_v52, %v1326_v8  ;;  %v2630_v17 = vmul.f32 %v5987_v2, %v6498_v12  ;;  %3354 = vst [vmem:[%s7465_s8 + $0x28] sm:$0xff] %v3322_v37  ;;  %v3292_v51 = vmul.f32 %v3178_v22, %v6703_v10  ;;  %v2475_v42 = vadd.f32 %v2443_v35, %v1173_v41  ;;  %v6899_v2 = vpop.permute.xlu1 %3021  ;;  %v8067_v12 = vld [vmem:[#allocation110_spill] sm:$0xff] }
 0x4a0   :  { %3138 = vst [vmem:[%s7465_s8 + $0xa0] sm:$0xff] %v3106_v14  ;;  %v3104_v30 = vadd.f32 %v3072_v27, %v2472_v60  ;;  %v3075_v19 = vmul.f32 %v6680_v0, %v6879_v49  ;;  %v6897_v8 = vadd.f32 %v6581_v38, %v2844_v25  ;;  %v6903_v52 = vmul.f32 %v6374_v32, %v8067_v12  ;;  %v3608_v35 = vpop.f32.mrf.mxu0  ;;  %v8069_v50 = vld [vmem:[#allocation38_spill] sm:$0xff]  ;;  %v8071_v27 = vld [vmem:[#allocation121_spill] sm:$0xff] }
 0x4a1   :  { %v2476_v10 = vadd.f32 %v2444_v7, %v6774_v20  ;;  %v2478_v41 = vadd.f32 %v2446_v45, %v6751_v36  ;;  %v3324_v22 = vadd.f32 %v3292_v51, %v2660_v13  ;;  %v2473_v57 = vadd.f32 %v2441_v23, %v1171_v33  ;;  %v8074_v13 = vld [vmem:[#allocation64_spill] sm:$0xff]  ;;  %v8076_v25 = vld [vmem:[#allocation41_spill] sm:$0xff] }
 0x4a2   :  { %3136 = vst [vmem:[%s7465_s8 + $0x80] sm:$0xff] %v3104_v30  ;;  %v3107_v0 = vadd.f32 %v3075_v19, %v2475_v42  ;;  %v3073_v60 = vmul.f32 %v6637_v31, %v6897_v8  ;;  %v6913_v37 = vadd.f32 %v3608_v35, %v6581_v38  ;;  %v3186_v32 = vpop.permute.xlu0 %3185  ;;  %v2448_v20 = vmul.f32 %v8069_v50, %v8068_v3  ;;  %v2857_v7 = vpop.f32.mrf.mxu0  ;;  %v8070_v31 = vld [vmem:[#allocation144_spill] sm:$0xff]  ;;  %v8077_v19 = vld [vmem:[#allocation143_spill] sm:$0xff]  ;;  %v8079_v3 = vld [vmem:[#allocation29_spill] sm:$0xff] }
 0x4a3   :  { %v2662_v36 = vadd.f32 %v2630_v17, %v6732_v59  ;;  %v2632_v33 = vmul.f32 %v8052_v44, %v6504_v29  ;;  %3356 = vst [vmem:[%s7465_s8 + $0x48] sm:$0xff] %v3324_v22  ;;  %v3294_v45 = vmul.f32 %v3186_v32, %v6678_v28  ;;  %v2447_v23 = vmul.f32 %v8070_v31, %v6426_v5  ;;  %v6934_v44 = vpop.permute.xlu1 %3029  ;;  %v8073_v28 = vld [vmem:[#allocation127_spill] sm:$0xff]  ;;  %v8075_v5 = vld [vmem:[#allocation128_spill] sm:$0xff]  ;;  %v8081_v31 = vld [vmem:[#allocation126_spill] sm:$0xff] }
 0x4a4   :  { %3139 = vst [vmem:[%s7465_s8 + $0xb0] sm:$0xff] %v3107_v0  ;;  %v3105_v14 = vadd.f32 %v3073_v60, %v2473_v57  ;;  %v3078_v59 = vmul.f32 %v6572_v9, %v6913_v37  ;;  %v6932_v29 = vadd.f32 %v6581_v38, %v2857_v7  ;;  %v2450_v55 = vmul.f32 %v8072_v16, %v8071_v27  ;;  %v3609_v30 = vpop.f32.mrf.mxu0  ;;  %v8078_v0 = vld [vmem:[#allocation117_spill] sm:$0xff] }
 0x4a5   :  { %v2452_v17 = vmul.f32 %v8074_v13, %v8073_v28  ;;  %v2454_v51 = vmul.f32 %v8076_v25, %v8075_v5  ;;  %v3326_v42 = vadd.f32 %v3294_v45, %v2662_v36  ;;  %v2445_v12 = vmul.f32 %v8077_v19, %v6420_v1  ;;  %v8084_v5 = vld [vmem:[#allocation81_spill] sm:$0xff] }
 0x4a6   :  { %3137 = vst [vmem:[%s7465_s8 + $0x90] sm:$0xff] %v3105_v14  ;;  %v3110_v9 = vadd.f32 %v3078_v59, %v2478_v41  ;;  %v3076_v22 = vmul.f32 %v6567_v53, %v6932_v29  ;;  %v6950_v35 = vadd.f32 %v3609_v30, %v6581_v38  ;;  %v3194_v57 = vpop.permute.xlu0 %3193  ;;  %v2480_v60 = vadd.f32 %v2448_v20, %v8078_v0  ;;  %v2860_v1 = vpop.f32.mrf.mxu0 }
 0x4a7   :  { %v2664_v32 = vadd.f32 %v2632_v33, %v6803_v18  ;;  %v2634_v36 = vmul.f32 %v8045_v62, %v8079_v3  ;;  %3358 = vst [vmem:[%s7465_s8 + $0x68] sm:$0xff] %v3326_v42  ;;  %v3296_v41 = vmul.f32 %v3194_v57, %v6865_v56  ;;  %v2479_v53 = vadd.f32 %v2447_v23, %v6843_v43  ;;  %v6969_v62 = vpop.permute.xlu1 %3037  ;;  %v8080_v33 = vld [vmem:[#allocation124_spill] sm:$0xff]  ;;  %v8085_v42 = vld [vmem:[#allocation57_spill] sm:$0xff] }
 0x4a8   :  { %3142 = vst [vmem:[%s7465_s8 + $0xe0] sm:$0xff] %v3110_v9  ;;  %v3108_v7 = vadd.f32 %v3076_v22, %v2476_v10  ;;  %v3079_v18 = vmul.f32 %v6770_v48, %v6950_v35  ;;  %v6967_v20 = vadd.f32 %v6581_v38, %v2860_v1  ;;  %v2482_v45 = vadd.f32 %v2450_v55, %v8080_v33  ;;  %v8082_v56 = vld [vmem:[#allocation100_spill] sm:$0xff]  ;;  %v3612_v59 = vpop.f32.mrf.mxu0  ;;  %v8090_v3 = vld [vmem:[#allocation17_spill] sm:$0xff] }
 0x4a9   :  { %v6973_v14 = vadd.f32 %v2452_v17, %v8081_v31  ;;  %v6976_v43 = vadd.f32 %v2454_v51, %v8082_v56  ;;  %v3328_v23 = vadd.f32 %v3296_v41, %v2664_v32  ;;  %v2477_v10 = vadd.f32 %v2445_v12, %v6883_v34  ;;  %v8083_v17 = vld [vmem:[#allocation129_spill] sm:$0xff]  ;;  %v8089_v32 = vld [vmem:[#allocation132_spill] sm:$0xff] }
 0x4aa   :  { %3140 = vst [vmem:[%s7465_s8 + $0xc0] sm:$0xff] %v3108_v7  ;;  %v3111_v48 = vadd.f32 %v3079_v18, %v2479_v53  ;;  %v3077_v27 = vmul.f32 %v6724_v54, %v6967_v20  ;;  %v6985_v55 = vadd.f32 %v3612_v59, %v6581_v38  ;;  %v3202_v28 = vpop.permute.xlu0 %3201  ;;  %v2456_v25 = vmul.f32 %v8084_v5, %v8083_v17  ;;  %v2873_v30 = vpop.f32.mrf.mxu0  ;;  %v8086_v54 = vld [vmem:[#allocation30_spill] sm:$0xff]  ;;  %v8087_v12 = vld [vmem:[#allocation33_spill] sm:$0xff]  ;;  %v8092_v1 = vld [vmem:[#allocation156_spill] sm:$0xff] }
 0x4ab   :  { %v2666_v51 = vadd.f32 %v2634_v36, %v6792_v61  ;;  %v2636_v34 = vmul.f32 %v8061_v58, %v8085_v42  ;;  %3360 = vst [vmem:[%s7465_s8 + $0x88] sm:$0xff] %v3328_v23  ;;  %v3298_v19 = vmul.f32 %v3202_v28, %v6846_v15  ;;  %v2451_v9 = vmul.f32 %v8087_v12, %v8086_v54  ;;  %v8088_v61 = vld [vmem:[#allocation112_spill] sm:$0xff]  ;;  %v7006_v0 = vpop.permute.xlu1 %3045  ;;  %v8093_v53 = vld [vmem:[#allocation74_spill] sm:$0xff]  ;;  %v8094_v7 = vld [vmem:[#allocation25_spill] sm:$0xff] }
 0x4ac   :  { %3143 = vst [vmem:[%s7465_s8 + $0xf0] sm:$0xff] %v3111_v48  ;;  %v3109_v22 = vadd.f32 %v3077_v27, %v2477_v10  ;;  %v3082_v57 = vmul.f32 %v8088_v61, %v6985_v55  ;;  %v7004_v58 = vadd.f32 %v6581_v38, %v2873_v30  ;;  %v2458_v36 = vmul.f32 %v8090_v3, %v8089_v32  ;;  %v8091_v15 = vld [vmem:[#allocation56_spill] sm:$0xff]  ;;  %v3613_v31 = vpop.f32.mrf.mxu0  ;;  %v8096_v23 = vld [vmem:[#allocation3_spill] sm:$0xff]  ;;  %v8097_v48 = vld [vmem:[#allocation166_spill] sm:$0xff] }
 0x4ad   :  { %v2460_v41 = vmul.f32 %v8092_v1, %v8091_v15  ;;  %v2462_v18 = vmul.f32 %v8094_v7, %v8093_v53  ;;  %v3330_v33 = vadd.f32 %v3298_v19, %v2666_v51  ;;  %v8095_v56 = vld [vmem:[#allocation12_spill] sm:$0xff]  ;;  %v7022_v28 = vadd.f32 %v3613_v31, %v6581_v38  ;;  %v8098_v42 = vld [vmem:[#allocation63_spill] sm:$0xff]  ;;  %v8099_v54 = vld [vmem:[#allocation45_spill] sm:$0xff] }
 0x4ae   :  { %v2449_v59 = vmul.f32 %v8096_v23, %v8095_v56  ;;  %3141 = vst [vmem:[%s7465_s8 + $0xd0] sm:$0xff] %v3109_v22  ;;  %v3114_v10 = vadd.f32 %v3082_v57, %v2482_v45  ;;  %v3080_v27 = vmul.f32 %v8097_v48, %v7004_v58  ;;  %v3210_v17 = vpop.permute.xlu0 %3209  ;;  %v7025_v5 = vadd.f32 %v2456_v25, %v6728_v6  ;;  %v2876_v45 = vpop.f32.mrf.mxu0  ;;  %v8102_v15 = vld [vmem:[#allocation92_spill] sm:$0xff]  ;;  %v8105_v31 = vld [vmem:[#allocation9_spill] sm:$0xff]  ;;  %v8107_v48 = vld [vmem:[#allocation150_spill] sm:$0xff] }
 0x4af   :  { %v2668_v51 = vadd.f32 %v2636_v34, %v6839_v11  ;;  %v2638_v30 = vmul.f32 %v8063_v4, %v8098_v42  ;;  %3362 = vst [vmem:[%s7465_s8 + $0xa8] sm:$0xff] %v3330_v33  ;;  %v3300_v19 = vmul.f32 %v3210_v17, %v6932_v29  ;;  %v2483_v12 = vadd.f32 %v2451_v9, %v8099_v54  ;;  %v7043_v4 = vpop.permute.xlu1 %3053  ;;  %v8100_v34 = vld [vmem:[#allocation39_spill] sm:$0xff]  ;;  %v8103_v53 = vld [vmem:[#allocation60_spill] sm:$0xff]  ;;  %v8104_v33 = vld [vmem:[#allocation18_spill] sm:$0xff] }
 0x4b0   :  { %3146 = vst [vmem:[%s7465_s8 + $0x120] sm:$0xff] %v3114_v10  ;;  %v3112_v6 = vadd.f32 %v3080_v27, %v2480_v60  ;;  %v3083_v11 = vmul.f32 %v6867_v63, %v7022_v28  ;;  %v7041_v25 = vadd.f32 %v6581_v38, %v2876_v45  ;;  %v7046_v22 = vadd.f32 %v2458_v36, %v8100_v34  ;;  %v3616_v57 = vpop.f32.mrf.mxu0  ;;  %v8101_v60 = vld [vmem:[#allocation125_spill] sm:$0xff]  ;;  %v4043_v17 = vld [vmem:[%s7457_s0 + $0x70] sm:$0xff]  ;;  %v8109_v45 = vld [vmem:[#allocation7_spill] sm:$0xff] }
 0x4b1   :  { %v7049_v29 = vadd.f32 %v2460_v41, %v6778_v24  ;;  %v7052_v9 = vadd.f32 %v2462_v18, %v6757_v40  ;;  %v3332_v61 = vadd.f32 %v3300_v19, %v2668_v51  ;;  %v2481_v32 = vadd.f32 %v2449_v59, %v8101_v60  ;;  %v4041_v40 = vld [vmem:[%s7457_s0 + $0x30] sm:$0xff]  ;;  %v8108_v51 = vld [vmem:[#allocation43_spill] sm:$0xff] }
 0x4b2   :  { %3144 = vst [vmem:[%s7465_s8 + $0x100] sm:$0xff] %v3112_v6  ;;  %v3115_v63 = vadd.f32 %v3083_v11, %v2483_v12  ;;  %v3081_v3 = vmul.f32 %v6823_v39, %v7041_v25  ;;  %v7061_v36 = vadd.f32 %v3616_v57, %v6581_v38  ;;  %v3218_v24 = vpop.permute.xlu0 %3217  ;;  %v7067_v1 = vmul.f32 %v4041_v40, %v8102_v15  ;;  %v2889_v39 = vpop.f32.mrf.mxu0  ;;  %v8110_v6 = vld [vmem:[#allocation10_spill] sm:$0xff]  ;;  %v8111_v11 = vld [vmem:[#allocation11_spill] sm:$0xff] }
 0x4b3   :  { %v2670_v41 = vadd.f32 %v2638_v30, %v6835_v26  ;;  %v2640_v7 = vmul.f32 %v8069_v50, %v8103_v53  ;;  %3364 = vst [vmem:[%s7465_s8 + $0xc8] sm:$0xff] %v3332_v61  ;;  %v3302_v18 = vmul.f32 %v3218_v24, %v6913_v37  ;;  %v2455_v56 = vmul.f32 %v8105_v31, %v8104_v33  ;;  %v8106_v26 = vld [vmem:[#allocation120_spill] sm:$0xff]  ;;  %v7086_v10 = vpop.permute.xlu1 %3061  ;;  %v4044_v30 = vld [vmem:[%s7457_s0 + $0x18] sm:$0xff]  ;;  %v8112_v57 = vld [vmem:[#allocation123_spill] sm:$0xff] }
 0x4b4   :  { %3147 = vst [vmem:[%s7465_s8 + $0x130] sm:$0xff] %v3115_v63  ;;  %v3113_v23 = vadd.f32 %v3081_v3, %v2481_v32  ;;  %v3086_v59 = vmul.f32 %v8106_v26, %v7061_v36  ;;  %v7084_v50 = vadd.f32 %v6581_v38, %v2889_v39  ;;  %v4042_v37 = vld [vmem:[%s7457_s0 + $0x50] sm:$0xff]  ;;  %v7098_v42 = vmul.f32 %v4043_v17, %v8108_v51  ;;  %v3617_v12 = vpop.f32.mrf.mxu0  ;;  %v8113_v24 = vld [vmem:[#allocation59_spill] sm:$0xff]  ;;  %v8114_v15 = vld [vmem:[#allocation122_spill] sm:$0xff] }
 0x4b5   :  { %v7092_v27 = vmul.f32 %v4042_v37, %v8107_v48  ;;  %v2625_v19 = vmul.f32 %v4044_v30, %v8109_v45  ;;  %v3334_v54 = vadd.f32 %v3302_v18, %v2670_v41  ;;  %v2453_v34 = vmul.f32 %v8111_v11, %v8110_v6  ;;  %v4045_v3 = vld [vmem:[%s7457_s0 + $0x90] sm:$0xff]  ;;  %v8115_v53 = vld [vmem:[#allocation158_spill] sm:$0xff]  ;;  %v4046_v26 = vld [vmem:[%s7457_s0 + $0x38] sm:$0xff] }
 0x4b6   :  { %3145 = vst [vmem:[%s7465_s8 + $0x110] sm:$0xff] %v3113_v23  ;;  %v3118_v61 = vadd.f32 %v3086_v59, %v6976_v43  ;;  %v3084_v60 = vmul.f32 %v8112_v57, %v7084_v50  ;;  %v7113_v32 = vadd.f32 %v3617_v12, %v6581_v38  ;;  %v3226_v63 = vpop.permute.xlu0 %3225  ;;  %v7119_v40 = vmul.f32 %v4045_v3, %v8113_v24  ;;  %v2892_v43 = vpop.f32.mrf.mxu0  ;;  %v8118_v48 = vld [vmem:[#allocation114_spill] sm:$0xff]  ;;  %v8119_v12 = vld [vmem:[#allocation44_spill] sm:$0xff]  ;;  %v8121_v57 = vld [vmem:[#allocation27_spill] sm:$0xff] }
 0x4b7   :  { %v2672_v41 = vadd.f32 %v2640_v7, %v8114_v15  ;;  %v2642_v39 = vmul.f32 %v8072_v16, %v8115_v53  ;;  %3366 = vst [vmem:[%s7465_s8 + $0xe8] sm:$0xff] %v3334_v54  ;;  %v3304_v18 = vmul.f32 %v3226_v63, %v7004_v58  ;;  %v2487_v33 = vadd.f32 %v2455_v56, %v6782_v46  ;;  %v3166_v23 = vpop.permute.xlu1 %3165  ;;  %v8116_v58 = vld [vmem:[#allocation26_spill] sm:$0xff]  ;;  %v8117_v46 = vld [vmem:[#allocation35_spill] sm:$0xff]  ;;  %v8120_v6 = vld [vmem:[#allocation160_spill] sm:$0xff] }
 0x4b8   :  { %3150 = vst [vmem:[%s7465_s8 + $0x160] sm:$0xff] %v3118_v61  ;;  %v3116_v31 = vadd.f32 %v3084_v60, %v6973_v14  ;;  %v3087_v7 = vmul.f32 %v6934_v44, %v7113_v32  ;;  %v7136_v16 = vadd.f32 %v6581_v38, %v2892_v43  ;;  %v2627_v59 = vmul.f32 %v4046_v26, %v8116_v58  ;;  %v3620_v51 = vpop.f32.mrf.mxu0  ;;  %v8122_v60 = vld [vmem:[#allocation84_spill] sm:$0xff]  ;;  %v8123_v3 = vld [vmem:[#allocation119_spill] sm:$0xff]  ;;  %v8124_v53 = vld [vmem:[#allocation21_spill] sm:$0xff] }
 0x4b9   :  { %v2657_v56 = vadd.f32 %v2625_v19, %v8117_v46  ;;  %v3336_v37 = vadd.f32 %v3304_v18, %v2672_v41  ;;  %v3289_v17 = vmul.f32 %v3166_v23, %v8118_v48  ;;  %v2485_v14 = vadd.f32 %v2453_v34, %v6788_v47  ;;  %v8125_v18 = vld [vmem:[#allocation34_spill] sm:$0xff]  ;;  %v8127_v23 = vld [vmem:[#allocation15_spill] sm:$0xff]  ;;  %v8128_v58 = vld [vmem:[#allocation40_spill] sm:$0xff] }
 0x4ba   :  { %3148 = vst [vmem:[%s7465_s8 + $0x140] sm:$0xff] %v3116_v31  ;;  %v3119_v44 = vadd.f32 %v3087_v7, %v2487_v33  ;;  %v3085_v30 = vmul.f32 %v6899_v2, %v7136_v16  ;;  %v7151_v45 = vadd.f32 %v3620_v51, %v6581_v38  ;;  %v3234_v54 = vpop.permute.xlu0 %3233  ;;  %v2674_v19 = vadd.f32 %v2642_v39, %v8119_v12  ;;  %v2905_v34 = vpop.f32.mrf.mxu0  ;;  %v8126_v7 = vld [vmem:[#allocation16_spill] sm:$0xff]  ;;  %v4048_v48 = vld [vmem:[%s7457_s0 + $0x168] sm:$0xff] }
 0x4bb   :  { %v2644_v11 = vmul.f32 %v8074_v13, %v8120_v6  ;;  %3368 = vst [vmem:[%s7465_s8 + $0x108] sm:$0xff] %v3336_v37  ;;  %v3321_v47 = vadd.f32 %v3289_v17, %v2657_v56  ;;  %v3306_v61 = vmul.f32 %v3234_v54, %v6985_v55  ;;  %v2459_v2 = vmul.f32 %v8122_v60, %v8121_v57  ;;  %v3174_v15 = vpop.permute.xlu1 %3173  ;;  %v4047_v55 = vld [vmem:[%s7457_s0 + $0x58] sm:$0xff] }
 0x4bc   :  { %3151 = vst [vmem:[%s7465_s8 + $0x170] sm:$0xff] %v3119_v44  ;;  %v3117_v63 = vadd.f32 %v3085_v30, %v2485_v14  ;;  %v3090_v24 = vmul.f32 %v8123_v3, %v7151_v45  ;;  %v7168_v13 = vadd.f32 %v6581_v38, %v2905_v34  ;;  %v2659_v41 = vadd.f32 %v2627_v59, %v7067_v1  ;;  %v3621_v31 = vpop.f32.mrf.mxu0  ;;  %v8129_v17 = vld [vmem:[#allocation161_spill] sm:$0xff]  ;;  %v8130_v30 = vld [vmem:[#allocation131_spill] sm:$0xff] }
 0x4bd   :  { %v2629_v39 = vmul.f32 %v4047_v55, %v8124_v53  ;;  %3353 = vst [vmem:[%s7465_s8 + $0x18] sm:$0xff] %v3321_v47  ;;  %v3338_v43 = vadd.f32 %v3306_v61, %v2674_v19  ;;  %v3291_v33 = vmul.f32 %v3174_v15, %v8125_v18  ;;  %v2457_v26 = vmul.f32 %v8127_v23, %v8126_v7  ;;  %v8131_v47 = vld [vmem:[#allocation19_spill] sm:$0xff]  ;;  %v8133_v60 = vld [vmem:[#allocation49_spill] sm:$0xff]  ;;  %v8135_v53 = vld [vmem:[#allocation162_spill] sm:$0xff] }
 0x4be   :  { %3149 = vst [vmem:[%s7465_s8 + $0x150] sm:$0xff] %v3117_v63  ;;  %v3122_v1 = vadd.f32 %v3090_v24, %v7046_v22  ;;  %v3088_v59 = vmul.f32 %v8128_v58, %v7168_v13  ;;  %v7188_v46 = vadd.f32 %v3621_v31, %v6581_v38  ;;  %v3242_v56 = vpop.permute.xlu0 %3241  ;;  %v2676_v37 = vadd.f32 %v2644_v11, %v6763_v21  ;;  %v2908_v14 = vpop.f32.mrf.mxu0  ;;  %v8132_v61 = vld [vmem:[#allocation47_spill] sm:$0xff]  ;;  %v8134_v15 = vld [vmem:[#allocation37_spill] sm:$0xff] }
 0x4bf   :  { %v2646_v51 = vmul.f32 %v4048_v48, %v8129_v17  ;;  %3370 = vst [vmem:[%s7465_s8 + $0x128] sm:$0xff] %v3338_v43  ;;  %v3323_v22 = vadd.f32 %v3291_v33, %v2659_v41  ;;  %v3308_v44 = vmul.f32 %v3242_v56, %v7084_v50  ;;  %v2491_v54 = vadd.f32 %v2459_v2, %v8130_v30  ;;  %v3182_v6 = vpop.permute.xlu1 %3181  ;;  %v4049_v50 = vld [vmem:[%s7457_s0 + $0x78] sm:$0xff]  ;;  %v4050_v55 = vld [vmem:[%s7457_s0 + $0x188] sm:$0xff]  ;;  %v8136_v33 = vld [vmem:[#allocation48_spill] sm:$0xff] }
 0x4c0   :  { %3154 = vst [vmem:[%s7465_s8 + $0x1a0] sm:$0xff] %v3122_v1  ;;  %v3120_v21 = vadd.f32 %v3088_v59, %v7025_v5  ;;  %v3091_v12 = vmul.f32 %v7006_v0, %v7188_v46  ;;  %v7207_v19 = vadd.f32 %v6581_v38, %v2908_v14  ;;  %v2661_v11 = vadd.f32 %v2629_v39, %v7092_v27  ;;  %v3624_v0 = vpop.f32.mrf.mxu0  ;;  %v8137_v31 = vld [vmem:[#allocation23_spill] sm:$0xff]  ;;  %v8141_v30 = vld [vmem:[#allocation24_spill] sm:$0xff] }
 0x4c1   :  { %v2631_v34 = vmul.f32 %v4049_v50, %v8131_v47  ;;  %3355 = vst [vmem:[%s7465_s8 + $0x38] sm:$0xff] %v3323_v22  ;;  %v3340_v5 = vadd.f32 %v3308_v44, %v2676_v37  ;;  %v3293_v57 = vmul.f32 %v3182_v6, %v8132_v61  ;;  %v2489_v2 = vadd.f32 %v2457_v26, %v8133_v60  ;;  %v8138_v26 = vld [vmem:[#allocation54_spill] sm:$0xff]  ;;  %v8139_v37 = vld [vmem:[#allocation31_spill] sm:$0xff]  ;;  %v4052_v44 = vld [vmem:[%s7457_s0 + $0x1d8] sm:$0xff] }
 0x4c2   :  { %3152 = vst [vmem:[%s7465_s8 + $0x180] sm:$0xff] %v3120_v21  ;;  %v3123_v27 = vadd.f32 %v3091_v12, %v2491_v54  ;;  %v3089_v63 = vmul.f32 %v6969_v62, %v7207_v19  ;;  %v7225_v3 = vadd.f32 %v3624_v0, %v6581_v38  ;;  %v3250_v24 = vpop.permute.xlu0 %3249  ;;  %v2678_v41 = vadd.f32 %v2646_v51, %v8134_v15  ;;  %v2921_v18 = vpop.f32.mrf.mxu0  ;;  %v8140_v51 = vld [vmem:[#allocation101_spill] sm:$0xff]  ;;  %v8142_v21 = vld [vmem:[#allocation36_spill] sm:$0xff]  ;;  %v8143_v50 = vld [vmem:[#allocation103_spill] sm:$0xff] }
 0x4c3   :  { %v2648_v39 = vmul.f32 %v4050_v55, %v8135_v53  ;;  %3372 = vst [vmem:[%s7465_s8 + $0x148] sm:$0xff] %v3340_v5  ;;  %v3325_v43 = vadd.f32 %v3293_v57, %v2661_v11  ;;  %v3310_v62 = vmul.f32 %v3250_v24, %v7061_v36  ;;  %v2463_v7 = vmul.f32 %v8137_v31, %v8136_v33  ;;  %v3190_v59 = vpop.permute.xlu1 %3189  ;;  %v4051_v36 = vld [vmem:[%s7457_s0 + $0x98] sm:$0xff]  ;;  %v8144_v5 = vld [vmem:[#allocation163_spill] sm:$0xff]  ;;  %v8145_v60 = vld [vmem:[#allocation52_spill] sm:$0xff] }
 0x4c4   :  { %3155 = vst [vmem:[%s7465_s8 + $0x1b0] sm:$0xff] %v3123_v27  ;;  %v3121_v23 = vadd.f32 %v3089_v63, %v2489_v2  ;;  %v3094_v1 = vmul.f32 %v8138_v26, %v7225_v3  ;;  %v7244_v58 = vadd.f32 %v6581_v38, %v2921_v18  ;;  %v2663_v56 = vadd.f32 %v2631_v34, %v7098_v42  ;;  %v3625_v14 = vpop.f32.mrf.mxu0  ;;  %v4053_v34 = vld [vmem:[%s7457_s0 + $0x1a8] sm:$0xff]  ;;  %v8146_v55 = vld [vmem:[#allocation28_spill] sm:$0xff]  ;;  %v8148_v31 = vld [vmem:[#allocation42_spill] sm:$0xff] }
 0x4c5   :  { %v2633_v48 = vmul.f32 %v4051_v36, %v8139_v37  ;;  %3357 = vst [vmem:[%s7465_s8 + $0x58] sm:$0xff] %v3325_v43  ;;  %v3342_v17 = vadd.f32 %v3310_v62, %v2678_v41  ;;  %v3295_v22 = vmul.f32 %v3190_v59, %v8140_v51  ;;  %v2461_v42 = vmul.f32 %v4052_v44, %v8141_v30  ;;  %v8150_v59 = vld [vmem:[#allocation106_spill] sm:$0xff]  ;;  %v8151_v51 = vld [vmem:[#allocation8_spill] sm:$0xff] }
 0x4c6   :  { %3153 = vst [vmem:[%s7465_s8 + $0x190] sm:$0xff] %v3121_v23  ;;  %v3126_v54 = vadd.f32 %v3094_v1, %v7052_v9  ;;  %v3092_v12 = vmul.f32 %v8142_v21, %v7244_v58  ;;  %v7266_v6 = vadd.f32 %v3625_v14, %v6581_v38  ;;  %v3258_v11 = vpop.permute.xlu0 %3257  ;;  %v2680_v47 = vadd.f32 %v2648_v39, %v8143_v50  ;;  %v2924_v57 = vpop.f32.mrf.mxu0  ;;  %v8149_v23 = vld [vmem:[#allocation164_spill] sm:$0xff] }
 0x4c7   :  { %v2650_v61 = vmul.f32 %v4053_v34, %v8144_v5  ;;  %3374 = vst [vmem:[%s7465_s8 + $0x168] sm:$0xff] %v3342_v17  ;;  %v3327_v9 = vadd.f32 %v3295_v22, %v2663_v56  ;;  %v3312_v0 = vmul.f32 %v3258_v11, %v7168_v13  ;;  %v2495_v2 = vadd.f32 %v2463_v7, %v8145_v60  ;;  %v3198_v15 = vpop.permute.xlu1 %3197  ;;  %v4054_v13 = vld [vmem:[%s7457_s0 + $0xb8] sm:$0xff]  ;;  %v4059_v44 = vld [vmem:[%s7457_s0 + $0xd0] sm:$0xff]  ;;  %v4061_v34 = vld [vmem:[%s7457_s0 + $0x1e0] sm:$0xff] }
 0x4c8   :  { %3158 = vst [vmem:[%s7465_s8 + $0x1e0] sm:$0xff] %v3126_v54  ;;  %v3124_v27 = vadd.f32 %v3092_v12, %v7049_v29  ;;  %v3095_v63 = vmul.f32 %v7086_v10, %v7266_v6  ;;  %v7285_v24 = vadd.f32 %v6581_v38, %v2924_v57  ;;  %v2665_v41 = vadd.f32 %v2633_v48, %v7119_v40  ;;  %v4055_v38 = vld [vmem:[%s7457_s0 + $0xb0] sm:$0xff]  ;;  %v8147_v10 = vld [vmem:[#allocation61_spill] sm:$0xff]  ;;  %v4060_v12 = vld [vmem:[%s7457_s0 + $0x1e8] sm:$0xff] }
 0x4c9   :  { %v2635_v53 = vmul.f32 %v4054_v13, %v8146_v55  ;;  %3359 = vst [vmem:[%s7465_s8 + $0x78] sm:$0xff] %v3327_v9  ;;  %v3344_v29 = vadd.f32 %v3312_v0, %v2680_v47  ;;  %v3297_v39 = vmul.f32 %v3198_v15, %v6897_v8  ;;  %v1333_v43 = vmul.f32 %v4055_v38, %v8147_v10  ;;  %v4056_v8 = vld [vmem:[%s7457_s0 + $0x1c8] sm:$0xff]  ;;  %v4058_v17 = vld [vmem:[%s7457_s0 + $0xd8] sm:$0xff]  ;;  %v8152_v30 = vld [vmem:[#allocation152_spill] sm:$0xff] }
 0x4ca   :  { %v2493_v40 = vadd.f32 %v2461_v42, %v6903_v52  ;;  %3156 = vst [vmem:[%s7465_s8 + $0x1c0] sm:$0xff] %v3124_v27  ;;  %v3127_v18 = vadd.f32 %v3095_v63, %v2495_v2  ;;  %v3093_v62 = vmul.f32 %v7043_v4, %v7285_v24  ;;  %v3266_v33 = vpop.permute.xlu0 %3265  ;;  %v2682_v7 = vadd.f32 %v2650_v61, %v8148_v31  ;;  %v4057_v4 = vld [vmem:[%s7457_s0 + $0x1c0] sm:$0xff]  ;;  %v8153_v11 = vld [vmem:[#allocation165_spill] sm:$0xff]  ;;  %v8154_v5 = vld [vmem:[#allocation104_spill] sm:$0xff] }
 0x4cb   :  { %v2652_v26 = vmul.f32 %v4056_v8, %v8149_v23  ;;  %3376 = vst [vmem:[%s7465_s8 + $0x188] sm:$0xff] %v3344_v29  ;;  %v3329_v52 = vadd.f32 %v3297_v39, %v2665_v41  ;;  %v3314_v1 = vmul.f32 %v3266_v33, %v7151_v45  ;;  %v1350_v56 = vmul.f32 %v4057_v4, %v8150_v59  ;;  %v3206_v37 = vpop.permute.xlu1 %3205  ;;  %v4062_v0 = vld [vmem:[%s7457_s0 + $0xf8] sm:$0xff]  ;;  %v8155_v60 = vld [vmem:[#allocation14_spill] sm:$0xff]  ;;  %v4063_v15 = vld [vmem:[%s7457_s0 + $0xf0] sm:$0xff] }
 0x4cc   :  { %3159 = vst [vmem:[%s7465_s8 + $0x1f0] sm:$0xff] %v3127_v18  ;;  %v3125_v36 = vadd.f32 %v3093_v62, %v2493_v40  ;;  %v2667_v48 = vadd.f32 %v2635_v53, %v1333_v43  ;;  %v2637_v22 = vmul.f32 %v4058_v17, %v8151_v51  ;;  %v3299_v14 = vmul.f32 %v3206_v37, %v6879_v49  ;;  %v8156_v41 = vld [vmem:[#allocation76_spill] sm:$0xff]  ;;  %v8157_v10 = vld [vmem:[#allocation13_spill] sm:$0xff]  ;;  %v8160_v4 = vld [vmem:[#allocation95_spill] sm:$0xff] }
 0x4cd   :  { %3361 = vst [vmem:[%s7465_s8 + $0x98] sm:$0xff] %v3329_v52  ;;  %v3346_v45 = vadd.f32 %v3314_v1, %v2682_v7  ;;  %v1335_v42 = vmul.f32 %v4059_v44, %v8152_v30  ;;  %v2684_v21 = vadd.f32 %v2652_v26, %v1350_v56  ;;  %v2654_v50 = vmul.f32 %v4060_v12, %v8153_v11  ;;  %v4065_v62 = vld [vmem:[%s7457_s0 + $0x110] sm:$0xff]  ;;  %v4066_v23 = vld [vmem:[%s7457_s0 + $0x138] sm:$0xff]  ;;  %v8159_v26 = vld [vmem:[#allocation22_spill] sm:$0xff] }
 0x4ce   :  { %3157 = vst [vmem:[%s7465_s8 + $0x1d0] sm:$0xff] %v3125_v36  ;;  %v3274_v54 = vpop.permute.xlu0 %3273  ;;  %v3331_v49 = vadd.f32 %v3299_v14, %v2667_v48  ;;  %v1352_v61 = vmul.f32 %v4061_v34, %v8154_v5  ;;  %v2639_v2 = vmul.f32 %v4062_v0, %v8155_v60  ;;  %v1337_v13 = vmul.f32 %v4063_v15, %v8156_v41  ;;  %v4067_v1 = vld [vmem:[%s7457_s0 + $0x130] sm:$0xff]  ;;  %v4068_v48 = vld [vmem:[%s7457_s0 + $0x158] sm:$0xff]  ;;  %v8166_v60 = vld [vmem:[#allocation6_spill] sm:$0xff] }
 0x4cf   :  { %3378 = vst [vmem:[%s7465_s8 + $0x1a8] sm:$0xff] %v3346_v45  ;;  %v3316_v47 = vmul.f32 %v3274_v54, %v7244_v58  ;;  %v3214_v9 = vpop.permute.xlu1 %3213  ;;  %v2669_v57 = vadd.f32 %v2637_v22, %v1335_v42  ;;  %v2643_v52 = vmul.f32 %v4066_v23, %v8159_v26  ;;  %v1341_v59 = vmul.f32 %v4067_v1, %v8160_v4  ;;  %v8161_v17 = vld [vmem:[#allocation20_spill] sm:$0xff]  ;;  %v8162_v45 = vld [vmem:[#allocation2_spill] sm:$0xff]  ;;  %v4070_v54 = vld [vmem:[%s7457_s0 + $0x178] sm:$0xff] }
 0x4d0   :  { %3363 = vst [vmem:[%s7465_s8 + $0xb8] sm:$0xff] %v3331_v49  ;;  %v3301_v58 = vmul.f32 %v3214_v9, %v6967_v20  ;;  %v2686_v55 = vadd.f32 %v2654_v50, %v1352_v61  ;;  %v2671_v38 = vadd.f32 %v2639_v2, %v1337_v13  ;;  %v4064_v20 = vld [vmem:[%s7457_s0 + $0x118] sm:$0xff]  ;;  %v2645_v51 = vmul.f32 %v4068_v48, %v8161_v17  ;;  %v4069_v22 = vld [vmem:[%s7457_s0 + $0x150] sm:$0xff]  ;;  %v8165_v9 = vld [vmem:[#allocation51_spill] sm:$0xff] }
 0x4d1   :  { %v3348_v27 = vadd.f32 %v3316_v47, %v2684_v21  ;;  %v2641_v43 = vmul.f32 %v4064_v20, %v8157_v10  ;;  %v2675_v37 = vadd.f32 %v2643_v52, %v1341_v59  ;;  %v1343_v14 = vmul.f32 %v4069_v22, %v8162_v45  ;;  %v8163_v21 = vld [vmem:[#allocation32_spill] sm:$0xff]  ;;  %v8164_v50 = vld [vmem:[#allocation5_spill] sm:$0xff]  ;;  %v8167_v41 = vld [vmem:[#allocation55_spill] sm:$0xff] }
 0x4d2   :  { %v3282_v63 = vpop.permute.xlu0 %3281  ;;  %v3333_v53 = vadd.f32 %v3301_v58, %v2669_v57  ;;  %v2647_v12 = vmul.f32 %v4070_v54, %v8163_v21  ;;  %v4071_v11 = vld [vmem:[%s7457_s0 + $0x170] sm:$0xff]  ;;  %v4072_v61 = vld [vmem:[%s7457_s0 + $0x198] sm:$0xff] }
 0x4d3   :  { %3380 = vst [vmem:[%s7465_s8 + $0x1c8] sm:$0xff] %v3348_v27  ;;  %v3318_v29 = vmul.f32 %v3282_v63, %v7225_v3  ;;  %v3222_v39 = vpop.permute.xlu1 %3221  ;;  %v8158_v3 = vld [vmem:[#allocation154_spill] sm:$0xff]  ;;  %v2677_v42 = vadd.f32 %v2645_v51, %v1343_v14  ;;  %v1345_v49 = vmul.f32 %v4071_v11, %v8164_v50  ;;  %v2649_v57 = vmul.f32 %v4072_v61, %v8165_v9  ;;  %v4073_v0 = vld [vmem:[%s7457_s0 + $0x190] sm:$0xff]  ;;  %v4074_v15 = vld [vmem:[%s7457_s0 + $0x1b8] sm:$0xff] }
 0x4d4   :  { %3365 = vst [vmem:[%s7465_s8 + $0xd8] sm:$0xff] %v3333_v53  ;;  %v3303_v18 = vmul.f32 %v3222_v39, %v6950_v35  ;;  %v1339_v33 = vmul.f32 %v4065_v62, %v8158_v3  ;;  %v1347_v2 = vmul.f32 %v4073_v0, %v8166_v60  ;;  %v2651_v13 = vmul.f32 %v4074_v15, %v8167_v41  ;;  %v8168_v53 = vld [vmem:[#allocation4_spill] sm:$0xff] }
 0x4d5   :  { %v3350_v40 = vadd.f32 %v3318_v29, %v2686_v55  ;;  %v2679_v5 = vadd.f32 %v2647_v12, %v1345_v49  ;;  %v4075_v55 = vld [vmem:[%s7457_s0 + $0x1b0] sm:$0xff] }
 0x4d6   :  { %v3335_v31 = vadd.f32 %v3303_v18, %v2671_v38  ;;  %v2673_v8 = vadd.f32 %v2641_v43, %v1339_v33  ;;  %v2681_v63 = vadd.f32 %v2649_v57, %v1347_v2  ;;  %v1349_v29 = vmul.f32 %v4075_v55, %v8168_v53  ;;  %v8169_v18 = vld [vmem:[#allocation157_spill] sm:$0xff] }
 0x4d7   :  { %3382 = vst [vmem:[%s7465_s8 + $0x1e8] sm:$0xff] %v3350_v40  ;;  %v3230_v7 = vpop.permute.xlu1 %3229 }
 0x4d8   :  { %3367 = vst [vmem:[%s7465_s8 + $0xf8] sm:$0xff] %v3335_v31  ;;  %v3305_v35 = vmul.f32 %v3230_v7, %v7041_v25  ;;  %v2683_v20 = vadd.f32 %v2651_v13, %v1349_v29  ;;  %v8170_v31 = vld [vmem:[#allocation159_spill] sm:$0xff] }
 0x4da   :  { %v3337_v56 = vadd.f32 %v3305_v35, %v2673_v8 }
 0x4db   :  { %v3238_v36 = vpop.permute.xlu1 %3237 }
 0x4dc   :  { %3369 = vst [vmem:[%s7465_s8 + $0x118] sm:$0xff] %v3337_v56  ;;  %v3307_v25 = vmul.f32 %v3238_v36, %v7022_v28 }
 0x4de   :  { %v3339_v44 = vadd.f32 %v3307_v25, %v2675_v37 }
 0x4df   :  { %v3246_v30 = vpop.permute.xlu1 %3245 }
 0x4e0   :  { %3371 = vst [vmem:[%s7465_s8 + $0x138] sm:$0xff] %v3339_v44  ;;  %v3309_v28 = vmul.f32 %v3246_v30, %v7136_v16 }
 0x4e2   :  { %v3341_v47 = vadd.f32 %v3309_v28, %v2677_v42 }
 0x4e3   :  { %v3254_v34 = vpop.permute.xlu1 %3253 }
 0x4e4   :  { %3373 = vst [vmem:[%s7465_s8 + $0x158] sm:$0xff] %v3341_v47  ;;  %v3311_v16 = vmul.f32 %v3254_v34, %v7113_v32 }
 0x4e6   :  { %v3343_v27 = vadd.f32 %v3311_v16, %v2679_v5 }
 0x4e7   :  { %v3262_v58 = vpop.permute.xlu1 %3261 }
 0x4e8   :  { %3375 = vst [vmem:[%s7465_s8 + $0x178] sm:$0xff] %v3343_v27  ;;  %v3313_v32 = vmul.f32 %v3262_v58, %v7207_v19 }
 0x4ea   :  { %v3345_v39 = vadd.f32 %v3313_v32, %v2681_v63 }
 0x4eb   :  { %v3270_v38 = vpop.permute.xlu1 %3269 }
 0x4ec   :  { %3377 = vst [vmem:[%s7465_s8 + $0x198] sm:$0xff] %v3345_v39  ;;  %v3315_v10 = vmul.f32 %v3270_v38, %v7188_v46 }
 0x4ee   :  { %v3347_v43 = vadd.f32 %v3315_v10, %v2683_v20 }
 0x4ef   :  { %v3278_v40 = vpop.permute.xlu1 %3277 }
 0x4f0   :  { %3379 = vst [vmem:[%s7465_s8 + $0x1b8] sm:$0xff] %v3347_v43  ;;  %v3317_v19 = vmul.f32 %v3278_v40, %v7285_v24 }
 0x4f2   :  { %v3349_v62 = vadd.f32 %v3317_v19, %v8169_v18 }
 0x4f3   :  { %v3286_v3 = vpop.permute.xlu1 %3285 }
 0x4f4   :  { %3381 = vst [vmem:[%s7465_s8 + $0x1d8] sm:$0xff] %v3349_v62  ;;  %v3319_v33 = vmul.f32 %v3286_v3, %v7266_v6 }
 0x4f6   :  { %v3351_v7 = vadd.f32 %v3319_v33, %v8170_v31 }
 0x4f8   :  { %3383 = vst [vmem:[%s7465_s8 + $0x1f8] sm:$0xff] %v3351_v7 }

</bundles_post_ra>
